<compile_context>
chip_gen: v7x
topology: tpu7x:2x2x1
jax: 0.10.0
libtpu: 0.0.40
codegen_flags: <defaults>
</compile_context>

<pallas_src>
import functools

import jax
import jax.numpy as jnp
from jax.experimental import pallas as pl
from jax.experimental.pallas import tpu as pltpu

EPS = 1e-5
LANES = 128


def _round_up(v, m):
    return ((v + m - 1) // m) * m


def _vmem_limit_bytes():
    """Generation-aware VMEM limit: ~75% of physical capacity (v7x=64MiB, else 128MiB)."""
    cap = 64 * 1024 * 1024
    try:
        cap = int(pltpu.get_tpu_info().vmem_capacity_bytes)
    except Exception:
        pass
    return max(32 * 1024 * 1024, (cap * 3) // 4)


def _compiler_params():
    return pltpu.CompilerParams(
        dimension_semantics=("parallel",),        # batch / pixel tiles split across TCs (v7x)
        vmem_limit_bytes=_vmem_limit_bytes(),
    )


# --------------------------------------------------------------------------- #
# Kernels
# --------------------------------------------------------------------------- #
def _conv_block_kernel(x_ref, w_ref, sc_ref, sh_ref, z_ref, stats_ref, xpad_ref,
                       *, apply_act):
    """(optional fused BN-affine+ReLU) -> 3x3 conv -> per-sample BN stats.

    x_ref:     (1, H, W, Cp)   activation for one sample (bf16)
    w_ref:     (3, 3*Cp, Cp)   taps: [kw][kh*Cp + cin, cout] (bf16)
    sc_ref:    (1, Cp)         BN scale of the *previous* BN (f32; used iff apply_act)
    sh_ref:    (1, Cp)         BN shift of the *previous* BN (f32; used iff apply_act)
    z_ref:     (1, H, W, Cp)   raw conv output (bf16)
    stats_ref: (1, 2, Cp)      per-sample [mean, centered M2] over pixels (f32)
    xpad_ref:  (H+2, W+2, Cp)  f32 VMEM scratch holding the zero-halo activation
    """
    _, h, w, cp = x_ref.shape
    cout = z_ref.shape[-1]
    mxu_dtype = w_ref.dtype

    xin = x_ref[0].astype(jnp.float32)                       # (H, W, Cp)
    if apply_act:
        sc = sc_ref[...].reshape(1, 1, cp)
        sh = sh_ref[...].reshape(1, 1, cp)
        xin = jnp.maximum(xin * sc + sh, 0.0)                # fused BN1 affine + ReLU

    # Zero-halo copy in VMEM. Padding happens AFTER the activation so the conv's
    # spatial zero padding is exact (matches PyTorch's zero-padded input).
    xpad_ref[...] = jnp.zeros_like(xpad_ref)
    xpad_ref[1:h + 1, 1:w + 1, :] = xin

    # 3x3 conv as 3 matmuls with K = 3*Cp: for each kw, concatenate the three
    # kh-shifted row views along the channel (contraction) dim.
    acc = jnp.zeros((h * w, cout), jnp.float32)
    for kw in range(3):
        cols = xpad_ref[:, kw:kw + w, :]                     # (H+2, W, Cp) f32
        xcat = jnp.concatenate(
            [cols[0:h], cols[1:h + 1], cols[2:h + 2]], axis=-1)   # (H, W, 3*Cp)
        acc = acc + jnp.dot(
            xcat.reshape(h * w, 3 * cp).astype(mxu_dtype), w_ref[kw],
            preferred_element_type=jnp.float32)

    z_ref[...] = acc.reshape(1, h, w, cout).astype(z_ref.dtype)

    # Per-sample centered statistics (merged across samples with Chan's formula).
    inv = 1.0 / float(h * w)
    mean = jnp.sum(acc, axis=0, keepdims=True) * inv         # (1, Cp)
    cent = acc - mean
    m2 = jnp.sum(cent * cent, axis=0, keepdims=True)         # (1, Cp)
    stats_ref[0] = jnp.concatenate([mean, m2], axis=0)       # (2, Cp)


def _bn_add_relu_kernel(z_ref, scale_ref, shift_ref, res_ref, y_ref):
    """y = relu(z * scale + shift + residual) on one (TM, Cp) tile (f32 math)."""
    y = (z_ref[...].astype(jnp.float32) * scale_ref[...]
         + shift_ref[...] + res_ref[...])
    y_ref[...] = jnp.maximum(y, 0.0)


# --------------------------------------------------------------------------- #
# pallas_call wrappers
# --------------------------------------------------------------------------- #
def _conv_stage(x, w3, scale, shift, *, apply_act):
    """x: (N, H, W, Cp) bf16 -> (z (N,H,W,Cp) bf16, stats (N,2,Cp) f32)."""
    n, h, w, cp = x.shape
    kern = functools.partial(_conv_block_kernel, apply_act=apply_act)
    cost = pl.CostEstimate(
        flops=2 * n * h * w * 9 * cp * cp,
        transcendentals=0,
        bytes_accessed=(x.size * 2 + w3.size * 2 + n * h * w * cp * 2
                        + n * 2 * cp * 4 + 2 * cp * 4),
    )
    return pl.pallas_call(
        kern,
        grid=(n,),
        in_specs=[
            pl.BlockSpec((1, h, w, cp), lambda i: (i, 0, 0, 0)),
            pl.BlockSpec((3, 3 * cp, cp), lambda i: (0, 0, 0)),
            pl.BlockSpec((1, cp), lambda i: (0, 0)),
            pl.BlockSpec((1, cp), lambda i: (0, 0)),
        ],
        out_specs=[
            pl.BlockSpec((1, h, w, cp), lambda i: (i, 0, 0, 0)),
            pl.BlockSpec((1, 2, cp), lambda i: (i, 0, 0)),
        ],
        out_shape=[
            jax.ShapeDtypeStruct((n, h, w, cp), jnp.bfloat16),
            jax.ShapeDtypeStruct((n, 2, cp), jnp.float32),
        ],
        scratch_shapes=[pltpu.VMEM((h + 2, w + 2, cp), jnp.float32)],
        compiler_params=_compiler_params(),
        cost_estimate=cost,
    )(x, w3, scale, shift)


def _pick_tm(m, cp, budget_bytes=4 * 1024 * 1024):
    """Largest lane-dense row-tile (multiple of 8 dividing M) within the budget."""
    if m % 8 != 0:
        return m                                   # full block (== full dims is legal)
    bytes_per_row = cp * (2 + 4 + 4)               # bf16 z + f32 residual + f32 out
    cap = min(m, max(8, (budget_bytes // bytes_per_row) // 8 * 8))
    for tm in range(cap, 7, -8):
        if m % tm == 0:
            return tm
    return m


def _bn_add_relu(z, scale, shift, residual):
    m, cp = z.shape
    tm = _pick_tm(m, cp)
    cost = pl.CostEstimate(
        flops=4 * m * cp, transcendentals=0,
        bytes_accessed=m * cp * (2 + 4 + 4) + 2 * cp * 4)
    return pl.pallas_call(
        _bn_add_relu_kernel,
        grid=(m // tm,),
        in_specs=[
            pl.BlockSpec((tm, cp), lambda i: (i, 0)),
            pl.BlockSpec((1, cp), lambda i: (0, 0)),
            pl.BlockSpec((1, cp), lambda i: (0, 0)),
            pl.BlockSpec((tm, cp), lambda i: (i, 0)),
        ],
        out_specs=pl.BlockSpec((tm, cp), lambda i: (i, 0)),
        out_shape=jax.ShapeDtypeStruct((m, cp), jnp.float32),
        input_output_aliases={3: 0},               # residual buffer reused for the output
        compiler_params=_compiler_params(),
        cost_estimate=cost,
    )(z, scale, shift, residual)


# --------------------------------------------------------------------------- #
# Pure-JAX glue (cheap layout prep + O(C) BN fold)
# --------------------------------------------------------------------------- #
def _prep_weight(w_oihw, cp, dtype):
    """torch (Cout, Cin, 3, 3) -> (3_kw, 3_kh*Cp, Cp), zero-padded channels."""
    cout, cin = w_oihw.shape[0], w_oihw.shape[1]
    wt = jnp.transpose(w_oihw, (3, 2, 1, 0))                 # (kw, kh, cin, cout)
    wt = jnp.pad(wt, ((0, 0), (0, 0), (0, cp - cin), (0, cp - cout)))
    return wt.reshape(3, 3 * cp, cp).astype(dtype)


def _pad_channel_vec(v, cp):
    return jnp.pad(v.astype(jnp.float32), (0, cp - v.shape[0]))


def _fold_bn(stats, gamma_p, beta_p, cnt_per_tile):
    """Chan-merge per-sample (mean, M2) -> train-mode BN affine scale/shift (f32)."""
    means = stats[:, 0, :]                                   # (G, Cp)
    m2s = stats[:, 1, :]
    g = stats.shape[0]
    mean = jnp.mean(means, axis=0)
    m2 = jnp.sum(m2s, axis=0) + cnt_per_tile * jnp.sum((means - mean) ** 2, axis=0)
    var = jnp.maximum(m2 / (g * cnt_per_tile), 0.0)          # biased (train-mode)
    scale = gamma_p * jax.lax.rsqrt(var + EPS)
    shift = beta_p - mean * scale
    # Padded channels: gamma=beta=0 -> scale=shift=0 -> padded outputs stay 0.
    return scale.reshape(1, -1), shift.reshape(1, -1)


# --------------------------------------------------------------------------- #
# BasicBlock forward
# --------------------------------------------------------------------------- #
def basic_block_forward(x_nchw, params, *, compute_dtype=jnp.bfloat16):
    n, c, h, w = x_nchw.shape
    planes, inplanes = params["w1"].shape[0], params["w1"].shape[1]
    assert planes == inplanes == c, "identity residual needs planes == inplanes"
    # TODO(synk): stride>1 / downsample path of BasicBlock is not implemented.

    cp = _round_up(planes, LANES)                            # lane-dense channel pad
    m = n * h * w

    # Layout prep: NCHW -> NHWC, zero-pad channels to Cp (one fused XLA pass).
    x_nhwc = jnp.transpose(x_nchw, (0, 2, 3, 1)).astype(jnp.float32)
    x_cp_f32 = jnp.pad(x_nhwc, ((0, 0), (0, 0), (0, 0), (0, cp - c)))
    x_bf16 = x_cp_f32.astype(compute_dtype)                  # conv1 MXU operand

    w1 = _prep_weight(params["w1"], cp, compute_dtype)
    w2 = _prep_weight(params["w2"], cp, compute_dtype)
    g1 = _pad_channel_vec(params["gamma1"], cp)
    b1 = _pad_channel_vec(params["beta1"], cp)
    g2 = _pad_channel_vec(params["gamma2"], cp)
    b2 = _pad_channel_vec(params["beta2"], cp)

    ones = jnp.ones((1, cp), jnp.float32)
    zeros = jnp.zeros((1, cp), jnp.float32)

    # Stage 1: conv1 + per-sample BN1 stats.
    z1, st1 = _conv_stage(x_bf16, w1, ones, zeros, apply_act=False)
    sc1, sh1 = _fold_bn(st1, g1, b1, h * w)

    # Stage 2: fused BN1 affine + ReLU (zero halo) + conv2 + per-sample BN2 stats.
    z2, st2 = _conv_stage(z1, w2, sc1, sh1, apply_act=True)
    sc2, sh2 = _fold_bn(st2, g2, b2, h * w)

    # Stage 3: BN2 affine + identity residual + ReLU (residual kept f32 for fidelity).
    residual = x_cp_f32.reshape(m, cp)
    y = _bn_add_relu(z2.reshape(m, cp), sc2, sh2, residual)  # (M, Cp) f32

    out = y[:, :planes].reshape(n, h, w, planes)
    return jnp.transpose(out, (0, 3, 1, 2))


# --------------------------------------------------------------------------- #
# References
# --------------------------------------------------------------------------- #
def _reference(x_nchw, params, *, match_kernel_precision=False):
    """Pure-JAX reference of the PyTorch forward (train-mode BN).

    match_kernel_precision=True mirrors the kernel's precision chain (bf16 MXU
    operands, bf16-stored conv outputs, f32 accumulation / BN / residual math),
    enabling a tight tolerance. False = exact PyTorch-f32 math.
    """
    cd = jnp.bfloat16 if match_kernel_precision else jnp.float32

    def conv(x_, w_):
        return jax.lax.conv_general_dilated(
            x_.astype(cd), w_.astype(cd), (1, 1), ((1, 1), (1, 1)),
            dimension_numbers=("NCHW", "OIHW", "NCHW"),
            preferred_element_type=jnp.float32)

    def bn_fold(z, g, b):
        mean = jnp.mean(z, axis=(0, 2, 3), keepdims=True)
        var = jnp.mean((z - mean) ** 2, axis=(0, 2, 3), keepdims=True)
        scale = g.reshape(1, -1, 1, 1) * jax.lax.rsqrt(var + EPS)
        return scale, b.reshape(1, -1, 1, 1) - mean * scale

    def q(z):   # the kernel stores conv outputs in bf16 before the BN affine
        return z.astype(cd).astype(jnp.float32) if match_kernel_precision else z

    z1 = conv(x_nchw, params["w1"])
    s1, t1 = bn_fold(z1, params["gamma1"], params["beta1"])
    y1 = jax.nn.relu(q(z1) * s1 + t1)
    z2 = conv(y1, params["w2"])
    s2, t2 = bn_fold(z2, params["gamma2"], params["beta2"])
    return jax.nn.relu(q(z2) * s2 + t2 + x_nchw)


if __name__ == "__main__":
    key = jax.random.PRNGKey(0)
    kx, k1, k2, kg1, kb1, kg2, kb2 = jax.random.split(key, 7)

    N, C, H, W = 2, 4, 16, 16                    # inplanes = planes = 4, stride = 1
    planes = C

    x = jax.random.normal(kx, (N, C, H, W), jnp.float32)
    params = {
        "w1": 0.1 * jax.random.normal(k1, (planes, C, 3, 3), jnp.float32),
        "w2": 0.1 * jax.random.normal(k2, (planes, planes, 3, 3), jnp.float32),
        "gamma1": 1.0 + 0.1 * jax.random.normal(kg1, (planes,), jnp.float32),
        "beta1": 0.1 * jax.random.normal(kb1, (planes,), jnp.float32),
        "gamma2": 1.0 + 0.1 * jax.random.normal(kg2, (planes,), jnp.float32),
        "beta2": 0.1 * jax.random.normal(kb2, (planes,), jnp.float32),
    }

    fwd = jax.jit(basic_block_forward)
    out = fwd(x, params)
    jax.block_until_ready(out)
    assert out.shape == (N, planes, H, W)

    # Tight check vs a reference matching the kernel's precision choices.
    ref_m = _reference(x, params, match_kernel_precision=True)
    err_m = float(jnp.max(jnp.abs(out - ref_m)))
    assert jnp.allclose(out, ref_m, atol=5e-3, rtol=5e-3), (
        f"mismatch vs matched-precision reference, max abs err={err_m}")

    # Loose sanity check vs full-f32 PyTorch-semantics math (bf16 MXU operands and
    # bf16-stored conv intermediates contribute a few 1e-2 absolute error here).
    ref_f = _reference(x, params, match_kernel_precision=False)
    err_f = float(jnp.max(jnp.abs(out - ref_f)))
    assert jnp.allclose(out, ref_f, atol=1e-1, rtol=1e-1), (
        f"mismatch vs f32 reference, max abs err={err_f}")

    print("KERNEL_OK")
</pallas_src>

<mosaic_0001>
module attributes {stable_mosaic.version = 11 : i64} {
  func.func @_conv_block_kernel(%arg0: i32, %arg1: memref<1x16x16x128xbf16, #tpu.memory_space<vmem>>, %arg2: memref<3x384x128xbf16, #tpu.memory_space<vmem>>, %arg3: memref<1x128xf32, #tpu.memory_space<vmem>>, %arg4: memref<1x128xf32, #tpu.memory_space<vmem>>, %arg5: memref<1x16x16x128xbf16, #tpu.memory_space<vmem>>, %arg6: memref<1x2x128xf32, #tpu.memory_space<vmem>>, %arg7: memref<18x18x128xf32, #tpu.memory_space<vmem>>) attributes {dimension_semantics = [#tpu.dimension_semantics<parallel>], iteration_bounds = array<i64: 2>, scalar_prefetch = 0 : i64, scratch_operands = 1 : i64, tpu.core_type = #tpu.core_type<tc>, window_params = [{transform_indices = @transform_0, window_bounds = array<i64: 1, 16, 16, 128>}, {pipeline_mode = #tpu.pipeline_mode<synchronous>, transform_indices = @transform_1, window_bounds = array<i64: 3, 384, 128>}, {pipeline_mode = #tpu.pipeline_mode<synchronous>, transform_indices = @transform_2, window_bounds = array<i64: 1, 128>}, {pipeline_mode = #tpu.pipeline_mode<synchronous>, transform_indices = @transform_3, window_bounds = array<i64: 1, 128>}, {transform_indices = @transform_4, window_bounds = array<i64: 1, 16, 16, 128>}, {transform_indices = @transform_5, window_bounds = array<i64: 1, 2, 128>}]} {
    %c0 = arith.constant 0 : index
    %c0_0 = arith.constant 0 : index
    %c0_1 = arith.constant 0 : index
    %c0_2 = arith.constant 0 : index
    %0 = vector.load %arg1[%c0, %c0_0, %c0_1, %c0_2] : memref<1x16x16x128xbf16, #tpu.memory_space<vmem>>, vector<1x16x16x128xbf16>
    %1 = vector.shape_cast %0 : vector<1x16x16x128xbf16> to vector<16x16x128xbf16>
    %2 = arith.extf %1 : vector<16x16x128xbf16> to vector<16x16x128xf32>
    %c0_3 = arith.constant 0 : index
    %c0_4 = arith.constant 0 : index
    %3 = vector.load %arg3[%c0_3, %c0_4] : memref<1x128xf32, #tpu.memory_space<vmem>>, vector<1x128xf32>
    %4 = vector.shape_cast %3 : vector<1x128xf32> to vector<1x1x128xf32>
    %c0_5 = arith.constant 0 : index
    %c0_6 = arith.constant 0 : index
    %5 = vector.load %arg4[%c0_5, %c0_6] : memref<1x128xf32, #tpu.memory_space<vmem>>, vector<1x128xf32>
    %6 = vector.shape_cast %5 : vector<1x128xf32> to vector<1x1x128xf32>
    %7 = vector.broadcast %4 : vector<1x1x128xf32> to vector<16x16x128xf32>
    %8 = arith.mulf %2, %7 : vector<16x16x128xf32>
    %9 = vector.broadcast %6 : vector<1x1x128xf32> to vector<16x16x128xf32>
    %10 = arith.addf %8, %9 : vector<16x16x128xf32>
    %cst = arith.constant 0.000000e+00 : f32
    %11 = vector.broadcast %cst : f32 to vector<16x16x128xf32>
    %12 = arith.maximumf %10, %11 : vector<16x16x128xf32>
    %cst_7 = arith.constant 0.000000e+00 : f32
    %13 = vector.broadcast %cst_7 : f32 to vector<18x18x128xf32>
    %c0_8 = arith.constant 0 : index
    %c0_9 = arith.constant 0 : index
    %c0_10 = arith.constant 0 : index
    %14 = vector.load %arg7[%c0_8, %c0_9, %c0_10] : memref<18x18x128xf32, #tpu.memory_space<vmem>>, vector<18x18x128xf32>
    tpu.vector_store %arg7[%c0_8, %c0_9, %c0_10], %13 {strides = array<i32>} : memref<18x18x128xf32, #tpu.memory_space<vmem>>, vector<18x18x128xf32>,
    %c1 = arith.constant 1 : index
    %c1_11 = arith.constant 1 : index
    %c0_12 = arith.constant 0 : index
    %15 = vector.load %arg7[%c1, %c1_11, %c0_12] : memref<18x18x128xf32, #tpu.memory_space<vmem>>, vector<16x16x128xf32>
    tpu.vector_store %arg7[%c1, %c1_11, %c0_12], %12 {strides = array<i32>} : memref<18x18x128xf32, #tpu.memory_space<vmem>>, vector<16x16x128xf32>,
    %cst_13 = arith.constant 0.000000e+00 : f32
    %16 = vector.broadcast %cst_13 : f32 to vector<256x128xf32>
    %c0_14 = arith.constant 0 : index
    %c0_15 = arith.constant 0 : index
    %c0_16 = arith.constant 0 : index
    %17 = vector.load %arg7[%c0_14, %c0_15, %c0_16] : memref<18x18x128xf32, #tpu.memory_space<vmem>>, vector<18x16x128xf32>
    %18 = vector.extract_strided_slice %17 {offsets = [0, 0, 0], sizes = [16, 16, 128], strides = [1, 1, 1]} : vector<18x16x128xf32> to vector<16x16x128xf32>
    %19 = vector.extract_strided_slice %17 {offsets = [1, 0, 0], sizes = [16, 16, 128], strides = [1, 1, 1]} : vector<18x16x128xf32> to vector<16x16x128xf32>
    %20 = vector.extract_strided_slice %17 {offsets = [2, 0, 0], sizes = [16, 16, 128], strides = [1, 1, 1]} : vector<18x16x128xf32> to vector<16x16x128xf32>
    %21 = tpu.concatenate %18, %19, %20 in 2 : vector<16x16x128xf32>, vector<16x16x128xf32>, vector<16x16x128xf32> -> vector<16x16x384xf32>
    %22 = vector.shape_cast %21 : vector<16x16x384xf32> to vector<256x384xf32>
    %23 = arith.truncf %22 : vector<256x384xf32> to vector<256x384xbf16>
    %c0_17 = arith.constant 0 : index
    %c0_18 = arith.constant 0 : index
    %c0_19 = arith.constant 0 : index
    %24 = vector.load %arg2[%c0_17, %c0_18, %c0_19] : memref<3x384x128xbf16, #tpu.memory_space<vmem>>, vector<1x384x128xbf16>
    %25 = vector.shape_cast %24 : vector<1x384x128xbf16> to vector<384x128xbf16>
    %cst_20 = arith.constant dense<0.000000e+00> : vector<256x128xf32>
    %26 = tpu.matmul %23, %25, %cst_20 {dimension_numbers = #tpu.dot_dimension_numbers<[1], [0], [0], [1], [0, 0, 1, 1], [], []>} : vector<256x384xbf16>, vector<384x128xbf16>, vector<256x128xf32> -> vector<256x128xf32>
    %27 = arith.addf %16, %26 : vector<256x128xf32>
    %c0_21 = arith.constant 0 : index
    %c1_22 = arith.constant 1 : index
    %c0_23 = arith.constant 0 : index
    %28 = vector.load %arg7[%c0_21, %c1_22, %c0_23] : memref<18x18x128xf32, #tpu.memory_space<vmem>>, vector<18x16x128xf32>
    %29 = vector.extract_strided_slice %28 {offsets = [0, 0, 0], sizes = [16, 16, 128], strides = [1, 1, 1]} : vector<18x16x128xf32> to vector<16x16x128xf32>
    %30 = vector.extract_strided_slice %28 {offsets = [1, 0, 0], sizes = [16, 16, 128], strides = [1, 1, 1]} : vector<18x16x128xf32> to vector<16x16x128xf32>
    %31 = vector.extract_strided_slice %28 {offsets = [2, 0, 0], sizes = [16, 16, 128], strides = [1, 1, 1]} : vector<18x16x128xf32> to vector<16x16x128xf32>
    %32 = tpu.concatenate %29, %30, %31 in 2 : vector<16x16x128xf32>, vector<16x16x128xf32>, vector<16x16x128xf32> -> vector<16x16x384xf32>
    %33 = vector.shape_cast %32 : vector<16x16x384xf32> to vector<256x384xf32>
    %34 = arith.truncf %33 : vector<256x384xf32> to vector<256x384xbf16>
    %c1_24 = arith.constant 1 : index
    %c0_25 = arith.constant 0 : index
    %c0_26 = arith.constant 0 : index
    %35 = vector.load %arg2[%c1_24, %c0_25, %c0_26] : memref<3x384x128xbf16, #tpu.memory_space<vmem>>, vector<1x384x128xbf16>
    %36 = vector.shape_cast %35 : vector<1x384x128xbf16> to vector<384x128xbf16>
    %cst_27 = arith.constant dense<0.000000e+00> : vector<256x128xf32>
    %37 = tpu.matmul %34, %36, %cst_27 {dimension_numbers = #tpu.dot_dimension_numbers<[1], [0], [0], [1], [0, 0, 1, 1], [], []>} : vector<256x384xbf16>, vector<384x128xbf16>, vector<256x128xf32> -> vector<256x128xf32>
    %38 = arith.addf %27, %37 : vector<256x128xf32>
    %c0_28 = arith.constant 0 : index
    %c2 = arith.constant 2 : index
    %c0_29 = arith.constant 0 : index
    %39 = vector.load %arg7[%c0_28, %c2, %c0_29] : memref<18x18x128xf32, #tpu.memory_space<vmem>>, vector<18x16x128xf32>
    %40 = vector.extract_strided_slice %39 {offsets = [0, 0, 0], sizes = [16, 16, 128], strides = [1, 1, 1]} : vector<18x16x128xf32> to vector<16x16x128xf32>
    %41 = vector.extract_strided_slice %39 {offsets = [1, 0, 0], sizes = [16, 16, 128], strides = [1, 1, 1]} : vector<18x16x128xf32> to vector<16x16x128xf32>
    %42 = vector.extract_strided_slice %39 {offsets = [2, 0, 0], sizes = [16, 16, 128], strides = [1, 1, 1]} : vector<18x16x128xf32> to vector<16x16x128xf32>
    %43 = tpu.concatenate %40, %41, %42 in 2 : vector<16x16x128xf32>, vector<16x16x128xf32>, vector<16x16x128xf32> -> vector<16x16x384xf32>
    %44 = vector.shape_cast %43 : vector<16x16x384xf32> to vector<256x384xf32>
    %45 = arith.truncf %44 : vector<256x384xf32> to vector<256x384xbf16>
    %c2_30 = arith.constant 2 : index
    %c0_31 = arith.constant 0 : index
    %c0_32 = arith.constant 0 : index
    %46 = vector.load %arg2[%c2_30, %c0_31, %c0_32] : memref<3x384x128xbf16, #tpu.memory_space<vmem>>, vector<1x384x128xbf16>
    %47 = vector.shape_cast %46 : vector<1x384x128xbf16> to vector<384x128xbf16>
    %cst_33 = arith.constant dense<0.000000e+00> : vector<256x128xf32>
    %48 = tpu.matmul %45, %47, %cst_33 {dimension_numbers = #tpu.dot_dimension_numbers<[1], [0], [0], [1], [0, 0, 1, 1], [], []>} : vector<256x384xbf16>, vector<384x128xbf16>, vector<256x128xf32> -> vector<256x128xf32>
    %49 = arith.addf %38, %48 : vector<256x128xf32>
    %50 = vector.shape_cast %49 : vector<256x128xf32> to vector<1x16x16x128xf32>
    %51 = arith.truncf %50 : vector<1x16x16x128xf32> to vector<1x16x16x128xbf16>
    %c0_34 = arith.constant 0 : index
    %c0_35 = arith.constant 0 : index
    %c0_36 = arith.constant 0 : index
    %c0_37 = arith.constant 0 : index
    %52 = vector.load %arg5[%c0_34, %c0_35, %c0_36, %c0_37] : memref<1x16x16x128xbf16, #tpu.memory_space<vmem>>, vector<1x16x16x128xbf16>
    tpu.vector_store %arg5[%c0_34, %c0_35, %c0_36, %c0_37], %51 {strides = array<i32>} : memref<1x16x16x128xbf16, #tpu.memory_space<vmem>>, vector<1x16x16x128xbf16>,
    %cst_38 = arith.constant dense<0.000000e+00> : vector<128xf32>
    %53 = vector.multi_reduction <add>, %49, %cst_38 [0] : vector<256x128xf32> to vector<128xf32>
    %54 = vector.shape_cast %53 : vector<128xf32> to vector<1x128xf32>
    %cst_39 = arith.constant 3.906250e-03 : f32
    %55 = vector.broadcast %cst_39 : f32 to vector<1x128xf32>
    %56 = arith.mulf %54, %55 : vector<1x128xf32>
    %57 = vector.broadcast %56 : vector<1x128xf32> to vector<256x128xf32>
    %58 = arith.subf %49, %57 : vector<256x128xf32>
    %59 = arith.mulf %58, %58 : vector<256x128xf32>
    %cst_40 = arith.constant dense<0.000000e+00> : vector<128xf32>
    %60 = vector.multi_reduction <add>, %59, %cst_40 [0] : vector<256x128xf32> to vector<128xf32>
    %61 = vector.shape_cast %60 : vector<128xf32> to vector<1x128xf32>
    %62 = tpu.concatenate %56, %61 in 0 : vector<1x128xf32>, vector<1x128xf32> -> vector<2x128xf32>
    %c0_41 = arith.constant 0 : index
    %c0_42 = arith.constant 0 : index
    %c0_43 = arith.constant 0 : index
    %63 = vector.load %arg6[%c0_41, %c0_42, %c0_43] : memref<1x2x128xf32, #tpu.memory_space<vmem>>, vector<1x2x128xf32>
    %64 = vector.shape_cast %63 : vector<1x2x128xf32> to vector<2x128xf32>
    %65 = vector.shape_cast %62 : vector<2x128xf32> to vector<1x2x128xf32>
    tpu.vector_store %arg6[%c0_41, %c0_42, %c0_43], %65 {strides = array<i32>} : memref<1x2x128xf32, #tpu.memory_space<vmem>>, vector<1x2x128xf32>,
    return
  }
  func.func @transform_0(%arg0: i32) -> (i32, i32, i32, i32) {
    %c0_i32 = arith.constant 0 : i32
    %c0_i32_0 = arith.constant 0 : i32
    %c0_i32_1 = arith.constant 0 : i32
    %c0_i32_2 = arith.constant 0 : i32
    return %arg0, %c0_i32, %c0_i32_0, %c0_i32_1 : i32, i32, i32, i32
  }
  func.func @transform_1(%arg0: i32) -> (i32, i32, i32) {
    %c0_i32 = arith.constant 0 : i32
    %c0_i32_0 = arith.constant 0 : i32
    %c0_i32_1 = arith.constant 0 : i32
    %c0_i32_2 = arith.constant 0 : i32
    return %c0_i32, %c0_i32_0, %c0_i32_1 : i32, i32, i32
  }
  func.func @transform_2(%arg0: i32) -> (i32, i32) {
    %c0_i32 = arith.constant 0 : i32
    %c0_i32_0 = arith.constant 0 : i32
    %c0_i32_1 = arith.constant 0 : i32
    return %c0_i32, %c0_i32_0 : i32, i32
  }
  func.func @transform_3(%arg0: i32) -> (i32, i32) {
    %c0_i32 = arith.constant 0 : i32
    %c0_i32_0 = arith.constant 0 : i32
    %c0_i32_1 = arith.constant 0 : i32
    return %c0_i32, %c0_i32_0 : i32, i32
  }
  func.func @transform_4(%arg0: i32) -> (i32, i32, i32, i32) {
    %c0_i32 = arith.constant 0 : i32
    %c0_i32_0 = arith.constant 0 : i32
    %c0_i32_1 = arith.constant 0 : i32
    %c0_i32_2 = arith.constant 0 : i32
    return %arg0, %c0_i32, %c0_i32_0, %c0_i32_1 : i32, i32, i32, i32
  }
  func.func @transform_5(%arg0: i32) -> (i32, i32, i32) {
    %c0_i32 = arith.constant 0 : i32
    %c0_i32_0 = arith.constant 0 : i32
    %c0_i32_1 = arith.constant 0 : i32
    return %arg0, %c0_i32, %c0_i32_0 : i32, i32, i32
  }
}

module attributes {stable_mosaic.version = 11 : i64} {
  func.func @_conv_block_kernel(%arg0: i32, %arg1: memref<1x16x16x128xbf16, #tpu.memory_space<vmem>>, %arg2: memref<3x384x128xbf16, #tpu.memory_space<vmem>>, %arg3: memref<1x128xf32, #tpu.memory_space<vmem>>, %arg4: memref<1x128xf32, #tpu.memory_space<vmem>>, %arg5: memref<1x16x16x128xbf16, #tpu.memory_space<vmem>>, %arg6: memref<1x2x128xf32, #tpu.memory_space<vmem>>, %arg7: memref<18x18x128xf32, #tpu.memory_space<vmem>>) attributes {dimension_semantics = [#tpu.dimension_semantics<parallel>], iteration_bounds = array<i64: 2>, scalar_prefetch = 0 : i64, scratch_operands = 1 : i64, tpu.core_type = #tpu.core_type<tc>, window_params = [{transform_indices = @transform_0, window_bounds = array<i64: 1, 16, 16, 128>}, {pipeline_mode = #tpu.pipeline_mode<synchronous>, transform_indices = @transform_1, window_bounds = array<i64: 3, 384, 128>}, {pipeline_mode = #tpu.pipeline_mode<synchronous>, transform_indices = @transform_2, window_bounds = array<i64: 1, 128>}, {pipeline_mode = #tpu.pipeline_mode<synchronous>, transform_indices = @transform_3, window_bounds = array<i64: 1, 128>}, {transform_indices = @transform_4, window_bounds = array<i64: 1, 16, 16, 128>}, {transform_indices = @transform_5, window_bounds = array<i64: 1, 2, 128>}]} {
    %c0 = arith.constant 0 : index
    %c0_0 = arith.constant 0 : index
    %c0_1 = arith.constant 0 : index
    %c0_2 = arith.constant 0 : index
    %0 = vector.load %arg1[%c0, %c0_0, %c0_1, %c0_2] : memref<1x16x16x128xbf16, #tpu.memory_space<vmem>>, vector<1x16x16x128xbf16>
    %1 = vector.shape_cast %0 : vector<1x16x16x128xbf16> to vector<16x16x128xbf16>
    %2 = arith.extf %1 : vector<16x16x128xbf16> to vector<16x16x128xf32>
    %cst = arith.constant 0.000000e+00 : f32
    %3 = vector.broadcast %cst : f32 to vector<18x18x128xf32>
    %c0_3 = arith.constant 0 : index
    %c0_4 = arith.constant 0 : index
    %c0_5 = arith.constant 0 : index
    %4 = vector.load %arg7[%c0_3, %c0_4, %c0_5] : memref<18x18x128xf32, #tpu.memory_space<vmem>>, vector<18x18x128xf32>
    tpu.vector_store %arg7[%c0_3, %c0_4, %c0_5], %3 {strides = array<i32>} : memref<18x18x128xf32, #tpu.memory_space<vmem>>, vector<18x18x128xf32>,
    %c1 = arith.constant 1 : index
    %c1_6 = arith.constant 1 : index
    %c0_7 = arith.constant 0 : index
    %5 = vector.load %arg7[%c1, %c1_6, %c0_7] : memref<18x18x128xf32, #tpu.memory_space<vmem>>, vector<16x16x128xf32>
    tpu.vector_store %arg7[%c1, %c1_6, %c0_7], %2 {strides = array<i32>} : memref<18x18x128xf32, #tpu.memory_space<vmem>>, vector<16x16x128xf32>,
    %cst_8 = arith.constant 0.000000e+00 : f32
    %6 = vector.broadcast %cst_8 : f32 to vector<256x128xf32>
    %c0_9 = arith.constant 0 : index
    %c0_10 = arith.constant 0 : index
    %c0_11 = arith.constant 0 : index
    %7 = vector.load %arg7[%c0_9, %c0_10, %c0_11] : memref<18x18x128xf32, #tpu.memory_space<vmem>>, vector<18x16x128xf32>
    %8 = vector.extract_strided_slice %7 {offsets = [0, 0, 0], sizes = [16, 16, 128], strides = [1, 1, 1]} : vector<18x16x128xf32> to vector<16x16x128xf32>
    %9 = vector.extract_strided_slice %7 {offsets = [1, 0, 0], sizes = [16, 16, 128], strides = [1, 1, 1]} : vector<18x16x128xf32> to vector<16x16x128xf32>
    %10 = vector.extract_strided_slice %7 {offsets = [2, 0, 0], sizes = [16, 16, 128], strides = [1, 1, 1]} : vector<18x16x128xf32> to vector<16x16x128xf32>
    %11 = tpu.concatenate %8, %9, %10 in 2 : vector<16x16x128xf32>, vector<16x16x128xf32>, vector<16x16x128xf32> -> vector<16x16x384xf32>
    %12 = vector.shape_cast %11 : vector<16x16x384xf32> to vector<256x384xf32>
    %13 = arith.truncf %12 : vector<256x384xf32> to vector<256x384xbf16>
    %c0_12 = arith.constant 0 : index
    %c0_13 = arith.constant 0 : index
    %c0_14 = arith.constant 0 : index
    %14 = vector.load %arg2[%c0_12, %c0_13, %c0_14] : memref<3x384x128xbf16, #tpu.memory_space<vmem>>, vector<1x384x128xbf16>
    %15 = vector.shape_cast %14 : vector<1x384x128xbf16> to vector<384x128xbf16>
    %cst_15 = arith.constant dense<0.000000e+00> : vector<256x128xf32>
    %16 = tpu.matmul %13, %15, %cst_15 {dimension_numbers = #tpu.dot_dimension_numbers<[1], [0], [0], [1], [0, 0, 1, 1], [], []>} : vector<256x384xbf16>, vector<384x128xbf16>, vector<256x128xf32> -> vector<256x128xf32>
    %17 = arith.addf %6, %16 : vector<256x128xf32>
    %c0_16 = arith.constant 0 : index
    %c1_17 = arith.constant 1 : index
    %c0_18 = arith.constant 0 : index
    %18 = vector.load %arg7[%c0_16, %c1_17, %c0_18] : memref<18x18x128xf32, #tpu.memory_space<vmem>>, vector<18x16x128xf32>
    %19 = vector.extract_strided_slice %18 {offsets = [0, 0, 0], sizes = [16, 16, 128], strides = [1, 1, 1]} : vector<18x16x128xf32> to vector<16x16x128xf32>
    %20 = vector.extract_strided_slice %18 {offsets = [1, 0, 0], sizes = [16, 16, 128], strides = [1, 1, 1]} : vector<18x16x128xf32> to vector<16x16x128xf32>
    %21 = vector.extract_strided_slice %18 {offsets = [2, 0, 0], sizes = [16, 16, 128], strides = [1, 1, 1]} : vector<18x16x128xf32> to vector<16x16x128xf32>
    %22 = tpu.concatenate %19, %20, %21 in 2 : vector<16x16x128xf32>, vector<16x16x128xf32>, vector<16x16x128xf32> -> vector<16x16x384xf32>
    %23 = vector.shape_cast %22 : vector<16x16x384xf32> to vector<256x384xf32>
    %24 = arith.truncf %23 : vector<256x384xf32> to vector<256x384xbf16>
    %c1_19 = arith.constant 1 : index
    %c0_20 = arith.constant 0 : index
    %c0_21 = arith.constant 0 : index
    %25 = vector.load %arg2[%c1_19, %c0_20, %c0_21] : memref<3x384x128xbf16, #tpu.memory_space<vmem>>, vector<1x384x128xbf16>
    %26 = vector.shape_cast %25 : vector<1x384x128xbf16> to vector<384x128xbf16>
    %cst_22 = arith.constant dense<0.000000e+00> : vector<256x128xf32>
    %27 = tpu.matmul %24, %26, %cst_22 {dimension_numbers = #tpu.dot_dimension_numbers<[1], [0], [0], [1], [0, 0, 1, 1], [], []>} : vector<256x384xbf16>, vector<384x128xbf16>, vector<256x128xf32> -> vector<256x128xf32>
    %28 = arith.addf %17, %27 : vector<256x128xf32>
    %c0_23 = arith.constant 0 : index
    %c2 = arith.constant 2 : index
    %c0_24 = arith.constant 0 : index
    %29 = vector.load %arg7[%c0_23, %c2, %c0_24] : memref<18x18x128xf32, #tpu.memory_space<vmem>>, vector<18x16x128xf32>
    %30 = vector.extract_strided_slice %29 {offsets = [0, 0, 0], sizes = [16, 16, 128], strides = [1, 1, 1]} : vector<18x16x128xf32> to vector<16x16x128xf32>
    %31 = vector.extract_strided_slice %29 {offsets = [1, 0, 0], sizes = [16, 16, 128], strides = [1, 1, 1]} : vector<18x16x128xf32> to vector<16x16x128xf32>
    %32 = vector.extract_strided_slice %29 {offsets = [2, 0, 0], sizes = [16, 16, 128], strides = [1, 1, 1]} : vector<18x16x128xf32> to vector<16x16x128xf32>
    %33 = tpu.concatenate %30, %31, %32 in 2 : vector<16x16x128xf32>, vector<16x16x128xf32>, vector<16x16x128xf32> -> vector<16x16x384xf32>
    %34 = vector.shape_cast %33 : vector<16x16x384xf32> to vector<256x384xf32>
    %35 = arith.truncf %34 : vector<256x384xf32> to vector<256x384xbf16>
    %c2_25 = arith.constant 2 : index
    %c0_26 = arith.constant 0 : index
    %c0_27 = arith.constant 0 : index
    %36 = vector.load %arg2[%c2_25, %c0_26, %c0_27] : memref<3x384x128xbf16, #tpu.memory_space<vmem>>, vector<1x384x128xbf16>
    %37 = vector.shape_cast %36 : vector<1x384x128xbf16> to vector<384x128xbf16>
    %cst_28 = arith.constant dense<0.000000e+00> : vector<256x128xf32>
    %38 = tpu.matmul %35, %37, %cst_28 {dimension_numbers = #tpu.dot_dimension_numbers<[1], [0], [0], [1], [0, 0, 1, 1], [], []>} : vector<256x384xbf16>, vector<384x128xbf16>, vector<256x128xf32> -> vector<256x128xf32>
    %39 = arith.addf %28, %38 : vector<256x128xf32>
    %40 = vector.shape_cast %39 : vector<256x128xf32> to vector<1x16x16x128xf32>
    %41 = arith.truncf %40 : vector<1x16x16x128xf32> to vector<1x16x16x128xbf16>
    %c0_29 = arith.constant 0 : index
    %c0_30 = arith.constant 0 : index
    %c0_31 = arith.constant 0 : index
    %c0_32 = arith.constant 0 : index
    %42 = vector.load %arg5[%c0_29, %c0_30, %c0_31, %c0_32] : memref<1x16x16x128xbf16, #tpu.memory_space<vmem>>, vector<1x16x16x128xbf16>
    tpu.vector_store %arg5[%c0_29, %c0_30, %c0_31, %c0_32], %41 {strides = array<i32>} : memref<1x16x16x128xbf16, #tpu.memory_space<vmem>>, vector<1x16x16x128xbf16>,
    %cst_33 = arith.constant dense<0.000000e+00> : vector<128xf32>
    %43 = vector.multi_reduction <add>, %39, %cst_33 [0] : vector<256x128xf32> to vector<128xf32>
    %44 = vector.shape_cast %43 : vector<128xf32> to vector<1x128xf32>
    %cst_34 = arith.constant 3.906250e-03 : f32
    %45 = vector.broadcast %cst_34 : f32 to vector<1x128xf32>
    %46 = arith.mulf %44, %45 : vector<1x128xf32>
    %47 = vector.broadcast %46 : vector<1x128xf32> to vector<256x128xf32>
    %48 = arith.subf %39, %47 : vector<256x128xf32>
    %49 = arith.mulf %48, %48 : vector<256x128xf32>
    %cst_35 = arith.constant dense<0.000000e+00> : vector<128xf32>
    %50 = vector.multi_reduction <add>, %49, %cst_35 [0] : vector<256x128xf32> to vector<128xf32>
    %51 = vector.shape_cast %50 : vector<128xf32> to vector<1x128xf32>
    %52 = tpu.concatenate %46, %51 in 0 : vector<1x128xf32>, vector<1x128xf32> -> vector<2x128xf32>
    %c0_36 = arith.constant 0 : index
    %c0_37 = arith.constant 0 : index
    %c0_38 = arith.constant 0 : index
    %53 = vector.load %arg6[%c0_36, %c0_37, %c0_38] : memref<1x2x128xf32, #tpu.memory_space<vmem>>, vector<1x2x128xf32>
    %54 = vector.shape_cast %53 : vector<1x2x128xf32> to vector<2x128xf32>
    %55 = vector.shape_cast %52 : vector<2x128xf32> to vector<1x2x128xf32>
    tpu.vector_store %arg6[%c0_36, %c0_37, %c0_38], %55 {strides = array<i32>} : memref<1x2x128xf32, #tpu.memory_space<vmem>>, vector<1x2x128xf32>,
    return
  }
  func.func @transform_0(%arg0: i32) -> (i32, i32, i32, i32) {
    %c0_i32 = arith.constant 0 : i32
    %c0_i32_0 = arith.constant 0 : i32
    %c0_i32_1 = arith.constant 0 : i32
    %c0_i32_2 = arith.constant 0 : i32
    return %arg0, %c0_i32, %c0_i32_0, %c0_i32_1 : i32, i32, i32, i32
  }
  func.func @transform_1(%arg0: i32) -> (i32, i32, i32) {
    %c0_i32 = arith.constant 0 : i32
    %c0_i32_0 = arith.constant 0 : i32
    %c0_i32_1 = arith.constant 0 : i32
    %c0_i32_2 = arith.constant 0 : i32
    return %c0_i32, %c0_i32_0, %c0_i32_1 : i32, i32, i32
  }
  func.func @transform_2(%arg0: i32) -> (i32, i32) {
    %c0_i32 = arith.constant 0 : i32
    %c0_i32_0 = arith.constant 0 : i32
    %c0_i32_1 = arith.constant 0 : i32
    return %c0_i32, %c0_i32_0 : i32, i32
  }
  func.func @transform_3(%arg0: i32) -> (i32, i32) {
    %c0_i32 = arith.constant 0 : i32
    %c0_i32_0 = arith.constant 0 : i32
    %c0_i32_1 = arith.constant 0 : i32
    return %c0_i32, %c0_i32_0 : i32, i32
  }
  func.func @transform_4(%arg0: i32) -> (i32, i32, i32, i32) {
    %c0_i32 = arith.constant 0 : i32
    %c0_i32_0 = arith.constant 0 : i32
    %c0_i32_1 = arith.constant 0 : i32
    %c0_i32_2 = arith.constant 0 : i32
    return %arg0, %c0_i32, %c0_i32_0, %c0_i32_1 : i32, i32, i32, i32
  }
  func.func @transform_5(%arg0: i32) -> (i32, i32, i32) {
    %c0_i32 = arith.constant 0 : i32
    %c0_i32_0 = arith.constant 0 : i32
    %c0_i32_1 = arith.constant 0 : i32
    return %arg0, %c0_i32, %c0_i32_0 : i32, i32, i32
  }
}

module attributes {stable_mosaic.version = 11 : i64} {
  func.func @_bn_add_relu_kernel(%arg0: i32, %arg1: memref<512x128xbf16, #tpu.memory_space<vmem>>, %arg2: memref<1x128xf32, #tpu.memory_space<vmem>>, %arg3: memref<1x128xf32, #tpu.memory_space<vmem>>, %arg4: memref<512x128xf32, #tpu.memory_space<vmem>>, %arg5: memref<512x128xf32, #tpu.memory_space<vmem>>) attributes {dimension_semantics = [#tpu.dimension_semantics<parallel>], iteration_bounds = array<i64: 1>, scalar_prefetch = 0 : i64, scratch_operands = 0 : i64, tpu.core_type = #tpu.core_type<tc>, window_params = [{transform_indices = @transform_0, window_bounds = array<i64: 512, 128>}, {pipeline_mode = #tpu.pipeline_mode<synchronous>, transform_indices = @transform_1, window_bounds = array<i64: 1, 128>}, {pipeline_mode = #tpu.pipeline_mode<synchronous>, transform_indices = @transform_2, window_bounds = array<i64: 1, 128>}, {transform_indices = @transform_3, window_bounds = array<i64: 512, 128>}, {transform_indices = @transform_4, window_bounds = array<i64: 512, 128>}]} {
    %c0 = arith.constant 0 : index
    %c0_0 = arith.constant 0 : index
    %0 = vector.load %arg1[%c0, %c0_0] : memref<512x128xbf16, #tpu.memory_space<vmem>>, vector<512x128xbf16>
    %1 = arith.extf %0 : vector<512x128xbf16> to vector<512x128xf32>
    %c0_1 = arith.constant 0 : index
    %c0_2 = arith.constant 0 : index
    %2 = vector.load %arg2[%c0_1, %c0_2] : memref<1x128xf32, #tpu.memory_space<vmem>>, vector<1x128xf32>
    %3 = vector.broadcast %2 : vector<1x128xf32> to vector<512x128xf32>
    %4 = arith.mulf %1, %3 : vector<512x128xf32>
    %c0_3 = arith.constant 0 : index
    %c0_4 = arith.constant 0 : index
    %5 = vector.load %arg3[%c0_3, %c0_4] : memref<1x128xf32, #tpu.memory_space<vmem>>, vector<1x128xf32>
    %6 = vector.broadcast %5 : vector<1x128xf32> to vector<512x128xf32>
    %7 = arith.addf %4, %6 : vector<512x128xf32>
    %c0_5 = arith.constant 0 : index
    %c0_6 = arith.constant 0 : index
    %8 = vector.load %arg4[%c0_5, %c0_6] : memref<512x128xf32, #tpu.memory_space<vmem>>, vector<512x128xf32>
    %9 = arith.addf %7, %8 : vector<512x128xf32>
    %cst = arith.constant 0.000000e+00 : f32
    %10 = vector.broadcast %cst : f32 to vector<512x128xf32>
    %11 = arith.maximumf %9, %10 : vector<512x128xf32>
    %c0_7 = arith.constant 0 : index
    %c0_8 = arith.constant 0 : index
    %12 = vector.load %arg5[%c0_7, %c0_8] : memref<512x128xf32, #tpu.memory_space<vmem>>, vector<512x128xf32>
    tpu.vector_store %arg5[%c0_7, %c0_8], %11 {strides = array<i32>} : memref<512x128xf32, #tpu.memory_space<vmem>>, vector<512x128xf32>,
    return
  }
  func.func @transform_0(%arg0: i32) -> (i32, i32) {
    %c0_i32 = arith.constant 0 : i32
    %c0_i32_0 = arith.constant 0 : i32
    return %arg0, %c0_i32 : i32, i32
  }
  func.func @transform_1(%arg0: i32) -> (i32, i32) {
    %c0_i32 = arith.constant 0 : i32
    %c0_i32_0 = arith.constant 0 : i32
    %c0_i32_1 = arith.constant 0 : i32
    return %c0_i32, %c0_i32_0 : i32, i32
  }
  func.func @transform_2(%arg0: i32) -> (i32, i32) {
    %c0_i32 = arith.constant 0 : i32
    %c0_i32_0 = arith.constant 0 : i32
    %c0_i32_1 = arith.constant 0 : i32
    return %c0_i32, %c0_i32_0 : i32, i32
  }
  func.func @transform_3(%arg0: i32) -> (i32, i32) {
    %c0_i32 = arith.constant 0 : i32
    %c0_i32_0 = arith.constant 0 : i32
    return %arg0, %c0_i32 : i32, i32
  }
  func.func @transform_4(%arg0: i32) -> (i32, i32) {
    %c0_i32 = arith.constant 0 : i32
    %c0_i32_0 = arith.constant 0 : i32
    return %arg0, %c0_i32 : i32, i32
  }
}

</mosaic_0001>

<bundles_post_ra>
// kernel: basic_block_forward.5
= control target key start
LH: loop header
LB: loop body
LE: loop exit
PB: predicated region body
PF: predicated region fallthrough
CT: control target
= control target key end

     0   :  { %s1351_s0 = inlined_call_operand.vmem [shape: bf16[512,128], index: 0, kind: input, shape index: {}]   ;;  %s1352_s1 = inlined_call_operand.vmem [shape: f32[1,128], index: 1, kind: input, shape index: {}]   ;;  %s1353_s2 = inlined_call_operand.vmem [shape: f32[1,128], index: 2, kind: input, shape index: {}]   ;;  %s1354_s3 = inlined_call_operand.vmem [shape: f32[512,128], index: 3, kind: input, shape index: {}, may-alias: {3,4}]   ;;  %s1355_s4 = inlined_call_operand.vmem [shape: f32[512,128], index: 4, kind: output, shape index: {}, may-alias: {3,4}]  }
   0x1   :  { %v550_v0 = vld [vmem:[%s1351_s0] sm:$0xff]   ;;  %v677_v4 = vld [vmem:[%s1351_s0 + $0x8] sm:$0xff]   ;;  %v678_v8 = vld [vmem:[%s1351_s0 + $0x10] sm:$0xff]  }
   0x2   :  { %v739_v1 = vld [vmem:[%s1352_s1] ss:$0 sm:$0xff]  ;;  %v551_v2 = vunpack.c.l.bf16 %v550_v0  ;;  %v552_v3 = vunpack.c.h.bf16 %v550_v0  ;;  %v555_v6 = vunpack.c.l.bf16 %v677_v4  ;;  %v556_v7 = vunpack.c.h.bf16 %v677_v4  ;;  %v679_v13 = vld [vmem:[%s1351_s0 + $0x18] sm:$0xff]   ;;  %v288_v15 = vld [vmem:[%s1354_s3 + $0x8] sm:$0xff] }
   0x3   :  { %v747_v5 = vld [vmem:[%s1353_s2] ss:$0 sm:$0xff]  ;;  %v559_v11 = vunpack.c.l.bf16 %v678_v8  ;;  %v560_v12 = vunpack.c.h.bf16 %v678_v8  ;;  %v563_v18 = vunpack.c.l.bf16 %v679_v13  ;;  %v564_v19 = vunpack.c.h.bf16 %v679_v13  ;;  %v289_v22 = vld [vmem:[%s1354_s3 + $0x10] sm:$0xff]  ;;  %v290_v23 = vld [vmem:[%s1354_s3 + $0x18] sm:$0xff] }
   0x4   :  { %v152_v9 = vmul.f32 %v551_v2, %v739_v1  ;;  %v153_v10 = vmul.f32 %v552_v3, %v739_v1  ;;  %v287_v14 = vld [vmem:[%s1354_s3] sm:$0xff]  ;;  %v154_v16 = vmul.f32 %v555_v6, %v739_v1  ;;  %v155_v17 = vmul.f32 %v556_v7, %v739_v1  ;;  %v292_v29 = vld [vmem:[%s1354_s3 + $0x28] sm:$0xff]  ;;  %v293_v36 = vld [vmem:[%s1354_s3 + $0x30] sm:$0xff] }
   0x5   :  { %v156_v24 = vmul.f32 %v559_v11, %v739_v1  ;;  %v157_v25 = vmul.f32 %v560_v12, %v739_v1  ;;  %v291_v28 = vld [vmem:[%s1354_s3 + $0x20] sm:$0xff]  ;;  %v158_v30 = vmul.f32 %v563_v18, %v739_v1  ;;  %v159_v31 = vmul.f32 %v564_v19, %v739_v1  ;;  %v294_v37 = vld [vmem:[%s1354_s3 + $0x38] sm:$0xff]  ;;  %v681_v47 = vld [vmem:[%s1351_s0 + $0x28] sm:$0xff]  }
   0x6   :  { %v223_v20 = vadd.f32 %v747_v5, %v152_v9  ;;  %v224_v21 = vadd.f32 %v747_v5, %v153_v10  ;;  %v225_v26 = vadd.f32 %v747_v5, %v154_v16  ;;  %v226_v27 = vadd.f32 %v747_v5, %v155_v17  ;;  %v680_v42 = vld [vmem:[%s1351_s0 + $0x20] sm:$0xff]   ;;  %v682_v52 = vld [vmem:[%s1351_s0 + $0x30] sm:$0xff]   ;;  %v683_v57 = vld [vmem:[%s1351_s0 + $0x38] sm:$0xff]  }
   0x7   :  { %v227_v34 = vadd.f32 %v747_v5, %v156_v24  ;;  %v228_v35 = vadd.f32 %v747_v5, %v157_v25  ;;  %v229_v40 = vadd.f32 %v747_v5, %v158_v30  ;;  %v230_v41 = vadd.f32 %v747_v5, %v159_v31 }
   0x8   :  { %v351_v32 = vadd.f32 %v287_v14, %v223_v20  ;;  %v352_v33 = vadd.f32 %v288_v15, %v224_v21  ;;  %v353_v38 = vadd.f32 %v289_v22, %v225_v26  ;;  %v354_v39 = vadd.f32 %v290_v23, %v226_v27 }
   0x9   :  { %v355_v45 = vadd.f32 %v291_v28, %v227_v34  ;;  %v356_v46 = vadd.f32 %v292_v29, %v228_v35  ;;  %v357_v50 = vadd.f32 %v293_v36, %v229_v40  ;;  %v358_v51 = vadd.f32 %v294_v37, %v230_v41  ;;  %v685_v37 = vld [vmem:[%s1351_s0 + $0x48] sm:$0xff]  }
   0xa   :  { %v415_v43 = vmax.f32 %v351_v32, 0.0  ;;  %v416_v44 = vmax.f32 %v352_v33, 0.0  ;;  %v417_v48 = vmax.f32 %v353_v38, 0.0  ;;  %v418_v49 = vmax.f32 %v354_v39, 0.0  ;;  %v684_v32 = vld [vmem:[%s1351_s0 + $0x40] sm:$0xff]  }
   0xb   :  { %v419_v53 = vmax.f32 %v355_v45, 0.0  ;;  %v420_v54 = vmax.f32 %v356_v46, 0.0  ;;  %v567_v55 = vunpack.c.l.bf16 %v680_v42  ;;  %v568_v56 = vunpack.c.h.bf16 %v680_v42  ;;  %v686_v42 = vld [vmem:[%s1351_s0 + $0x50] sm:$0xff]  }
   0xc   :  { %479 = vst [vmem:[%s1355_s4] sm:$0xff] %v415_v43  ;;  %480 = vst [vmem:[%s1355_s4 + $0x8] sm:$0xff] %v416_v44  ;;  %v421_v58 = vmax.f32 %v357_v50, 0.0  ;;  %v422_v59 = vmax.f32 %v358_v51, 0.0  ;;  %v571_v60 = vunpack.c.l.bf16 %v681_v47  ;;  %v572_v61 = vunpack.c.h.bf16 %v681_v47  ;;  %v687_v47 = vld [vmem:[%s1351_s0 + $0x58] sm:$0xff]  }
   0xd   :  { %481 = vst [vmem:[%s1355_s4 + $0x10] sm:$0xff] %v417_v48  ;;  %482 = vst [vmem:[%s1355_s4 + $0x18] sm:$0xff] %v418_v49  ;;  %v160_v62 = vmul.f32 %v567_v55, %v739_v1  ;;  %v161_v63 = vmul.f32 %v568_v56, %v739_v1  ;;  %v575_v0 = vunpack.c.l.bf16 %v682_v52  ;;  %v576_v2 = vunpack.c.h.bf16 %v682_v52 }
   0xe   :  { %483 = vst [vmem:[%s1355_s4 + $0x20] sm:$0xff] %v419_v53  ;;  %484 = vst [vmem:[%s1355_s4 + $0x28] sm:$0xff] %v420_v54  ;;  %v162_v6 = vmul.f32 %v571_v60, %v739_v1  ;;  %v163_v7 = vmul.f32 %v572_v61, %v739_v1  ;;  %v579_v8 = vunpack.c.l.bf16 %v683_v57  ;;  %v580_v9 = vunpack.c.h.bf16 %v683_v57 }
   0xf   :  { %485 = vst [vmem:[%s1355_s4 + $0x30] sm:$0xff] %v421_v58  ;;  %486 = vst [vmem:[%s1355_s4 + $0x38] sm:$0xff] %v422_v59  ;;  %v231_v10 = vadd.f32 %v747_v5, %v160_v62  ;;  %v232_v11 = vadd.f32 %v747_v5, %v161_v63  ;;  %v164_v14 = vmul.f32 %v575_v0, %v739_v1  ;;  %v583_v45 = vunpack.c.l.bf16 %v684_v32 }
  0x10   :  { %v165_v15 = vmul.f32 %v576_v2, %v739_v1  ;;  %v233_v16 = vadd.f32 %v747_v5, %v162_v6  ;;  %v234_v17 = vadd.f32 %v747_v5, %v163_v7  ;;  %v166_v20 = vmul.f32 %v579_v8, %v739_v1 }
  0x11   :  { %v167_v21 = vmul.f32 %v580_v9, %v739_v1  ;;  %v235_v24 = vadd.f32 %v747_v5, %v164_v14  ;;  %v584_v46 = vunpack.c.h.bf16 %v684_v32  ;;  %v587_v50 = vunpack.c.l.bf16 %v685_v37  ;;  %v690_v32 = vld [vmem:[%s1351_s0 + $0x70] sm:$0xff]  }
  0x12   :  { %v236_v25 = vadd.f32 %v747_v5, %v165_v15  ;;  %v237_v30 = vadd.f32 %v747_v5, %v166_v20  ;;  %v588_v51 = vunpack.c.h.bf16 %v685_v37  ;;  %v168_v52 = vmul.f32 %v583_v45, %v739_v1  ;;  %v691_v37 = vld [vmem:[%s1351_s0 + $0x78] sm:$0xff]  }
  0x13   :  { %v238_v31 = vadd.f32 %v747_v5, %v167_v21  ;;  %v169_v53 = vmul.f32 %v584_v46, %v739_v1  ;;  %v591_v54 = vunpack.c.l.bf16 %v686_v42  ;;  %v592_v55 = vunpack.c.h.bf16 %v686_v42 }
  0x14   :  { %v170_v58 = vmul.f32 %v587_v50, %v739_v1  ;;  %v171_v59 = vmul.f32 %v588_v51, %v739_v1  ;;  %v595_v60 = vunpack.c.l.bf16 %v687_v47  ;;  %v596_v61 = vunpack.c.h.bf16 %v687_v47 }
  0x15   :  { %v239_v62 = vadd.f32 %v747_v5, %v168_v52  ;;  %v240_v63 = vadd.f32 %v747_v5, %v169_v53  ;;  %v608_v45 = vunpack.c.h.bf16 %v690_v32  ;;  %v611_v50 = vunpack.c.l.bf16 %v691_v37 }
  0x16   :  { %v295_v3 = vld [vmem:[%s1354_s3 + $0x40] sm:$0xff]  ;;  %v296_v4 = vld [vmem:[%s1354_s3 + $0x48] sm:$0xff]  ;;  %v297_v12 = vld [vmem:[%s1354_s3 + $0x50] sm:$0xff]  ;;  %v241_v6 = vadd.f32 %v747_v5, %v170_v58  ;;  %v242_v7 = vadd.f32 %v747_v5, %v171_v59  ;;  %v612_v51 = vunpack.c.h.bf16 %v691_v37 }
  0x17   :  { %v298_v13 = vld [vmem:[%s1354_s3 + $0x58] sm:$0xff]  ;;  %v299_v18 = vld [vmem:[%s1354_s3 + $0x60] sm:$0xff]  ;;  %v300_v19 = vld [vmem:[%s1354_s3 + $0x68] sm:$0xff]  ;;  %v359_v22 = vadd.f32 %v295_v3, %v231_v10  ;;  %v360_v23 = vadd.f32 %v296_v4, %v232_v11  ;;  %v361_v28 = vadd.f32 %v297_v12, %v233_v16  ;;  %v172_v3 = vmul.f32 %v591_v54, %v739_v1 }
  0x18   :  { %v301_v26 = vld [vmem:[%s1354_s3 + $0x70] sm:$0xff]  ;;  %v302_v27 = vld [vmem:[%s1354_s3 + $0x78] sm:$0xff]  ;;  %v362_v29 = vadd.f32 %v298_v13, %v234_v17  ;;  %v363_v35 = vadd.f32 %v299_v18, %v235_v24  ;;  %v364_v36 = vadd.f32 %v300_v19, %v236_v25  ;;  %v173_v4 = vmul.f32 %v592_v55, %v739_v1 }
  0x19   :  { %v423_v33 = vmax.f32 %v359_v22, 0.0  ;;  %v424_v34 = vmax.f32 %v360_v23, 0.0  ;;  %v425_v38 = vmax.f32 %v361_v28, 0.0  ;;  %v365_v40 = vadd.f32 %v301_v26, %v237_v30  ;;  %v688_v22 = vld [vmem:[%s1351_s0 + $0x60] sm:$0xff]  }
  0x1a   :  { %v426_v39 = vmax.f32 %v362_v29, 0.0  ;;  %v366_v41 = vadd.f32 %v302_v27, %v238_v31  ;;  %v427_v43 = vmax.f32 %v363_v35, 0.0  ;;  %v428_v44 = vmax.f32 %v364_v36, 0.0  ;;  %v689_v27 = vld [vmem:[%s1351_s0 + $0x68] sm:$0xff]  }
  0x1b   :  { %487 = vst [vmem:[%s1355_s4 + $0x40] sm:$0xff] %v423_v33  ;;  %488 = vst [vmem:[%s1355_s4 + $0x48] sm:$0xff] %v424_v34  ;;  %v429_v48 = vmax.f32 %v365_v40, 0.0  ;;  %v174_v10 = vmul.f32 %v595_v60, %v739_v1  ;;  %v175_v11 = vmul.f32 %v596_v61, %v739_v1  ;;  %v243_v14 = vadd.f32 %v747_v5, %v172_v3 }
  0x1c   :  { %489 = vst [vmem:[%s1355_s4 + $0x50] sm:$0xff] %v425_v38  ;;  %490 = vst [vmem:[%s1355_s4 + $0x58] sm:$0xff] %v426_v39  ;;  %v430_v49 = vmax.f32 %v366_v41, 0.0  ;;  %v244_v15 = vadd.f32 %v747_v5, %v173_v4  ;;  %v599_v35 = vunpack.c.l.bf16 %v688_v22  ;;  %v600_v36 = vunpack.c.h.bf16 %v688_v22  ;;  %v694_v22 = vld [vmem:[%s1351_s0 + $0x90] sm:$0xff]  }
  0x1d   :  { %491 = vst [vmem:[%s1355_s4 + $0x60] sm:$0xff] %v427_v43  ;;  %492 = vst [vmem:[%s1355_s4 + $0x68] sm:$0xff] %v428_v44  ;;  %v245_v20 = vadd.f32 %v747_v5, %v174_v10  ;;  %v246_v21 = vadd.f32 %v747_v5, %v175_v11  ;;  %v603_v40 = vunpack.c.l.bf16 %v689_v27  ;;  %v604_v41 = vunpack.c.h.bf16 %v689_v27  ;;  %v695_v27 = vld [vmem:[%s1351_s0 + $0x98] sm:$0xff]  }
  0x1e   :  { %493 = vst [vmem:[%s1355_s4 + $0x70] sm:$0xff] %v429_v48  ;;  %494 = vst [vmem:[%s1355_s4 + $0x78] sm:$0xff] %v430_v49  ;;  %v176_v42 = vmul.f32 %v599_v35, %v739_v1  ;;  %v177_v43 = vmul.f32 %v600_v36, %v739_v1  ;;  %v607_v44 = vunpack.c.l.bf16 %v690_v32  ;;  %v624_v35 = vunpack.c.h.bf16 %v694_v22 }
  0x1f   :  { %v178_v48 = vmul.f32 %v603_v40, %v739_v1  ;;  %v179_v49 = vmul.f32 %v604_v41, %v739_v1  ;;  %v627_v40 = vunpack.c.l.bf16 %v695_v27  ;;  %v628_v41 = vunpack.c.h.bf16 %v695_v27 }
  0x20   :  { %v247_v52 = vadd.f32 %v747_v5, %v176_v42  ;;  %v248_v53 = vadd.f32 %v747_v5, %v177_v43 }
  0x21   :  { %v249_v58 = vadd.f32 %v747_v5, %v178_v48  ;;  %v250_v59 = vadd.f32 %v747_v5, %v179_v49 }
  0x25   :  { %v303_v56 = vld [vmem:[%s1354_s3 + $0x80] sm:$0xff]  ;;  %v304_v57 = vld [vmem:[%s1354_s3 + $0x88] sm:$0xff]  ;;  %v305_v0 = vld [vmem:[%s1354_s3 + $0x90] sm:$0xff] }
  0x26   :  { %v306_v2 = vld [vmem:[%s1354_s3 + $0x98] sm:$0xff]  ;;  %v307_v8 = vld [vmem:[%s1354_s3 + $0xa0] sm:$0xff]  ;;  %v308_v9 = vld [vmem:[%s1354_s3 + $0xa8] sm:$0xff]  ;;  %v367_v12 = vadd.f32 %v303_v56, %v239_v62  ;;  %v368_v13 = vadd.f32 %v304_v57, %v240_v63  ;;  %v369_v18 = vadd.f32 %v305_v0, %v241_v6  ;;  %v180_v56 = vmul.f32 %v607_v44, %v739_v1 }
  0x27   :  { %v309_v16 = vld [vmem:[%s1354_s3 + $0xb0] sm:$0xff]  ;;  %v310_v17 = vld [vmem:[%s1354_s3 + $0xb8] sm:$0xff]  ;;  %v370_v19 = vadd.f32 %v306_v2, %v242_v7  ;;  %v371_v25 = vadd.f32 %v307_v8, %v243_v14  ;;  %v372_v26 = vadd.f32 %v308_v9, %v244_v15  ;;  %v181_v57 = vmul.f32 %v608_v45, %v739_v1 }
  0x28   :  { %v431_v23 = vmax.f32 %v367_v12, 0.0  ;;  %v432_v24 = vmax.f32 %v368_v13, 0.0  ;;  %v433_v28 = vmax.f32 %v369_v18, 0.0  ;;  %v373_v30 = vadd.f32 %v309_v16, %v245_v20  ;;  %v692_v12 = vld [vmem:[%s1351_s0 + $0x80] sm:$0xff]  }
  0x29   :  { %v434_v29 = vmax.f32 %v370_v19, 0.0  ;;  %v374_v31 = vadd.f32 %v310_v17, %v246_v21  ;;  %v435_v33 = vmax.f32 %v371_v25, 0.0  ;;  %v436_v34 = vmax.f32 %v372_v26, 0.0  ;;  %v693_v17 = vld [vmem:[%s1351_s0 + $0x88] sm:$0xff]  }
  0x2a   :  { %495 = vst [vmem:[%s1355_s4 + $0x80] sm:$0xff] %v431_v23  ;;  %496 = vst [vmem:[%s1355_s4 + $0x88] sm:$0xff] %v432_v24  ;;  %v437_v38 = vmax.f32 %v373_v30, 0.0  ;;  %v182_v62 = vmul.f32 %v611_v50, %v739_v1  ;;  %v183_v63 = vmul.f32 %v612_v51, %v739_v1  ;;  %v251_v3 = vadd.f32 %v747_v5, %v180_v56 }
  0x2b   :  { %497 = vst [vmem:[%s1355_s4 + $0x90] sm:$0xff] %v433_v28  ;;  %498 = vst [vmem:[%s1355_s4 + $0x98] sm:$0xff] %v434_v29  ;;  %v438_v39 = vmax.f32 %v374_v31, 0.0  ;;  %v252_v4 = vadd.f32 %v747_v5, %v181_v57  ;;  %v615_v25 = vunpack.c.l.bf16 %v692_v12  ;;  %v616_v26 = vunpack.c.h.bf16 %v692_v12  ;;  %v698_v12 = vld [vmem:[%s1351_s0 + $0xb0] sm:$0xff]  }
  0x2c   :  { %499 = vst [vmem:[%s1355_s4 + $0xa0] sm:$0xff] %v435_v33  ;;  %500 = vst [vmem:[%s1355_s4 + $0xa8] sm:$0xff] %v436_v34  ;;  %v253_v10 = vadd.f32 %v747_v5, %v182_v62  ;;  %v254_v11 = vadd.f32 %v747_v5, %v183_v63  ;;  %v619_v30 = vunpack.c.l.bf16 %v693_v17  ;;  %v620_v31 = vunpack.c.h.bf16 %v693_v17  ;;  %v699_v17 = vld [vmem:[%s1351_s0 + $0xb8] sm:$0xff]  }
  0x2d   :  { %501 = vst [vmem:[%s1355_s4 + $0xb0] sm:$0xff] %v437_v38  ;;  %502 = vst [vmem:[%s1355_s4 + $0xb8] sm:$0xff] %v438_v39  ;;  %v184_v32 = vmul.f32 %v615_v25, %v739_v1  ;;  %v185_v33 = vmul.f32 %v616_v26, %v739_v1  ;;  %v623_v34 = vunpack.c.l.bf16 %v694_v22  ;;  %v640_v25 = vunpack.c.h.bf16 %v698_v12 }
  0x2e   :  { %v186_v38 = vmul.f32 %v619_v30, %v739_v1  ;;  %v187_v39 = vmul.f32 %v620_v31, %v739_v1  ;;  %v643_v30 = vunpack.c.l.bf16 %v699_v17  ;;  %v644_v31 = vunpack.c.h.bf16 %v699_v17 }
  0x2f   :  { %v255_v42 = vadd.f32 %v747_v5, %v184_v32  ;;  %v256_v43 = vadd.f32 %v747_v5, %v185_v33 }
  0x30   :  { %v257_v48 = vadd.f32 %v747_v5, %v186_v38  ;;  %v258_v49 = vadd.f32 %v747_v5, %v187_v39 }
  0x34   :  { %v311_v46 = vld [vmem:[%s1354_s3 + $0xc0] sm:$0xff]  ;;  %v312_v47 = vld [vmem:[%s1354_s3 + $0xc8] sm:$0xff]  ;;  %v313_v54 = vld [vmem:[%s1354_s3 + $0xd0] sm:$0xff] }
  0x35   :  { %v314_v55 = vld [vmem:[%s1354_s3 + $0xd8] sm:$0xff]  ;;  %v315_v60 = vld [vmem:[%s1354_s3 + $0xe0] sm:$0xff]  ;;  %v316_v61 = vld [vmem:[%s1354_s3 + $0xe8] sm:$0xff]  ;;  %v375_v0 = vadd.f32 %v311_v46, %v247_v52  ;;  %v376_v2 = vadd.f32 %v312_v47, %v248_v53  ;;  %v377_v8 = vadd.f32 %v313_v54, %v249_v58  ;;  %v188_v46 = vmul.f32 %v623_v34, %v739_v1 }
  0x36   :  { %v317_v6 = vld [vmem:[%s1354_s3 + $0xf0] sm:$0xff]  ;;  %v318_v7 = vld [vmem:[%s1354_s3 + $0xf8] sm:$0xff]  ;;  %v378_v9 = vadd.f32 %v314_v55, %v250_v59  ;;  %v379_v15 = vadd.f32 %v315_v60, %v251_v3  ;;  %v380_v16 = vadd.f32 %v316_v61, %v252_v4  ;;  %v189_v47 = vmul.f32 %v624_v35, %v739_v1 }
  0x37   :  { %v439_v13 = vmax.f32 %v375_v0, 0.0  ;;  %v440_v14 = vmax.f32 %v376_v2, 0.0  ;;  %v441_v18 = vmax.f32 %v377_v8, 0.0  ;;  %v381_v20 = vadd.f32 %v317_v6, %v253_v10  ;;  %v696_v0 = vld [vmem:[%s1351_s0 + $0xa0] sm:$0xff]  }
  0x38   :  { %v442_v19 = vmax.f32 %v378_v9, 0.0  ;;  %v382_v21 = vadd.f32 %v318_v7, %v254_v11  ;;  %v443_v23 = vmax.f32 %v379_v15, 0.0  ;;  %v444_v24 = vmax.f32 %v380_v16, 0.0  ;;  %v697_v7 = vld [vmem:[%s1351_s0 + $0xa8] sm:$0xff]  }
  0x39   :  { %503 = vst [vmem:[%s1355_s4 + $0xc0] sm:$0xff] %v439_v13  ;;  %504 = vst [vmem:[%s1355_s4 + $0xc8] sm:$0xff] %v440_v14  ;;  %v445_v28 = vmax.f32 %v381_v20, 0.0  ;;  %v190_v52 = vmul.f32 %v627_v40, %v739_v1  ;;  %v191_v53 = vmul.f32 %v628_v41, %v739_v1  ;;  %v259_v56 = vadd.f32 %v747_v5, %v188_v46 }
  0x3a   :  { %505 = vst [vmem:[%s1355_s4 + $0xd0] sm:$0xff] %v441_v18  ;;  %506 = vst [vmem:[%s1355_s4 + $0xd8] sm:$0xff] %v442_v19  ;;  %v446_v29 = vmax.f32 %v382_v21, 0.0  ;;  %v260_v57 = vadd.f32 %v747_v5, %v189_v47  ;;  %v631_v15 = vunpack.c.l.bf16 %v696_v0  ;;  %v632_v16 = vunpack.c.h.bf16 %v696_v0  ;;  %v702_v0 = vld [vmem:[%s1351_s0 + $0xd0] sm:$0xff]  }
  0x3b   :  { %507 = vst [vmem:[%s1355_s4 + $0xe0] sm:$0xff] %v443_v23  ;;  %508 = vst [vmem:[%s1355_s4 + $0xe8] sm:$0xff] %v444_v24  ;;  %v261_v62 = vadd.f32 %v747_v5, %v190_v52  ;;  %v262_v63 = vadd.f32 %v747_v5, %v191_v53  ;;  %v635_v20 = vunpack.c.l.bf16 %v697_v7  ;;  %v636_v21 = vunpack.c.h.bf16 %v697_v7  ;;  %v703_v7 = vld [vmem:[%s1351_s0 + $0xd8] sm:$0xff]  }
  0x3c   :  { %509 = vst [vmem:[%s1355_s4 + $0xf0] sm:$0xff] %v445_v28  ;;  %510 = vst [vmem:[%s1355_s4 + $0xf8] sm:$0xff] %v446_v29  ;;  %v192_v22 = vmul.f32 %v631_v15, %v739_v1  ;;  %v193_v23 = vmul.f32 %v632_v16, %v739_v1  ;;  %v639_v24 = vunpack.c.l.bf16 %v698_v12  ;;  %v656_v15 = vunpack.c.h.bf16 %v702_v0 }
  0x3d   :  { %v194_v28 = vmul.f32 %v635_v20, %v739_v1  ;;  %v195_v29 = vmul.f32 %v636_v21, %v739_v1  ;;  %v659_v20 = vunpack.c.l.bf16 %v703_v7  ;;  %v660_v21 = vunpack.c.h.bf16 %v703_v7 }
  0x3e   :  { %v263_v32 = vadd.f32 %v747_v5, %v192_v22  ;;  %v264_v33 = vadd.f32 %v747_v5, %v193_v23 }
  0x3f   :  { %v265_v38 = vadd.f32 %v747_v5, %v194_v28  ;;  %v266_v39 = vadd.f32 %v747_v5, %v195_v29 }
  0x43   :  { %v319_v36 = vld [vmem:[%s1354_s3 + $0x100] sm:$0xff]  ;;  %v320_v37 = vld [vmem:[%s1354_s3 + $0x108] sm:$0xff]  ;;  %v321_v44 = vld [vmem:[%s1354_s3 + $0x110] sm:$0xff] }
  0x44   :  { %v322_v45 = vld [vmem:[%s1354_s3 + $0x118] sm:$0xff]  ;;  %v323_v50 = vld [vmem:[%s1354_s3 + $0x120] sm:$0xff]  ;;  %v324_v51 = vld [vmem:[%s1354_s3 + $0x128] sm:$0xff]  ;;  %v383_v54 = vadd.f32 %v319_v36, %v255_v42  ;;  %v384_v55 = vadd.f32 %v320_v37, %v256_v43  ;;  %v385_v60 = vadd.f32 %v321_v44, %v257_v48  ;;  %v196_v36 = vmul.f32 %v639_v24, %v739_v1 }
  0x45   :  { %v325_v58 = vld [vmem:[%s1354_s3 + $0x130] sm:$0xff]  ;;  %v326_v59 = vld [vmem:[%s1354_s3 + $0x138] sm:$0xff]  ;;  %v386_v61 = vadd.f32 %v322_v45, %v258_v49  ;;  %v387_v4 = vadd.f32 %v323_v50, %v259_v56  ;;  %v388_v6 = vadd.f32 %v324_v51, %v260_v57  ;;  %v197_v37 = vmul.f32 %v640_v25, %v739_v1 }
  0x46   :  { %v447_v2 = vmax.f32 %v383_v54, 0.0  ;;  %v448_v3 = vmax.f32 %v384_v55, 0.0  ;;  %v449_v8 = vmax.f32 %v385_v60, 0.0  ;;  %v389_v10 = vadd.f32 %v325_v58, %v261_v62  ;;  %v700_v54 = vld [vmem:[%s1351_s0 + $0xc0] sm:$0xff]  }
  0x47   :  { %v450_v9 = vmax.f32 %v386_v61, 0.0  ;;  %v390_v11 = vadd.f32 %v326_v59, %v262_v63  ;;  %v451_v13 = vmax.f32 %v387_v4, 0.0  ;;  %v452_v14 = vmax.f32 %v388_v6, 0.0  ;;  %v701_v59 = vld [vmem:[%s1351_s0 + $0xc8] sm:$0xff]  }
  0x48   :  { %511 = vst [vmem:[%s1355_s4 + $0x100] sm:$0xff] %v447_v2  ;;  %512 = vst [vmem:[%s1355_s4 + $0x108] sm:$0xff] %v448_v3  ;;  %v453_v18 = vmax.f32 %v389_v10, 0.0  ;;  %v198_v42 = vmul.f32 %v643_v30, %v739_v1  ;;  %v199_v43 = vmul.f32 %v644_v31, %v739_v1  ;;  %v267_v46 = vadd.f32 %v747_v5, %v196_v36 }
  0x49   :  { %513 = vst [vmem:[%s1355_s4 + $0x110] sm:$0xff] %v449_v8  ;;  %514 = vst [vmem:[%s1355_s4 + $0x118] sm:$0xff] %v450_v9  ;;  %v454_v19 = vmax.f32 %v390_v11, 0.0  ;;  %v268_v47 = vadd.f32 %v747_v5, %v197_v37  ;;  %v647_v4 = vunpack.c.l.bf16 %v700_v54  ;;  %v648_v6 = vunpack.c.h.bf16 %v700_v54  ;;  %v706_v54 = vld [vmem:[%s1351_s0 + $0xf0] sm:$0xff]  }
  0x4a   :  { %515 = vst [vmem:[%s1355_s4 + $0x120] sm:$0xff] %v451_v13  ;;  %516 = vst [vmem:[%s1355_s4 + $0x128] sm:$0xff] %v452_v14  ;;  %v269_v52 = vadd.f32 %v747_v5, %v198_v42  ;;  %v270_v53 = vadd.f32 %v747_v5, %v199_v43  ;;  %v651_v10 = vunpack.c.l.bf16 %v701_v59  ;;  %v652_v11 = vunpack.c.h.bf16 %v701_v59  ;;  %v707_v59 = vld [vmem:[%s1351_s0 + $0xf8] sm:$0xff]  }
  0x4b   :  { %517 = vst [vmem:[%s1355_s4 + $0x130] sm:$0xff] %v453_v18  ;;  %518 = vst [vmem:[%s1355_s4 + $0x138] sm:$0xff] %v454_v19  ;;  %v200_v12 = vmul.f32 %v647_v4, %v739_v1  ;;  %v201_v13 = vmul.f32 %v648_v6, %v739_v1  ;;  %v655_v14 = vunpack.c.l.bf16 %v702_v0  ;;  %v672_v4 = vunpack.c.h.bf16 %v706_v54 }
  0x4c   :  { %v202_v18 = vmul.f32 %v651_v10, %v739_v1  ;;  %v203_v19 = vmul.f32 %v652_v11, %v739_v1  ;;  %v675_v10 = vunpack.c.l.bf16 %v707_v59  ;;  %v676_v11 = vunpack.c.h.bf16 %v707_v59 }
  0x4d   :  { %v271_v22 = vadd.f32 %v747_v5, %v200_v12  ;;  %v272_v23 = vadd.f32 %v747_v5, %v201_v13 }
  0x4e   :  { %v273_v28 = vadd.f32 %v747_v5, %v202_v18  ;;  %v274_v29 = vadd.f32 %v747_v5, %v203_v19 }
  0x52   :  { %v327_v26 = vld [vmem:[%s1354_s3 + $0x140] sm:$0xff]  ;;  %v328_v27 = vld [vmem:[%s1354_s3 + $0x148] sm:$0xff]  ;;  %v329_v34 = vld [vmem:[%s1354_s3 + $0x150] sm:$0xff] }
  0x53   :  { %v330_v35 = vld [vmem:[%s1354_s3 + $0x158] sm:$0xff]  ;;  %v331_v40 = vld [vmem:[%s1354_s3 + $0x160] sm:$0xff]  ;;  %v332_v41 = vld [vmem:[%s1354_s3 + $0x168] sm:$0xff]  ;;  %v391_v44 = vadd.f32 %v327_v26, %v263_v32  ;;  %v392_v45 = vadd.f32 %v328_v27, %v264_v33  ;;  %v393_v50 = vadd.f32 %v329_v34, %v265_v38  ;;  %v204_v26 = vmul.f32 %v655_v14, %v739_v1 }
  0x54   :  { %v333_v48 = vld [vmem:[%s1354_s3 + $0x170] sm:$0xff]  ;;  %v334_v49 = vld [vmem:[%s1354_s3 + $0x178] sm:$0xff]  ;;  %v394_v51 = vadd.f32 %v330_v35, %v266_v39  ;;  %v395_v57 = vadd.f32 %v331_v40, %v267_v46  ;;  %v396_v58 = vadd.f32 %v332_v41, %v268_v47  ;;  %v205_v27 = vmul.f32 %v656_v15, %v739_v1 }
  0x55   :  { %v455_v55 = vmax.f32 %v391_v44, 0.0  ;;  %v456_v56 = vmax.f32 %v392_v45, 0.0  ;;  %v457_v60 = vmax.f32 %v393_v50, 0.0  ;;  %v397_v62 = vadd.f32 %v333_v48, %v269_v52  ;;  %v704_v44 = vld [vmem:[%s1351_s0 + $0xe0] sm:$0xff]  }
  0x56   :  { %v458_v61 = vmax.f32 %v394_v51, 0.0  ;;  %v398_v63 = vadd.f32 %v334_v49, %v270_v53  ;;  %v459_v2 = vmax.f32 %v395_v57, 0.0  ;;  %v460_v3 = vmax.f32 %v396_v58, 0.0  ;;  %v705_v49 = vld [vmem:[%s1351_s0 + $0xe8] sm:$0xff]  }
  0x57   :  { %519 = vst [vmem:[%s1355_s4 + $0x140] sm:$0xff] %v455_v55  ;;  %520 = vst [vmem:[%s1355_s4 + $0x148] sm:$0xff] %v456_v56  ;;  %v461_v8 = vmax.f32 %v397_v62, 0.0  ;;  %v206_v32 = vmul.f32 %v659_v20, %v739_v1  ;;  %v207_v33 = vmul.f32 %v660_v21, %v739_v1  ;;  %v275_v36 = vadd.f32 %v747_v5, %v204_v26 }
  0x58   :  { %521 = vst [vmem:[%s1355_s4 + $0x150] sm:$0xff] %v457_v60  ;;  %522 = vst [vmem:[%s1355_s4 + $0x158] sm:$0xff] %v458_v61  ;;  %v462_v9 = vmax.f32 %v398_v63, 0.0  ;;  %v276_v37 = vadd.f32 %v747_v5, %v205_v27  ;;  %v663_v57 = vunpack.c.l.bf16 %v704_v44  ;;  %v664_v58 = vunpack.c.h.bf16 %v704_v44 }
  0x59   :  { %523 = vst [vmem:[%s1355_s4 + $0x160] sm:$0xff] %v459_v2  ;;  %524 = vst [vmem:[%s1355_s4 + $0x168] sm:$0xff] %v460_v3  ;;  %v277_v42 = vadd.f32 %v747_v5, %v206_v32  ;;  %v278_v43 = vadd.f32 %v747_v5, %v207_v33  ;;  %v667_v62 = vunpack.c.l.bf16 %v705_v49  ;;  %v668_v63 = vunpack.c.h.bf16 %v705_v49 }
  0x5a   :  { %525 = vst [vmem:[%s1355_s4 + $0x170] sm:$0xff] %v461_v8  ;;  %526 = vst [vmem:[%s1355_s4 + $0x178] sm:$0xff] %v462_v9  ;;  %v208_v0 = vmul.f32 %v663_v57, %v739_v1  ;;  %v209_v2 = vmul.f32 %v664_v58, %v739_v1  ;;  %v671_v3 = vunpack.c.l.bf16 %v706_v54 }
  0x5b   :  { %v210_v8 = vmul.f32 %v667_v62, %v739_v1  ;;  %v211_v9 = vmul.f32 %v668_v63, %v739_v1 }
  0x5c   :  { %v279_v12 = vadd.f32 %v747_v5, %v208_v0  ;;  %v280_v13 = vadd.f32 %v747_v5, %v209_v2 }
  0x5d   :  { %v281_v18 = vadd.f32 %v747_v5, %v210_v8  ;;  %v282_v19 = vadd.f32 %v747_v5, %v211_v9 }
  0x61   :  { %v335_v16 = vld [vmem:[%s1354_s3 + $0x180] sm:$0xff]  ;;  %v336_v17 = vld [vmem:[%s1354_s3 + $0x188] sm:$0xff]  ;;  %v337_v24 = vld [vmem:[%s1354_s3 + $0x190] sm:$0xff] }
  0x62   :  { %v338_v25 = vld [vmem:[%s1354_s3 + $0x198] sm:$0xff]  ;;  %v339_v30 = vld [vmem:[%s1354_s3 + $0x1a0] sm:$0xff]  ;;  %v340_v31 = vld [vmem:[%s1354_s3 + $0x1a8] sm:$0xff]  ;;  %v399_v34 = vadd.f32 %v335_v16, %v271_v22  ;;  %v400_v35 = vadd.f32 %v336_v17, %v272_v23  ;;  %v401_v40 = vadd.f32 %v337_v24, %v273_v28  ;;  %v212_v16 = vmul.f32 %v671_v3, %v739_v1 }
  0x63   :  { %v341_v38 = vld [vmem:[%s1354_s3 + $0x1b0] sm:$0xff]  ;;  %v342_v39 = vld [vmem:[%s1354_s3 + $0x1b8] sm:$0xff]  ;;  %v402_v41 = vadd.f32 %v338_v25, %v274_v29  ;;  %v403_v47 = vadd.f32 %v339_v30, %v275_v36  ;;  %v404_v48 = vadd.f32 %v340_v31, %v276_v37  ;;  %v213_v17 = vmul.f32 %v672_v4, %v739_v1 }
  0x64   :  { %v463_v45 = vmax.f32 %v399_v34, 0.0  ;;  %v464_v46 = vmax.f32 %v400_v35, 0.0  ;;  %v465_v50 = vmax.f32 %v401_v40, 0.0  ;;  %v405_v52 = vadd.f32 %v341_v38, %v277_v42 }
  0x65   :  { %v466_v51 = vmax.f32 %v402_v41, 0.0  ;;  %v406_v53 = vadd.f32 %v342_v39, %v278_v43  ;;  %v467_v55 = vmax.f32 %v403_v47, 0.0  ;;  %v468_v56 = vmax.f32 %v404_v48, 0.0 }
  0x66   :  { %527 = vst [vmem:[%s1355_s4 + $0x180] sm:$0xff] %v463_v45  ;;  %528 = vst [vmem:[%s1355_s4 + $0x188] sm:$0xff] %v464_v46  ;;  %v469_v60 = vmax.f32 %v405_v52, 0.0  ;;  %v214_v22 = vmul.f32 %v675_v10, %v739_v1  ;;  %v215_v23 = vmul.f32 %v676_v11, %v739_v1  ;;  %v283_v26 = vadd.f32 %v747_v5, %v212_v16 }
  0x67   :  { %529 = vst [vmem:[%s1355_s4 + $0x190] sm:$0xff] %v465_v50  ;;  %530 = vst [vmem:[%s1355_s4 + $0x198] sm:$0xff] %v466_v51  ;;  %v470_v61 = vmax.f32 %v406_v53, 0.0  ;;  %v284_v27 = vadd.f32 %v747_v5, %v213_v17 }
  0x68   :  { %531 = vst [vmem:[%s1355_s4 + $0x1a0] sm:$0xff] %v467_v55  ;;  %532 = vst [vmem:[%s1355_s4 + $0x1a8] sm:$0xff] %v468_v56  ;;  %v285_v32 = vadd.f32 %v747_v5, %v214_v22  ;;  %v286_v1 = vadd.f32 %v747_v5, %v215_v23 }
  0x69   :  { %533 = vst [vmem:[%s1355_s4 + $0x1b0] sm:$0xff] %v469_v60  ;;  %534 = vst [vmem:[%s1355_s4 + $0x1b8] sm:$0xff] %v470_v61 }
  0x70   :  { %v343_v6 = vld [vmem:[%s1354_s3 + $0x1c0] sm:$0xff]  ;;  %v344_v7 = vld [vmem:[%s1354_s3 + $0x1c8] sm:$0xff]  ;;  %v345_v14 = vld [vmem:[%s1354_s3 + $0x1d0] sm:$0xff] }
  0x71   :  { %v346_v15 = vld [vmem:[%s1354_s3 + $0x1d8] sm:$0xff]  ;;  %v347_v20 = vld [vmem:[%s1354_s3 + $0x1e0] sm:$0xff]  ;;  %v348_v21 = vld [vmem:[%s1354_s3 + $0x1e8] sm:$0xff]  ;;  %v407_v24 = vadd.f32 %v343_v6, %v279_v12  ;;  %v408_v25 = vadd.f32 %v344_v7, %v280_v13  ;;  %v409_v30 = vadd.f32 %v345_v14, %v281_v18 }
  0x72   :  { %v349_v28 = vld [vmem:[%s1354_s3 + $0x1f0] sm:$0xff]  ;;  %v350_v29 = vld [vmem:[%s1354_s3 + $0x1f8] sm:$0xff]  ;;  %v410_v31 = vadd.f32 %v346_v15, %v282_v19  ;;  %v411_v35 = vadd.f32 %v347_v20, %v283_v26  ;;  %v412_v36 = vadd.f32 %v348_v21, %v284_v27 }
  0x73   :  { %v471_v33 = vmax.f32 %v407_v24, 0.0  ;;  %v472_v34 = vmax.f32 %v408_v25, 0.0  ;;  %v473_v37 = vmax.f32 %v409_v30, 0.0  ;;  %v413_v39 = vadd.f32 %v349_v28, %v285_v32 }
  0x74   :  { %v474_v38 = vmax.f32 %v410_v31, 0.0  ;;  %v414_v40 = vadd.f32 %v350_v29, %v286_v1  ;;  %v475_v41 = vmax.f32 %v411_v35, 0.0  ;;  %v476_v42 = vmax.f32 %v412_v36, 0.0 }
  0x75   :  { %535 = vst [vmem:[%s1355_s4 + $0x1c0] sm:$0xff] %v471_v33  ;;  %536 = vst [vmem:[%s1355_s4 + $0x1c8] sm:$0xff] %v472_v34  ;;  %v477_v5 = vmax.f32 %v413_v39, 0.0 }
  0x76   :  { %537 = vst [vmem:[%s1355_s4 + $0x1d0] sm:$0xff] %v473_v37  ;;  %538 = vst [vmem:[%s1355_s4 + $0x1d8] sm:$0xff] %v474_v38  ;;  %v478_v43 = vmax.f32 %v414_v40, 0.0 }
  0x77   :  { %539 = vst [vmem:[%s1355_s4 + $0x1e0] sm:$0xff] %v475_v41  ;;  %540 = vst [vmem:[%s1355_s4 + $0x1e8] sm:$0xff] %v476_v42 }
  0x78   :  { %541 = vst [vmem:[%s1355_s4 + $0x1f0] sm:$0xff] %v477_v5  ;;  %542 = vst [vmem:[%s1355_s4 + $0x1f8] sm:$0xff] %v478_v43 }

// kernel: basic_block_forward.3
= control target key start
LH: loop header
LB: loop body
LE: loop exit
PB: predicated region body
PF: predicated region fallthrough
CT: control target
= control target key end

     0   :  { %s3799_s18 = smov 0   ;;  %s4775_s0 = inlined_call_operand.vmem [shape: bf16[2,16,16,128], index: 0, kind: input, shape index: {}]   ;;  %s4776_s1 = inlined_call_operand.vmem [shape: bf16[3,384,128], index: 1, kind: input, shape index: {}]   ;;  %s4777_s2 = inlined_call_operand.vmem [shape: f32[1,128], index: 2, kind: input, shape index: {}]   ;;  %s4778_s3 = inlined_call_operand.vmem [shape: f32[1,128], index: 3, kind: input, shape index: {}]   ;;  %s4779_s4 = inlined_call_operand.vmem [shape: bf16[2,16,16,128], index: 4, kind: output, shape index: {0}]   ;;  %s4780_s5 = inlined_call_operand.vmem [shape: f32[2,2,128], index: 5, kind: output, shape index: {1}]  }
   0x1 LB: > { %s2514_s2 = sadd.s32 4294967295, %s3765_s18   ;;  %p2518_p0 = scmp.ge.s32.totalorder %s3765_s18, 1  ;;  %s3765_s18 = sphi %s3799_s18, %s16_s18  }
   0x2   : > { %p190_p1 = scmp.lt.s32.totalorder %s3765_s18, 3 }
   0x4   : > { %p191_p2 = pnand %p2518_p0, %p190_p1 }
   0x6   : > { %194 = sbr.rel (%p191_p2) target bundleno = 644 (0x284), region = 36 }
   0xd   : > { %v3671_v0 = vld [vmem:[%s4776_s1 + $0x100] sm:$0xff]   ;;  %v3767_v3 = vmov 0.0   ;;  %v3674_v4 = vld [vmem:[%s4776_s1 + $0x108] sm:$0xff]   ;;  %v3677_v7 = vld [vmem:[%s4776_s1 + $0x110] sm:$0xff]   ;;  %p222_p3 = scmp.lt.s32.totalorder %s2514_s2, 1  ;;  %vm2425_vm0 = vcmask 1040384  }
   0xe   : > { %v3813_v1 = vld [vmem:[%s4776_s1 + $0x140] sm:$0xff]   ;;  %2934 = vmatprep.subr.bf16.mxu0 %v3671_v0  ;;  %304 = vst [vmem:[#allocation2 + $0x18] sm:$0xff] %v3767_v3  ;;  %305 = vst [vmem:[#allocation2 + $0x20] sm:$0xff] %v3767_v3  ;;  %v3826_v5 = vld [vmem:[%s4776_s1 + $0x148] sm:$0xff]  }
   0xf   : > { %v3673_v2 = vld [vmem:[%s4776_s1 + $0xc0] sm:$0xff]   ;;  %306 = vst [vmem:[#allocation2 + $0x28] sm:$0x3] %v3767_v3  ;;  %301 = vst [vmem:[#allocation2] sm:$0xff] %v3767_v3  ;;  %3486 = vmatprep.subr.bf16.mxu1 %v3813_v1  ;;  %v3676_v6 = vld [vmem:[%s4776_s1 + $0xc8] sm:$0xff]   ;;  %s4786_s2 = smov (!%p222_p3, %s2514_s2), 1 }
  0x10   : > { %302 = vst [vmem:[#allocation2 + $0x8] sm:$0xff] %v3767_v3  ;;  %303 = vst [vmem:[#allocation2 + $0x10] sm:$0x3] %v3767_v3  ;;  %2935 = vmatpush3.bf16.msra.mxu0 %v3673_v2  ;;  %3494 = vmatpush3.bf16.msra.mxu1 %v3813_v1  ;;  %v3838_v8 = vld [vmem:[%s4776_s1 + $0x150] sm:$0xff]   ;;  %v3680_v10 = vld [vmem:[%s4776_s1 + $0x118] sm:$0xff]   ;;  %s2726_s27 = sshll.u32 %s4786_s2, 7 }
  0x11   : > { %307 = vst [vmem:[#allocation2 + $0x30] sm:$0xff] %v3767_v3  ;;  %308 = vst [vmem:[#allocation2 + $0x38] sm:$0xff] %v3767_v3  ;;  %2936 = vmatprep.subr.bf16.mxu0 %v3674_v4  ;;  %3487 = vmatprep.subr.bf16.mxu1 %v3826_v5  ;;  %v3679_v9 = vld [vmem:[%s4776_s1 + $0xd0] sm:$0xff]   ;;  %v3851_v11 = vld [vmem:[%s4776_s1 + $0x158] sm:$0xff]   ;;  %s3904_s11 = scalar_lea.vmem %s4775_s0, %s2726_s27 }
  0x12   : > { %309 = vst [vmem:[#allocation2 + $0x40] sm:$0x3] %v3767_v3  ;;  %310 = vst [vmem:[#allocation2 + $0x48] sm:$0xff] %v3767_v3  ;;  %v3682_v12 = vld [vmem:[%s4776_s1 + $0xd8] sm:$0xff]   ;;  %v3683_v13 = vld [vmem:[%s4776_s1 + $0x120] sm:$0xff]  }
  0x13   : > { %311 = vst [vmem:[#allocation2 + $0x50] sm:$0xff] %v3767_v3  ;;  %312 = vst [vmem:[#allocation2 + $0x58] sm:$0x3] %v3767_v3  ;;  %v3866_v14 = vld [vmem:[%s4776_s1 + $0x160] sm:$0xff]   ;;  %v3686_v16 = vld [vmem:[%s4776_s1 + $0x128] sm:$0xff]  }
  0x14   : > { %313 = vst [vmem:[#allocation2 + $0x60] sm:$0xff] %v3767_v3  ;;  %314 = vst [vmem:[#allocation2 + $0x68] sm:$0xff] %v3767_v3  ;;  %2937 = vmatpush3.bf16.msra.mxu0 %v3676_v6  ;;  %3495 = vmatpush3.bf16.msra.mxu1 %v3826_v5  ;;  %v3685_v15 = vld [vmem:[%s4776_s1 + $0xe0] sm:$0xff]   ;;  %v3883_v17 = vld [vmem:[%s4776_s1 + $0x168] sm:$0xff]  }
  0x15   : > { %315 = vst [vmem:[#allocation2 + $0x70] sm:$0x3] %v3767_v3  ;;  %316 = vst [vmem:[#allocation2 + $0x78] sm:$0xff] %v3767_v3  ;;  %2938 = vmatprep.subr.bf16.mxu0 %v3677_v7  ;;  %3488 = vmatprep.subr.bf16.mxu1 %v3838_v8  ;;  %v3688_v18 = vld [vmem:[%s4776_s1 + $0xe8] sm:$0xff]   ;;  %v3689_v19 = vld [vmem:[%s4776_s1 + $0x130] sm:$0xff]  }
  0x16   : > { %317 = vst [vmem:[#allocation2 + $0x80] sm:$0xff] %v3767_v3  ;;  %318 = vst [vmem:[#allocation2 + $0x88] sm:$0x3] %v3767_v3  ;;  %v3897_v20 = vld [vmem:[%s4776_s1 + $0x170] sm:$0xff]   ;;  %v2761_v22 = vld [vmem:[%s3904_s11] sm:$0xff]  }
  0x17   : > { %319 = vst [vmem:[#allocation2 + $0x90] sm:$0xff] %v3767_v3  ;;  %320 = vst [vmem:[#allocation2 + $0x98] sm:$0xff] %v3767_v3  ;;  %v3691_v21 = vld [vmem:[%s4776_s1 + $0xf0] sm:$0xff]   ;;  %v3912_v23 = vld [vmem:[%s3904_s11] sm:$0xff]  ;;  %v2762_v27 = vunpack.c.l.bf16 %v2761_v22  ;;  %v2763_v28 = vunpack.c.h.bf16 %v2761_v22 }
  0x18   : > { %321 = vst [vmem:[#allocation2 + $0xa0] sm:$0x3] %v3767_v3  ;;  %322 = vst [vmem:[#allocation2 + $0xa8] sm:$0xff] %v3767_v3  ;;  %2939 = vmatpush3.bf16.msra.mxu0 %v3679_v9  ;;  %3496 = vmatpush3.bf16.msra.mxu1 %v3838_v8  ;;  %v2912_v24 = vld [vmem:[%s3904_s11 + $0x48] sm:$0xff]   ;;  %v3692_v25 = vld [vmem:[%s4776_s1 + $0x138] sm:$0xff]  }
  0x19   : > { %323 = vst [vmem:[#allocation2 + $0xb0] sm:$0xff] %v3767_v3  ;;  %324 = vst [vmem:[#allocation2 + $0xb8] sm:$0x3] %v3767_v3  ;;  %2940 = vmatprep.subr.bf16.mxu0 %v3680_v10  ;;  %3489 = vmatprep.subr.bf16.mxu1 %v3851_v11  ;;  %v3922_v26 = vld [vmem:[%s4776_s1 + $0x178] sm:$0xff]   ;;  %v2798_v29 = vunpack.c.l.bf16 %v2912_v24  ;;  %v2799_v30 = vunpack.c.h.bf16 %v2912_v24  ;;  %v3925_v31 = vld [vmem:[%s3904_s11 + $0x48] sm:$0xff] }
  0x1a   : > { %325 = vst [vmem:[#allocation2 + $0xc0] sm:$0xff] %v3767_v3  ;;  %326 = vst [vmem:[#allocation2 + $0xc8] sm:$0xff] %v3767_v3  ;;  %v3694_v32 = vld [vmem:[%s4776_s1 + $0xf8] sm:$0xff]   ;;  %769 = vmatprep.mubr.bf16.mxu0 %v3912_v23  ;;  %v2913_v33 = vld [vmem:[%s3904_s11 + $0x50] sm:$0xff]   ;;  %3374 = vmatprep.mubr.bf16.mxu1 %v3925_v31 }
  0x1b   : > { %327 = vst [vmem:[#allocation2 + $0xd0] sm:$0x3] %v3767_v3  ;;  %328 = vst [vmem:[#allocation2 + $0xd8] sm:$0xff] %v3767_v3  ;;  %v490_v34 = vld [vmem:[#allocation2 + $0x1] sm:$0xff]  ;;  %v2802_v35 = vunpack.c.l.bf16 %v2913_v33  ;;  %v2803_v36 = vunpack.c.h.bf16 %v2913_v33  ;;  %v491_v37 = vld [vmem:[#allocation2 + $0x9] sm:$0xff] }
  0x1c   : > { %329 = vst [vmem:[#allocation2 + $0xe0] sm:$0xff] %v3767_v3  ;;  %330 = vst [vmem:[#allocation2 + $0xe8] sm:$0x3] %v3767_v3  ;;  %2941 = vmatpush3.bf16.msra.mxu0 %v3682_v12  ;;  %3497 = vmatpush3.bf16.msra.mxu1 %v3851_v11  ;;  %v3698_v38 = vld [vmem:[%s4776_s1 + $0x40] sm:$0xff]   ;;  %v2904_v39 = vld [vmem:[%s3904_s11 + $0x8] sm:$0xff]   ;;  %v526_v40 = vpack.c.bf16 %v491_v37, %v490_v34 }
  0x1d   : > { %331 = vst [vmem:[#allocation2 + $0xf0] sm:$0xff] %v3767_v3  ;;  %332 = vst [vmem:[#allocation2 + $0xf8] sm:$0xff] %v3767_v3  ;;  %2942 = vmatprep.subr.bf16.mxu0 %v3683_v13  ;;  %3490 = vmatprep.subr.bf16.mxu1 %v3866_v14  ;;  %v3940_v41 = vld [vmem:[%s3904_s11 + $0x50] sm:$0xff]  ;;  %v3699_v42 = vld [vmem:[%s4776_s1] sm:$0xff]   ;;  %v2766_v43 = vunpack.c.l.bf16 %v2904_v39  ;;  %v2767_v44 = vunpack.c.h.bf16 %v2904_v39 }
  0x1e   : > { %333 = vst [vmem:[#allocation2 + $0x100] sm:$0x3] %v3767_v3  ;;  %334 = vst [vmem:[#allocation2 + $0x108] sm:$0xff] %v3767_v3  ;;  %v2914_v45 = vld [vmem:[%s3904_s11 + $0x58] sm:$0xff]   ;;  %v3700_v46 = vld [vmem:[%s4776_s1 + $0x48] sm:$0xff]  }
  0x1f   : > { %335 = vst [vmem:[#allocation2 + $0x110] sm:$0xff] %v3767_v3  ;;  %336 = vst [vmem:[#allocation2 + $0x118] sm:$0x3] %v3767_v3  ;;  %v2806_v47 = vunpack.c.l.bf16 %v2914_v45  ;;  %v2807_v48 = vunpack.c.h.bf16 %v2914_v45  ;;  %v2915_v49 = vld [vmem:[%s3904_s11 + $0x60] sm:$0xff]   ;;  %v3953_v50 = vld [vmem:[%s3904_s11 + $0x8] sm:$0xff] }
  0x20   : > { %337 = vst [vmem:[#allocation2 + $0x120] sm:$0xff] %v3767_v3  ;;  %338 = vst [vmem:[#allocation2 + $0x128] sm:$0xff] %v3767_v3  ;;  %2943 = vmatpush3.bf16.msra.mxu0 %v3685_v15  ;;  %3498 = vmatpush3.bf16.msra.mxu1 %v3866_v14  ;;  %v2810_v51 = vunpack.c.l.bf16 %v2915_v49  ;;  %v2811_v52 = vunpack.c.h.bf16 %v2915_v49  ;;  %v3956_v53 = vld [vmem:[%s3904_s11 + $0x58] sm:$0xff]  ;;  %v3701_v54 = vld [vmem:[%s4776_s1 + $0x8] sm:$0xff]  }
  0x21   : > { %339 = vst [vmem:[#allocation2 + $0x130] sm:$0x3] %v3767_v3  ;;  %340 = vst [vmem:[#allocation2 + $0x138] sm:$0xff] %v3767_v3  ;;  %2944 = vmatprep.subr.bf16.mxu0 %v3686_v16  ;;  %3491 = vmatprep.subr.bf16.mxu1 %v3883_v17  ;;  %v2905_v55 = vld [vmem:[%s3904_s11 + $0x10] sm:$0xff]   ;;  %v3966_v56 = vld [vmem:[%s3904_s11 + $0x60] sm:$0xff] }
  0x22   : > { %341 = vst [vmem:[#allocation2 + $0x140] sm:$0xff] %v3767_v3  ;;  %342 = vst [vmem:[#allocation2 + $0x148] sm:$0x3] %v3767_v3  ;;  %v3705_v57 = vld [vmem:[%s4776_s1 + $0x50] sm:$0xff]   ;;  %v2770_v58 = vunpack.c.l.bf16 %v2905_v55  ;;  %v2771_v59 = vunpack.c.h.bf16 %v2905_v55  ;;  %v2916_v60 = vld [vmem:[%s3904_s11 + $0x68] sm:$0xff]  }
  0x23   : > { %343 = vst [vmem:[#allocation2 + $0x150] sm:$0xff] %v3767_v3  ;;  %344 = vst [vmem:[#allocation2 + $0x158] sm:$0xff] %v3767_v3  ;;  %v3706_v61 = vld [vmem:[%s4776_s1 + $0x10] sm:$0xff]   ;;  %v2814_v62 = vunpack.c.l.bf16 %v2916_v60  ;;  %v2815_v63 = vunpack.c.h.bf16 %v2916_v60  ;;  %v3986_v6 = vld [vmem:[%s3904_s11 + $0x68] sm:$0xff]  ;;  %v3768_v60 = vmov 0.0|0.0  }
  0x24   : > { %345 = vst [vmem:[#allocation2 + $0x160] sm:$0x3] %v3767_v3  ;;  %346 = vst [vmem:[#allocation2 + $0x168] sm:$0xff] %v3767_v3  ;;  %2945 = vmatpush3.bf16.msra.mxu0 %v3688_v18  ;;  %3499 = vmatpush3.bf16.msra.mxu1 %v3883_v17  ;;  %v2917_v0 = vld [vmem:[%s3904_s11 + $0x70] sm:$0xff]   ;;  %v2906_v7 = vld [vmem:[%s3904_s11 + $0x18] sm:$0xff]  }
  0x25   : > { %347 = vst [vmem:[#allocation2 + $0x170] sm:$0xff] %v3767_v3  ;;  %348 = vst [vmem:[#allocation2 + $0x178] sm:$0x3] %v3767_v3  ;;  %2946 = vmatprep.subr.bf16.mxu0 %v3689_v19  ;;  %3492 = vmatprep.subr.bf16.mxu1 %v3897_v20  ;;  %v2818_v2 = vunpack.c.l.bf16 %v2917_v0  ;;  %v3982_v4 = vld [vmem:[%s3904_s11 + $0x10] sm:$0xff]  ;;  %v2774_v9 = vunpack.c.l.bf16 %v2906_v7  ;;  %v2775_v10 = vunpack.c.h.bf16 %v2906_v7  ;;  %v2918_v12 = vld [vmem:[%s3904_s11 + $0x78] sm:$0xff]  }
  0x26   : > { %349 = vst [vmem:[#allocation2 + $0x180] sm:$0xff] %v3767_v3  ;;  %350 = vst [vmem:[#allocation2 + $0x188] sm:$0xff] %v3767_v3  ;;  %v2822_v13 = vunpack.c.l.bf16 %v2918_v12  ;;  %v2823_v15 = vunpack.c.h.bf16 %v2918_v12  ;;  %v3712_v16 = vld [vmem:[%s4776_s1 + $0x60] sm:$0xff]   ;;  %v4002_v18 = vld [vmem:[%s3904_s11 + $0x70] sm:$0xff] }
  0x27   : > { %351 = vst [vmem:[#allocation2 + $0x190] sm:$0x3] %v3767_v3  ;;  %352 = vst [vmem:[#allocation2 + $0x198] sm:$0xff] %v3767_v3  ;;  %v3713_v19 = vld [vmem:[%s4776_s1 + $0x20] sm:$0xff]   ;;  %v4017_v24 = vld [vmem:[%s3904_s11 + $0x78] sm:$0xff] }
  0x28   : > { %353 = vst [vmem:[#allocation2 + $0x1a0] sm:$0xff] %v3767_v3  ;;  %354 = vst [vmem:[#allocation2 + $0x1a8] sm:$0x3] %v3767_v3  ;;  %2947 = vmatpush3.bf16.msra.mxu0 %v3691_v21  ;;  %3500 = vmatpush3.bf16.msra.mxu1 %v3897_v20  ;;  %v2819_v3 = vunpack.c.h.bf16 %v2917_v0  ;;  %v4010_v21 = vld [vmem:[%s3904_s11 + $0x18] sm:$0xff]  ;;  %v2907_v22 = vld [vmem:[%s3904_s11 + $0x20] sm:$0xff]  }
  0x29   : > { %356 = vst [vmem:[#allocation2 + $0x19] sm:$0xff] %v2762_v27  ;;  %357 = vst [vmem:[#allocation2 + $0x21] sm:$0xff] %v2763_v28  ;;  %2948 = vmatprep.subr.bf16.mxu0 %v3692_v25  ;;  %3493 = vmatprep.subr.bf16.mxu1 %v3922_v26  ;;  %v2779_v25 = vunpack.c.h.bf16 %v2907_v22  ;;  %v3715_v27 = vld [vmem:[%s4776_s1 + $0x28] sm:$0xff]   ;;  %v3718_v34 = vld [vmem:[%s4776_s1 + $0x70] sm:$0xff]  }
  0x2a   : > { %374 = vst [vmem:[#allocation2 + $0xf1] sm:$0xff] %v2798_v29  ;;  %375 = vst [vmem:[#allocation2 + $0xf9] sm:$0xff] %v2799_v30  ;;  %v2908_v28 = vld [vmem:[%s3904_s11 + $0x28] sm:$0xff]   ;;  %v2910_v39 = vld [vmem:[%s3904_s11 + $0x38] sm:$0xff]  }
  0x2b   : > { %376 = vst [vmem:[#allocation2 + $0x109] sm:$0xff] %v2802_v35  ;;  %377 = vst [vmem:[#allocation2 + $0x111] sm:$0xff] %v2803_v36  ;;  %v2783_v33 = vunpack.c.h.bf16 %v2908_v28  ;;  %v4039_v45 = vld [vmem:[%s3904_s11 + $0x20] sm:$0xff]  ;;  %v4092_v7 = vld [vmem:[%s3904_s11 + $0x38] sm:$0xff] }
  0x2c   : > { %2949 = vmatpush3.bf16.msra.mxu0 %v3694_v32  ;;  %3501 = vmatpush3.bf16.msra.mxu1 %v3922_v26  ;;  %358 = vst [vmem:[#allocation2 + $0x31] sm:$0xff] %v2766_v43  ;;  %359 = vst [vmem:[#allocation2 + $0x39] sm:$0xff] %v2767_v44  ;;  %v2782_v32 = vunpack.c.l.bf16 %v2908_v28  ;;  %v2790_v43 = vunpack.c.l.bf16 %v2910_v39  ;;  %v2791_v44 = vunpack.c.h.bf16 %v2910_v39 }
  0x2d   : > { %3342 = vmatprep.subr.bf16.mxu0 %v3813_v1  ;;  %3070 = vmatprep.subr.bf16.mxu1 %v3698_v38  ;;  %378 = vst [vmem:[#allocation2 + $0x121] sm:$0xff] %v2806_v47  ;;  %379 = vst [vmem:[#allocation2 + $0x129] sm:$0xff] %v2807_v48  ;;  %v3720_v47 = vld [vmem:[%s4776_s1 + $0x78] sm:$0xff]  }
  0x2e   : > { %380 = vst [vmem:[#allocation2 + $0x139] sm:$0xff] %v2810_v51  ;;  %381 = vst [vmem:[#allocation2 + $0x141] sm:$0xff] %v2811_v52  ;;  %v3723_v52 = vld [vmem:[%s4776_s1 + $0x80] sm:$0xff]  }
  0x2f   : > { %770 = vmatmul.mubr.bf16.vlgmr.msra.gmra.mrb[0].mxu0 %v526_v40  ;;  %3375 = vmatmul.mubr.bf16.vlgmr.msra.gmra.mrb[0].mxu1 %v3940_v41  ;;  %360 = vst [vmem:[#allocation2 + $0x49] sm:$0xff] %v2770_v58  ;;  %361 = vst [vmem:[#allocation2 + $0x51] sm:$0xff] %v2771_v59  ;;  %v524_v29 = vld [vmem:[#allocation2 + $0x199] sm:$0xff]  ;;  %v525_v30 = vld [vmem:[#allocation2 + $0x1a1] sm:$0xff] }
  0x30   : > { %3343 = vmatpush3.bf16.msra.mxu0 %v3813_v1  ;;  %3071 = vmatpush3.bf16.msra.mxu1 %v3699_v42  ;;  %v3707_v1 = vld [vmem:[%s4776_s1 + $0x58] sm:$0xff]   ;;  %382 = vst [vmem:[#allocation2 + $0x151] sm:$0xff] %v2814_v62  ;;  %383 = vst [vmem:[#allocation2 + $0x159] sm:$0xff] %v2815_v63  ;;  %v391_v38 = vld [vmem:[#allocation2 + $0x20] sm:$0xff]  ;;  %v543_v40 = vpack.c.bf16 %v525_v30, %v524_v29 }
  0x31   : > { %3072 = vmatprep.subr.bf16.mxu1 %v3700_v46  ;;  %777 = vmatprep.mubr.bf16.mxu0 %v3953_v50  ;;  %384 = vst [vmem:[#allocation2 + $0x169] sm:$0xff] %v2818_v2  ;;  %385 = vst [vmem:[#allocation2 + $0x171] sm:$0xff] %v2819_v3  ;;  %v390_v35 = vld [vmem:[#allocation2 + $0x18] sm:$0xff]  ;;  %v3719_v42 = vld [vmem:[%s4776_s1 + $0x30] sm:$0xff]  }
  0x32   : > { %3378 = vmatprep.mubr.bf16.mxu1 %v3956_v53  ;;  %3344 = vmatprep.subr.bf16.mxu0 %v3826_v5  ;;  %362 = vst [vmem:[#allocation2 + $0x61] sm:$0xff] %v2774_v9  ;;  %363 = vst [vmem:[#allocation2 + $0x69] sm:$0xff] %v2775_v10  ;;  %v2911_v46 = vld [vmem:[%s3904_s11 + $0x40] sm:$0xff]   ;;  %v425_v48 = vpack.c.bf16 %v391_v38, %v390_v35  ;;  %v3726_v59 = vld [vmem:[%s4776_s1 + $0x88] sm:$0xff]  }
  0x33   : > { %386 = vst [vmem:[#allocation2 + $0x181] sm:$0xff] %v2822_v13  ;;  %387 = vst [vmem:[#allocation2 + $0x189] sm:$0xff] %v2823_v15  ;;  %v2794_v49 = vunpack.c.l.bf16 %v2911_v46  ;;  %v2795_v51 = vunpack.c.h.bf16 %v2911_v46  ;;  %v393_v55 = vld [vmem:[#allocation2 + $0x38] sm:$0xff]  ;;  %v3734_v62 = vld [vmem:[%s4776_s1 + $0x1c0] sm:$0xff]  }
  0x34   : > { %3073 = vmatpush3.bf16.msra.mxu1 %v3701_v54  ;;  %3345 = vmatpush3.bf16.msra.mxu0 %v3826_v5  ;;  %v3708_v5 = vld [vmem:[%s4776_s1 + $0x18] sm:$0xff]   ;;  %365 = vst [vmem:[#allocation2 + $0x81] sm:$0xff] %v2779_v25  ;;  %366 = vst [vmem:[#allocation2 + $0x91] sm:$0xff] %v2782_v32  ;;  %v392_v54 = vld [vmem:[#allocation2 + $0x30] sm:$0xff] }
  0x35   : > { %3074 = vmatprep.subr.bf16.mxu1 %v3705_v57  ;;  %3346 = vmatprep.subr.bf16.mxu0 %v3838_v8  ;;  %367 = vst [vmem:[#allocation2 + $0x99] sm:$0xff] %v2783_v33  ;;  %370 = vst [vmem:[#allocation2 + $0xc1] sm:$0xff] %v2790_v43  ;;  %v4057_v57 = vld [vmem:[%s3904_s11 + $0x28] sm:$0xff]  ;;  %v4059_v58 = vpack.c.bf16 %v393_v55, %v392_v54  ;;  %v4078_v63 = vld [vmem:[%s3904_s11 + $0x30] sm:$0xff] }
  0x36   : > { %371 = vst [vmem:[#allocation2 + $0xc9] sm:$0xff] %v2791_v44  ;;  %372 = vst [vmem:[#allocation2 + $0xd9] sm:$0xff] %v2794_v49  ;;  %v3731_v3 = vld [vmem:[%s4776_s1 + $0xa0] sm:$0xff]   ;;  %v3732_v10 = vld [vmem:[%s4776_s1 + $0xa8] sm:$0xff]  }
  0x37   : > { %778 = vmatmul.mubr.bf16.gmra.mrb[4].mxu0 %v3912_v23  ;;  %3379 = vmatmul.mubr.bf16.gmra.mrb[4].mxu1 %v3966_v56  ;;  %v3714_v23 = vld [vmem:[%s4776_s1 + $0x68] sm:$0xff]   ;;  %373 = vst [vmem:[#allocation2 + $0xe1] sm:$0xff] %v2795_v51  ;;  %v3733_v13 = vld [vmem:[%s4776_s1 + $0xb0] sm:$0xff]   ;;  %v4107_v15 = vld [vmem:[%s3904_s11 + $0x40] sm:$0xff] }
  0x38   : > { %3075 = vmatpush3.bf16.msra.mxu1 %v3706_v61  ;;  %785 = vmatprep.mubr.bf16.mxu0 %v3982_v4  ;;  %v395_v61 = vld [vmem:[#allocation2 + $0x50] sm:$0xff]  ;;  %v410_v38 = vld [vmem:[#allocation2 + $0x108] sm:$0xff]  ;;  %v414_v43 = vld [vmem:[#allocation2 + $0x138] sm:$0xff] }
  0x39   : > { %3076 = vmatprep.subr.bf16.mxu1 %v3707_v1  ;;  %3382 = vmatprep.mubr.bf16.mxu1 %v3986_v6  ;;  %v3730_v1 = vld [vmem:[%s4776_s1 + $0x98] sm:$0xff]   ;;  %v397_v2 = vld [vmem:[#allocation2 + $0x68] sm:$0xff]  ;;  %v416_v46 = vld [vmem:[#allocation2 + $0x150] sm:$0xff] }
  0x3a   : > { %3347 = vmatpush3.bf16.msra.mxu0 %v3838_v8  ;;  %v2778_v8 = vunpack.c.l.bf16 %v2907_v22  ;;  %v418_v49 = vld [vmem:[#allocation2 + $0x168] sm:$0xff]  ;;  %v419_v51 = vld [vmem:[#allocation2 + $0x170] sm:$0xff]  ;;  %v3743_v54 = vld [vmem:[%s4776_s1 + $0x1e0] sm:$0xff]  }
  0x3b   : > { %3348 = vmatprep.subr.bf16.mxu0 %v3851_v11  ;;  %v400_v22 = vld [vmem:[#allocation2 + $0x90] sm:$0xff]  ;;  %v420_v55 = vld [vmem:[#allocation2 + $0x180] sm:$0xff] }
  0x3c   : > { %3077 = vmatpush3.bf16.msra.mxu1 %v3708_v5  ;;  %364 = vst [vmem:[#allocation2 + $0x79] sm:$0xff] %v2778_v8  ;;  %v4121_v8 = vld [vmem:[%s4776_s1 + $0x200] sm:$0xff]  }
  0x3d   : > { %3078 = vmatprep.subr.bf16.mxu1 %v3712_v16  ;;  %v404_v30 = vld [vmem:[#allocation2 + $0xc0] sm:$0xff]  ;;  %v405_v32 = vld [vmem:[#allocation2 + $0xc8] sm:$0xff] }
  0x3e   : > { %3349 = vmatpush3.bf16.msra.mxu0 %v3851_v11  ;;  %v2909_v11 = vld [vmem:[%s3904_s11 + $0x30] sm:$0xff]   ;;  %v4136_v33 = vpack.c.bf16 %v405_v32, %v404_v30  ;;  %v1536_v32 = vld [vmem:[#allocation2 + $0x82] sm:$0xff]  ;;  %s4524_s11 = scalar_lea.vmem %s4779_s4, %s2726_s27  ;;  %s2523_s27 = sshll.u32 %s4786_s2, 1 }
  0x3f   : > { %786 = vmatmul.mubr.bf16.gmra.mrb[8].mxu0 %v3953_v50  ;;  %3383 = vmatmul.mubr.bf16.gmra.mrb[8].mxu1 %v4002_v18  ;;  %v2786_v36 = vunpack.c.l.bf16 %v2909_v11  ;;  %v2787_v37 = vunpack.c.h.bf16 %v2909_v11  ;;  %v406_v11 = vld [vmem:[#allocation2 + $0xd8] sm:$0xff]  ;;  %s235_s26 = scalar_lea.vmem %s4780_s5, %s2523_s27 }
  0x40   : > { %3079 = vmatpush3.bf16.msra.mxu1 %v3713_v19  ;;  %793 = vmatprep.mubr.bf16.mxu0 %v4010_v21  ;;  %v3742_v19 = vld [vmem:[%s4776_s1 + $0xb8] sm:$0xff]  }
  0x41   : > { %3080 = vmatprep.subr.bf16.mxu1 %v3714_v23  ;;  %3386 = vmatprep.mubr.bf16.mxu1 %v4017_v24  ;;  %368 = vst [vmem:[#allocation2 + $0xa9] sm:$0xff] %v2786_v36  ;;  %369 = vst [vmem:[#allocation2 + $0xb1] sm:$0xff] %v2787_v37  ;;  %v401_v23 = vld [vmem:[#allocation2 + $0x98] sm:$0xff]  ;;  %v408_v36 = vld [vmem:[#allocation2 + $0xf0] sm:$0xff] }
  0x42   : > { %3350 = vmatprep.subr.bf16.mxu0 %v3866_v14  ;;  %v4123_v25 = vpack.c.bf16 %v401_v23, %v400_v22  ;;  %v1532_v22 = vld [vmem:[#allocation2 + $0x52] sm:$0xff] }
  0x43   : > { %3351 = vmatpush3.bf16.msra.mxu0 %v3866_v14  ;;  %v3721_v14 = vld [vmem:[%s4776_s1 + $0x38] sm:$0xff]   ;;  %v399_v5 = vld [vmem:[#allocation2 + $0x80] sm:$0xff]  ;;  %v3753_v23 = vld [vmem:[%s4776_s1 + $0x210] sm:$0xff]  }
  0x44   : > { %3081 = vmatpush3.bf16.msra.mxu1 %v3715_v27  ;;  %3352 = vmatprep.subr.bf16.mxu0 %v3883_v17  ;;  %v398_v12 = vld [vmem:[#allocation2 + $0x78] sm:$0xff] }
  0x45   : > { %3082 = vmatprep.subr.bf16.mxu1 %v3718_v34  ;;  %v4109_v16 = vpack.c.bf16 %v399_v5, %v398_v12  ;;  %v407_v34 = vld [vmem:[#allocation2 + $0xe0] sm:$0xff]  ;;  %v1529_v12 = vld [vmem:[#allocation2 + $0x32] sm:$0xff] }
  0x46   : > { %v4142_v35 = vpack.c.bf16 %v407_v34, %v406_v11  ;;  %v1530_v5 = vld [vmem:[#allocation2 + $0x3a] sm:$0xff]  ;;  %v3757_v11 = vld [vmem:[%s4776_s1 + $0x230] sm:$0xff]  }
  0x47   : > { %794 = vmatmul.mubr.bf16.gmra.mrb[12].mxu0 %v3982_v4  ;;  %3387 = vmatmul.mubr.bf16.gmra.mrb[12].mxu1 %v543_v40  ;;  %v412_v40 = vld [vmem:[#allocation2 + $0x120] sm:$0xff] }
  0x48   : > { %3083 = vmatpush3.bf16.msra.mxu1 %v3719_v42  ;;  %801 = vmatprep.mubr.bf16.mxu0 %v4039_v45  ;;  %v402_v27 = vld [vmem:[#allocation2 + $0xa8] sm:$0xff]  ;;  %v403_v28 = vld [vmem:[#allocation2 + $0xb0] sm:$0xff] }
  0x49   : > { %3084 = vmatprep.subr.bf16.mxu1 %v3720_v47  ;;  %1235 = vmatprep.mubr.bf16.mxu1 %v425_v48  ;;  %v4130_v29 = vpack.c.bf16 %v403_v28, %v402_v27  ;;  %v3736_v47 = vld [vmem:[%s4776_s1 + $0x1c8] sm:$0xff]   ;;  %v3755_v28 = vld [vmem:[%s4776_s1 + $0x220] sm:$0xff]  }
  0x4a   : > { %3353 = vmatpush3.bf16.msra.mxu0 %v3883_v17  ;;  %v394_v17 = vld [vmem:[#allocation2 + $0x48] sm:$0xff] }
  0x4b   : > { %3354 = vmatprep.subr.bf16.mxu0 %v3897_v20  ;;  %v4080_v0 = vpack.c.bf16 %v395_v61, %v394_v17  ;;  %v3745_v17 = vld [vmem:[%s4776_s1 + $0x1e8] sm:$0xff]  }
  0x4c   : > { %3085 = vmatpush3.bf16.msra.mxu1 %v3721_v14  ;;  %v3740_v14 = vld [vmem:[%s4776_s1 + $0x1d8] sm:$0xff]   ;;  %v3746_v61 = vld [vmem:[%s4776_s1 + $0x1a8] sm:$0xff]  }
  0x4d   : > { %3390 = vmatprep.subr.bf16.mxu1 %v3723_v52 }
  0x4e   : > { %3355 = vmatpush3.bf16.msra.mxu0 %v3897_v20  ;;  %v3729_v20 = vld [vmem:[%s4776_s1 + $0x90] sm:$0xff]  }
  0x4f   : > { %802 = vmatmul.mubr.bf16.gmra.mrb[16].mxu0 %v4010_v21  ;;  %1236 = vmatmul.mubr.bf16.vlgmr.msra.gmra.mrb[16].mxu1 %v3768_v60 }
  0x50   : > { %3391 = vmatpush3.bf16.msra.mxu1 %v3723_v52  ;;  %809 = vmatprep.mubr.bf16.mxu0 %v4057_v57  ;;  %v3741_v52 = vld [vmem:[%s4776_s1 + $0x198] sm:$0xff]  }
  0x51   : > { %1243 = vmatprep.mubr.bf16.mxu1 %v4059_v58  ;;  %3392 = vmatprep.subr.bf16.mxu1 %v3726_v59 }
  0x52   : > { %3356 = vmatprep.subr.bf16.mxu0 %v3922_v26 }
  0x53   : > { %3357 = vmatpush3.bf16.msra.mxu0 %v3922_v26  ;;  %v396_v26 = vld [vmem:[#allocation2 + $0x60] sm:$0xff] }
  0x54   : > { %3393 = vmatpush3.bf16.msra.mxu1 %v3726_v59  ;;  %3206 = vmatprep.subr.bf16.mxu0 %v3734_v62  ;;  %v4094_v9 = vpack.c.bf16 %v397_v2, %v396_v26  ;;  %v421_v59 = vld [vmem:[#allocation2 + $0x188] sm:$0xff]  ;;  %v3747_v62 = vld [vmem:[%s4776_s1 + $0x1f0] sm:$0xff]   ;;  %v3749_v26 = vld [vmem:[%s4776_s1 + $0x1f8] sm:$0xff]  }
  0x55   : > { %3394 = vmatprep.subr.bf16.mxu1 %v3729_v20 }
  0x57   : > { %810 = vmatmul.mubr.bf16.gmra.mrb[20].mxu0 %v4039_v45  ;;  %1244 = vmatmul.mubr.bf16.gmra.mrb[20].mxu1 %v425_v48 }
  0x58   : > { %817 = vmatprep.mubr.bf16.mxu0 %v4078_v63  ;;  %1251 = vmatprep.mubr.bf16.mxu1 %v4080_v0 }
  0x59   : > { %3395 = vmatpush3.bf16.msra.mxu1 %v3729_v20  ;;  %v1527_v20 = vld [vmem:[#allocation2 + $0x1a] sm:$0xff] }
  0x5a   : > { %3396 = vmatprep.subr.bf16.mxu1 %v3730_v1 }
  0x5d   : > { %3397 = vmatpush3.bf16.msra.mxu1 %v3730_v1  ;;  %v1528_v1 = vld [vmem:[#allocation2 + $0x22] sm:$0xff] }
  0x5e   : > { %3398 = vmatprep.subr.bf16.mxu1 %v3731_v3  ;;  %v1562_v2 = vpack.c.bf16 %v1528_v1, %v1527_v20  ;;  %v1549_v20 = vld [vmem:[#allocation2 + $0x122] sm:$0xff]  ;;  %v1550_v1 = vld [vmem:[#allocation2 + $0x12a] sm:$0xff] }
  0x5f   : > { %818 = vmatmul.mubr.bf16.gmra.mrb[24].mxu0 %v4057_v57  ;;  %1252 = vmatmul.mubr.bf16.gmra.mrb[24].mxu1 %v4059_v58 }
  0x60   : > { %825 = vmatprep.mubr.bf16.mxu0 %v4092_v7  ;;  %1259 = vmatprep.mubr.bf16.mxu1 %v4094_v9 }
  0x61   : > { %3399 = vmatpush3.bf16.msra.mxu1 %v3731_v3  ;;  %v3750_v3 = vld [vmem:[%s4776_s1 + $0x1b8] sm:$0xff]  }
  0x62   : > { %3400 = vmatprep.subr.bf16.mxu1 %v3732_v10 }
  0x65   : > { %3401 = vmatpush3.bf16.msra.mxu1 %v3732_v10  ;;  %v1526_v10 = vld [vmem:[#allocation2 + $0xa] sm:$0xff] }
  0x66   : > { %3402 = vmatprep.subr.bf16.mxu1 %v3733_v13 }
  0x67   : > { %826 = vmatmul.mubr.bf16.gmra.mrb[28].mxu0 %v4078_v63  ;;  %1260 = vmatmul.mubr.bf16.gmra.mrb[28].mxu1 %v4080_v0 }
  0x68   : > { %833 = vmatprep.mubr.bf16.mxu0 %v4107_v15  ;;  %1267 = vmatprep.mubr.bf16.mxu1 %v4109_v16 }
  0x69   : > { %3403 = vmatpush3.bf16.msra.mxu1 %v3733_v13 }
  0x6a   : > { %3404 = vmatprep.subr.bf16.mxu1 %v3742_v19 }
  0x6d   : > { %3405 = vmatpush3.bf16.msra.mxu1 %v3742_v19  ;;  %v4238_v19 = vpack.c.bf16 %v1530_v5, %v1529_v12  ;;  %v1551_v5 = vld [vmem:[#allocation2 + $0x13a] sm:$0xff] }
  0x6e   : > { %3438 = vmatprep.subr.bf16.mxu1 %v4121_v8 }
  0x6f   : > { %834 = vmatmul.mubr.bf16.gmra.mrb[32].mxu0 %v4092_v7  ;;  %1268 = vmatmul.mubr.bf16.gmra.mrb[32].mxu1 %v4094_v9 }
  0x70   : > { %841 = vmatprep.mubr.bf16.mxu0 %v3925_v31  ;;  %1275 = vmatprep.mubr.bf16.mxu1 %v4123_v25 }
  0x77   : > { %842 = vmatmul.mubr.bf16.gmra.mrb[36].mxu0 %v4107_v15  ;;  %1276 = vmatmul.mubr.bf16.gmra.mrb[36].mxu1 %v4109_v16 }
  0x78   : > { %849 = vmatprep.mubr.bf16.mxu0 %v3940_v41  ;;  %1283 = vmatprep.mubr.bf16.mxu1 %v4130_v29 }
  0x7f   : > { %850 = vmatmul.mubr.bf16.gmra.mrb[40].mxu0 %v3925_v31  ;;  %1284 = vmatmul.mubr.bf16.gmra.mrb[40].mxu1 %v4123_v25  ;;  %v409_v31 = vld [vmem:[#allocation2 + $0xf8] sm:$0xff] }
  0x80   : > { %857 = vmatprep.mubr.bf16.mxu0 %v3956_v53  ;;  %1291 = vmatprep.mubr.bf16.mxu1 %v4136_v33  ;;  %v4148_v37 = vpack.c.bf16 %v409_v31, %v408_v36  ;;  %v1538_v36 = vld [vmem:[#allocation2 + $0x9a] sm:$0xff] }
  0x87   : > { %858 = vmatmul.mubr.bf16.gmra.mrb[44].mxu0 %v3940_v41  ;;  %1292 = vmatmul.mubr.bf16.gmra.mrb[44].mxu1 %v4130_v29  ;;  %v411_v41 = vld [vmem:[#allocation2 + $0x110] sm:$0xff] }
  0x88   : > { %865 = vmatprep.mubr.bf16.mxu0 %v3966_v56  ;;  %1299 = vmatprep.mubr.bf16.mxu1 %v4142_v35  ;;  %v4154_v39 = vpack.c.bf16 %v411_v41, %v410_v38  ;;  %v1540_v38 = vld [vmem:[#allocation2 + $0xb2] sm:$0xff] }
  0x8f   : > { %866 = vmatmul.mubr.bf16.gmra.mrb[48].mxu0 %v3956_v53  ;;  %1300 = vmatmul.mubr.bf16.gmra.mrb[48].mxu1 %v4136_v33  ;;  %v413_v53 = vld [vmem:[#allocation2 + $0x128] sm:$0xff] }
  0x90   : > { %873 = vmatprep.mubr.bf16.mxu0 %v3986_v6  ;;  %1307 = vmatprep.mubr.bf16.mxu1 %v4148_v37  ;;  %v4160_v42 = vpack.c.bf16 %v413_v53, %v412_v40  ;;  %v1542_v40 = vld [vmem:[#allocation2 + $0xca] sm:$0xff] }
  0x97   : > { %874 = vmatmul.mubr.bf16.gmra.mrb[52].mxu0 %v3966_v56  ;;  %1308 = vmatmul.mubr.bf16.gmra.mrb[52].mxu1 %v4142_v35  ;;  %v415_v56 = vld [vmem:[#allocation2 + $0x140] sm:$0xff] }
  0x98   : > { %881 = vmatprep.mubr.bf16.mxu0 %v4002_v18  ;;  %1315 = vmatprep.mubr.bf16.mxu1 %v4154_v39  ;;  %v4166_v44 = vpack.c.bf16 %v415_v56, %v414_v43 }
  0x9f   : > { %882 = vmatmul.mubr.bf16.gmra.mrb[56].mxu0 %v3986_v6  ;;  %1316 = vmatmul.mubr.bf16.gmra.mrb[56].mxu1 %v4148_v37  ;;  %v417_v6 = vld [vmem:[#allocation2 + $0x158] sm:$0xff] }
  0xa0   : > { %889 = vmatprep.mubr.bf16.mxu0 %v4017_v24  ;;  %1323 = vmatprep.mubr.bf16.mxu1 %v4160_v42  ;;  %v3735_v24 = vld [vmem:[%s4776_s1 + $0x180] sm:$0xff]   ;;  %v4178_v48 = vpack.c.bf16 %v417_v6, %v416_v46 }
  0xa7   : > { %890 = vmatmul.mubr.bf16.gmra.mrb[60].mxu0 %v4002_v18  ;;  %1324 = vmatmul.mubr.bf16.gmra.mrb[60].mxu1 %v4154_v39  ;;  %v3738_v18 = vld [vmem:[%s4776_s1 + $0x1d0] sm:$0xff]  }
  0xa8   : > { %3358 = vmatprep.mubr.bf16.mxu0 %v3953_v50  ;;  %1331 = vmatprep.mubr.bf16.mxu1 %v4166_v44  ;;  %v3737_v50 = vld [vmem:[%s4776_s1 + $0x188] sm:$0xff]  }
  0xaf   : > { %3359 = vmatmul.mubr.bf16.vlgmr.msra.gmra.mrb[64].mxu0 %v3982_v4  ;;  %1332 = vmatmul.mubr.bf16.gmra.mrb[64].mxu1 %v4160_v42  ;;  %v3739_v4 = vld [vmem:[%s4776_s1 + $0x190] sm:$0xff]  }
  0xb0   : > { %3207 = vmatpush3.bf16.msra.mxu0 %v3735_v24  ;;  %3362 = vmatprep.mubr.bf16.mxu0 %v4010_v21  ;;  %v4196_v21 = vpack.c.bf16 %v419_v51, %v418_v49 }
  0xb1   : > { %3208 = vmatprep.subr.bf16.mxu0 %v3736_v47  ;;  %1339 = vmatprep.mubr.bf16.mxu1 %v4178_v48 }
  0xb4   : > { %3209 = vmatpush3.bf16.msra.mxu0 %v3737_v50  ;;  %v1546_v50 = vld [vmem:[#allocation2 + $0xfa] sm:$0xff] }
  0xb5   : > { %3210 = vmatprep.subr.bf16.mxu0 %v3738_v18 }
  0xb7   : > { %3363 = vmatmul.mubr.bf16.gmra.mrb[68].mxu0 %v4039_v45  ;;  %1340 = vmatmul.mubr.bf16.gmra.mrb[68].mxu1 %v4166_v44  ;;  %v3744_v45 = vld [vmem:[%s4776_s1 + $0x1a0] sm:$0xff]  }
  0xb8   : > { %3211 = vmatpush3.bf16.msra.mxu0 %v3739_v4  ;;  %3366 = vmatprep.mubr.bf16.mxu0 %v4057_v57  ;;  %v4214_v57 = vpack.c.bf16 %v421_v59, %v420_v55 }
  0xb9   : > { %3212 = vmatprep.subr.bf16.mxu0 %v3740_v14  ;;  %1347 = vmatprep.mubr.bf16.mxu1 %v4196_v21 }
  0xbc   : > { %3213 = vmatpush3.bf16.msra.mxu0 %v3741_v52 }
  0xbd   : > { %3214 = vmatprep.subr.bf16.mxu0 %v3743_v54  ;;  %v1548_v54 = vld [vmem:[#allocation2 + $0x112] sm:$0xff] }
  0xbf   : > { %3367 = vmatmul.mubr.bf16.gmra.mrb[72].mxu0 %v4078_v63  ;;  %1348 = vmatmul.mubr.bf16.gmra.mrb[72].mxu1 %v4178_v48  ;;  %v3748_v63 = vld [vmem:[%s4776_s1 + $0x1b0] sm:$0xff]  }
  0xc0   : > { %3215 = vmatpush3.bf16.msra.mxu0 %v3744_v45  ;;  %3370 = vmatprep.mubr.bf16.mxu0 %v4092_v7  ;;  %v1525_v7 = vld [vmem:[#allocation2 + $0x2] sm:$0xff] }
  0xc1   : > { %3216 = vmatprep.subr.bf16.mxu0 %v3745_v17  ;;  %1355 = vmatprep.mubr.bf16.mxu1 %v4214_v57  ;;  %v1561_v13 = vpack.c.bf16 %v1526_v10, %v1525_v7  ;;  %v1573_v7 = vpack.c.bf16 %v1550_v1, %v1549_v20 }
  0xc4   : > { %3217 = vmatpush3.bf16.msra.mxu0 %v3746_v61 }
  0xc5   : > { %3218 = vmatprep.subr.bf16.mxu0 %v3747_v62 }
  0xc7   : > { %3371 = vmatmul.mubr.bf16.gmra.mrb[76].mxu0 %v4107_v15  ;;  %1356 = vmatmul.mubr.bf16.gmra.mrb[76].mxu1 %v4196_v21  ;;  %v3752_v15 = vld [vmem:[%s4776_s1 + $0x208] sm:$0xff]  }
  0xc8   : > { %3219 = vmatpush3.bf16.msra.mxu0 %v3748_v63  ;;  %3406 = vmatprep.mubr.bf16.mxu1 %v4059_v58  ;;  %v1531_v58 = vld [vmem:[#allocation2 + $0x4a] sm:$0xff] }
  0xc9   : > { %3220 = vmatprep.subr.bf16.mxu0 %v3749_v26  ;;  %1804 = vmatprep.mubr.bf16.mxu0 %v1562_v2  ;;  %v4250_v27 = vpack.c.bf16 %v1532_v22, %v1531_v58 }
  0xcc   : > { %3221 = vmatpush3.bf16.msra.mxu0 %v3750_v3 }
  0xcf   : > { %3407 = vmatmul.mubr.bf16.vlgmr.msra.gmra.mrb[80].mxu1 %v4080_v0  ;;  %1805 = vmatmul.mubr.bf16.vlgmr.msra.gmra.mrb[80].mxu0 %v1561_v13  ;;  %v3754_v0 = vld [vmem:[%s4776_s1 + $0x218] sm:$0xff]   ;;  %v1552_v13 = vld [vmem:[#allocation2 + $0x142] sm:$0xff] }
  0xd0   : > { %3439 = vmatpush3.bf16.msra.mxu1 %v4121_v8  ;;  %3410 = vmatprep.mubr.bf16.mxu1 %v4094_v9  ;;  %v1533_v9 = vld [vmem:[#allocation2 + $0x62] sm:$0xff]  ;;  %v1534_v8 = vld [vmem:[#allocation2 + $0x6a] sm:$0xff] }
  0xd1   : > { %1812 = vmatprep.mubr.bf16.mxu0 %v4238_v19  ;;  %3440 = vmatprep.subr.bf16.mxu1 %v3752_v15  ;;  %v4261_v30 = vpack.c.bf16 %v1534_v8, %v1533_v9  ;;  %v1574_v8 = vpack.c.bf16 %v1552_v13, %v1551_v5 }
  0xd4   : > { %3441 = vmatpush3.bf16.msra.mxu1 %v3752_v15 }
  0xd5   : > { %3442 = vmatprep.subr.bf16.mxu1 %v3753_v23 }
  0xd7   : > { %3411 = vmatmul.mubr.bf16.gmra.mrb[84].mxu1 %v4109_v16  ;;  %1813 = vmatmul.mubr.bf16.gmra.mrb[84].mxu0 %v1562_v2  ;;  %v3756_v16 = vld [vmem:[%s4776_s1 + $0x228] sm:$0xff]  }
  0xd8   : > { %3414 = vmatprep.mubr.bf16.mxu1 %v4123_v25  ;;  %1820 = vmatprep.mubr.bf16.mxu0 %v4250_v27  ;;  %v1535_v25 = vld [vmem:[#allocation2 + $0x7a] sm:$0xff] }
  0xd9   : > { %3443 = vmatpush3.bf16.msra.mxu1 %v3753_v23  ;;  %v4273_v34 = vpack.c.bf16 %v1536_v32, %v1535_v25  ;;  %v1553_v32 = vld [vmem:[#allocation2 + $0x152] sm:$0xff] }
  0xda   : > { %3444 = vmatprep.subr.bf16.mxu1 %v3754_v0 }
  0xdd   : > { %3445 = vmatpush3.bf16.msra.mxu1 %v3754_v0 }
  0xde   : > { %3446 = vmatprep.subr.bf16.mxu1 %v3755_v28 }
  0xdf   : > { %3415 = vmatmul.mubr.bf16.gmra.mrb[88].mxu1 %v4130_v29  ;;  %1821 = vmatmul.mubr.bf16.gmra.mrb[88].mxu0 %v4238_v19  ;;  %v3758_v29 = vld [vmem:[%s4776_s1 + $0x238] sm:$0xff]  }
  0xe0   : > { %3418 = vmatprep.mubr.bf16.mxu1 %v4136_v33  ;;  %1828 = vmatprep.mubr.bf16.mxu0 %v4261_v30  ;;  %v1537_v33 = vld [vmem:[#allocation2 + $0x92] sm:$0xff] }
  0xe1   : > { %3447 = vmatpush3.bf16.msra.mxu1 %v3755_v28  ;;  %v1567_v31 = vpack.c.bf16 %v1538_v36, %v1537_v33 }
  0xe2   : > { %3448 = vmatprep.subr.bf16.mxu1 %v3756_v16 }
  0xe5   : > { %3449 = vmatpush3.bf16.msra.mxu1 %v3756_v16 }
  0xe6   : > { %3450 = vmatprep.subr.bf16.mxu1 %v3757_v11 }
  0xe7   : > { %3419 = vmatmul.mubr.bf16.gmra.mrb[92].mxu1 %v4142_v35  ;;  %1829 = vmatmul.mubr.bf16.gmra.mrb[92].mxu0 %v4250_v27  ;;  %v1539_v35 = vld [vmem:[#allocation2 + $0xaa] sm:$0xff] }
  0xe8   : > { %3422 = vmatprep.mubr.bf16.mxu1 %v4148_v37  ;;  %1836 = vmatprep.mubr.bf16.mxu0 %v4273_v34  ;;  %v1568_v41 = vpack.c.bf16 %v1540_v38, %v1539_v35  ;;  %v1541_v37 = vld [vmem:[#allocation2 + $0xc2] sm:$0xff] }
  0xe9   : > { %3451 = vmatpush3.bf16.msra.mxu1 %v3757_v11  ;;  %v1569_v53 = vpack.c.bf16 %v1542_v40, %v1541_v37  ;;  %v1554_v11 = vld [vmem:[#allocation2 + $0x15a] sm:$0xff] }
  0xea   : > { %3452 = vmatprep.subr.bf16.mxu1 %v3758_v29  ;;  %v1575_v37 = vpack.c.bf16 %v1554_v11, %v1553_v32 }
  0xed   : > { %3453 = vmatpush3.bf16.msra.mxu1 %v3758_v29 }
  0xef   : > { %3423 = vmatmul.mubr.bf16.gmra.mrb[0].mxu1 %v4154_v39  ;;  %1837 = vmatmul.mubr.bf16.gmra.mrb[96].mxu0 %v4261_v30  ;;  %v1543_v39 = vld [vmem:[#allocation2 + $0xda] sm:$0xff] }
  0xf0   : > { %3426 = vmatprep.mubr.bf16.mxu1 %v4160_v42  ;;  %1844 = vmatprep.mubr.bf16.mxu0 %v1567_v31  ;;  %v1544_v42 = vld [vmem:[#allocation2 + $0xe2] sm:$0xff] }
  0xf1   : > { %v1570_v6 = vpack.c.bf16 %v1544_v42, %v1543_v39 }
  0xf7   : > { %3427 = vmatmul.mubr.bf16.gmra.mrb[4].mxu1 %v4166_v44  ;;  %1845 = vmatmul.mubr.bf16.gmra.mrb[100].mxu0 %v4273_v34 }
  0xf8   : > { %3430 = vmatprep.mubr.bf16.mxu1 %v4178_v48  ;;  %1852 = vmatprep.mubr.bf16.mxu0 %v1568_v41  ;;  %v1545_v48 = vld [vmem:[#allocation2 + $0xf2] sm:$0xff] }
  0xf9   : > { %v1571_v14 = vpack.c.bf16 %v1546_v50, %v1545_v48 }
  0xff   : > { %3431 = vmatmul.mubr.bf16.gmra.mrb[8].mxu1 %v4196_v21  ;;  %1853 = vmatmul.mubr.bf16.gmra.mrb[104].mxu0 %v1567_v31 }
 0x100   : > { %3434 = vmatprep.mubr.bf16.mxu1 %v4214_v57  ;;  %1860 = vmatprep.mubr.bf16.mxu0 %v1569_v53 }
 0x102   : > { %v2950_v43 = vpop.f32.mrb[0].mxu0 }
 0x103   : > { %v2951_v56 = vpop.f32.mrb[1].mxu0 }
 0x104   : > { %v4290_v46 = vadd.f32 %v2951_v56, %v2950_v43  ;;  %v2953_v44 = vpop.f32.mrb[2].mxu0  ;;  %v1555_v43 = vld [vmem:[#allocation2 + $0x16a] sm:$0xff]  ;;  %v1556_v56 = vld [vmem:[#allocation2 + $0x172] sm:$0xff] }
 0x105   : > { %v2954_v24 = vpop.f32.mrb[3].mxu0 }
 0x106   : > { %v4292_v47 = vadd.f32 %v2954_v24, %v2953_v44 }
 0x107   : > { %3435 = vmatmul.mubr.bf16.gmra.mrb[12].mxu1 %v3768_v60  ;;  %1861 = vmatmul.mubr.bf16.gmra.mrb[108].mxu0 %v1568_v41  ;;  %v1547_v60 = vld [vmem:[#allocation2 + $0x10a] sm:$0xff] }
 0x108   : > { %1868 = vmatprep.mubr.bf16.mxu0 %v1570_v6  ;;  %3454 = vmatprep.mubr.bf16.mxu1 %v4238_v19  ;;  %v1572_v57 = vpack.c.bf16 %v1548_v54, %v1547_v60 }
 0x10a   : > { %v2956_v18 = vpop.f32.mrb[4].mxu0 }
 0x10b   : > { %v2957_v49 = vpop.f32.mrb[5].mxu0 }
 0x10c   : > { %v4296_v51 = vadd.f32 %v2957_v49, %v2956_v18  ;;  %v2959_v4 = vpop.f32.mrb[6].mxu0 }
 0x10d   : > { %v2960_v21 = vpop.f32.mrb[7].mxu0 }
 0x10e   : > { %v4298_v52 = vadd.f32 %v2960_v21, %v2959_v4 }
 0x10f   : > { %1869 = vmatmul.mubr.bf16.gmra.mrb[112].mxu0 %v1569_v53  ;;  %3455 = vmatmul.mubr.bf16.vlgmr.msra.gmra.mrb[80].mxu1 %v4250_v27 }
 0x110   : > { %1876 = vmatprep.mubr.bf16.mxu0 %v1571_v14  ;;  %3458 = vmatprep.mubr.bf16.mxu1 %v4261_v30 }
 0x112   : > { %v2962_v55 = vpop.f32.mrb[8].mxu0 }
 0x113   : > { %v2963_v59 = vpop.f32.mrb[9].mxu0 }
 0x114   : > { %v4302_v45 = vadd.f32 %v2963_v59, %v2962_v55  ;;  %v2965_v17 = vpop.f32.mrb[10].mxu0  ;;  %v1557_v59 = vld [vmem:[#allocation2 + $0x182] sm:$0xff] }
 0x115   : > { %v2966_v61 = vpop.f32.mrb[11].mxu0 }
 0x116   : > { %v4304_v62 = vadd.f32 %v2966_v61, %v2965_v17  ;;  %v1558_v17 = vld [vmem:[#allocation2 + $0x18a] sm:$0xff] }
 0x117   : > { %1877 = vmatmul.mubr.bf16.gmra.mrb[116].mxu0 %v1570_v6  ;;  %3459 = vmatmul.mubr.bf16.gmra.mrb[84].mxu1 %v4273_v34 }
 0x118   : > { %1884 = vmatprep.mubr.bf16.mxu0 %v1572_v57  ;;  %3462 = vmatprep.mubr.bf16.mxu1 %v1567_v31 }
 0x11a   : > { %v2968_v63 = vpop.f32.mrb[12].mxu0 }
 0x11b   : > { %v2969_v26 = vpop.f32.mrb[13].mxu0 }
 0x11c   : > { %v4307_v2 = vadd.f32 %v2969_v26, %v2968_v63  ;;  %v2971_v3 = vpop.f32.mrb[14].mxu0 }
 0x11d   : > { %v2972_v10 = vpop.f32.mrb[15].mxu0 }
 0x11e   : > { %v4309_v12 = vadd.f32 %v2972_v10, %v2971_v3  ;;  %v1577_v10 = vpack.c.bf16 %v1558_v17, %v1557_v59 }
 0x11f   : > { %1885 = vmatmul.mubr.bf16.gmra.mrb[120].mxu0 %v1571_v14  ;;  %3463 = vmatmul.mubr.bf16.gmra.mrb[88].mxu1 %v1568_v41 }
 0x120   : > { %1892 = vmatprep.mubr.bf16.mxu0 %v1573_v7  ;;  %3466 = vmatprep.mubr.bf16.mxu1 %v1569_v53 }
 0x122   : > { %v2974_v19 = vpop.f32.mrb[16].mxu0  ;;  %v3086_v15 = vpop.f32.mrb[16].mxu1 }
 0x123   : > { %v2975_v58 = vpop.f32.mrb[17].mxu0  ;;  %v3087_v22 = vpop.f32.mrb[17].mxu1 }
 0x124   : > { %v4311_v23 = vadd.f32 %v2975_v58, %v2974_v19  ;;  %v4313_v27 = vadd.f32 %v3087_v22, %v3086_v15  ;;  %v2977_v0 = vpop.f32.mrb[18].mxu0  ;;  %v3089_v9 = vpop.f32.mrb[18].mxu1  ;;  %v1559_v58 = vld [vmem:[#allocation2 + $0x19a] sm:$0xff]  ;;  %v1560_v22 = vld [vmem:[#allocation2 + $0x1a2] sm:$0xff] }
 0x125   : > { %v2978_v28 = vpop.f32.mrb[19].mxu0  ;;  %v3090_v30 = vpop.f32.mrb[19].mxu1 }
 0x126   : > { %v4315_v16 = vadd.f32 %v2978_v28, %v2977_v0  ;;  %v4317_v25 = vadd.f32 %v3090_v30, %v3089_v9  ;;  %v1578_v30 = vpack.c.bf16 %v1560_v22, %v1559_v58 }
 0x127   : > { %1893 = vmatmul.mubr.bf16.gmra.mrb[124].mxu0 %v1572_v57  ;;  %3467 = vmatmul.mubr.bf16.gmra.mrb[92].mxu1 %v1570_v6 }
 0x128   : > { %1900 = vmatprep.mubr.bf16.mxu0 %v1574_v8  ;;  %3470 = vmatprep.mubr.bf16.mxu1 %v1571_v14  ;;  %v1576_v14 = vpack.c.bf16 %v1556_v56, %v1555_v43 }
 0x12a   : > { %v2980_v34 = vpop.f32.mrb[20].mxu0  ;;  %v3092_v29 = vpop.f32.mrb[20].mxu1 }
 0x12b   : > { %v2981_v33 = vpop.f32.mrb[21].mxu0  ;;  %v3093_v36 = vpop.f32.mrb[21].mxu1 }
 0x12c   : > { %v4319_v31 = vadd.f32 %v2981_v33, %v2980_v34  ;;  %v4321_v35 = vadd.f32 %v3093_v36, %v3092_v29  ;;  %v2983_v38 = vpop.f32.mrb[22].mxu0  ;;  %v3095_v41 = vpop.f32.mrb[22].mxu1 }
 0x12d   : > { %v2984_v40 = vpop.f32.mrb[23].mxu0  ;;  %v3096_v53 = vpop.f32.mrb[23].mxu1 }
 0x12e   : > { %v4323_v39 = vadd.f32 %v2984_v40, %v2983_v38  ;;  %v4325_v42 = vadd.f32 %v3096_v53, %v3095_v41 }
 0x12f   : > { %1901 = vmatmul.mubr.bf16.gmra.mrb[128].mxu0 %v1573_v7  ;;  %3471 = vmatmul.mubr.bf16.gmra.mrb[0].mxu1 %v1572_v57 }
 0x130   : > { %1908 = vmatprep.mubr.bf16.mxu0 %v1575_v37  ;;  %3474 = vmatprep.mubr.bf16.mxu1 %v1573_v7 }
 0x132   : > { %v2986_v44 = vpop.f32.mrb[24].mxu0  ;;  %v3098_v6 = vpop.f32.mrb[24].mxu1 }
 0x133   : > { %v2987_v24 = vpop.f32.mrb[25].mxu0  ;;  %v3099_v48 = vpop.f32.mrb[25].mxu1 }
 0x134   : > { %v4327_v50 = vadd.f32 %v2987_v24, %v2986_v44  ;;  %v4329_v18 = vadd.f32 %v3099_v48, %v3098_v6  ;;  %v2989_v49 = vpop.f32.mrb[26].mxu0  ;;  %v3101_v4 = vpop.f32.mrb[26].mxu1 }
 0x135   : > { %v2990_v21 = vpop.f32.mrb[27].mxu0  ;;  %v3102_v60 = vpop.f32.mrb[27].mxu1 }
 0x136   : > { %v4331_v54 = vadd.f32 %v2990_v21, %v2989_v49  ;;  %v4333_v55 = vadd.f32 %v3102_v60, %v3101_v4 }
 0x137   : > { %1909 = vmatmul.mubr.bf16.gmra.mrb[132].mxu0 %v1574_v8  ;;  %3475 = vmatmul.mubr.bf16.gmra.mrb[4].mxu1 %v1574_v8 }
 0x138   : > { %1916 = vmatprep.mubr.bf16.mxu0 %v1576_v14  ;;  %3478 = vmatprep.mubr.bf16.mxu1 %v1575_v37 }
 0x13a   : > { %v2992_v57 = vpop.f32.mrb[28].mxu0  ;;  %v3104_v61 = vpop.f32.mrb[28].mxu1 }
 0x13b   : > { %v2993_v20 = vpop.f32.mrb[29].mxu0  ;;  %v3105_v1 = vpop.f32.mrb[29].mxu1 }
 0x13c   : > { %v4335_v63 = vadd.f32 %v2993_v20, %v2992_v57  ;;  %v4337_v26 = vadd.f32 %v3105_v1, %v3104_v61  ;;  %v2995_v3 = vpop.f32.mrb[30].mxu0  ;;  %v3107_v7 = vpop.f32.mrb[30].mxu1 }
 0x13d   : > { %v2996_v5 = vpop.f32.mrb[31].mxu0  ;;  %v3108_v13 = vpop.f32.mrb[31].mxu1 }
 0x13e   : > { %v4339_v19 = vadd.f32 %v2996_v5, %v2995_v3  ;;  %v4341_v15 = vadd.f32 %v3108_v13, %v3107_v7 }
 0x13f   : > { %1917 = vmatmul.mubr.bf16.gmra.mrb[136].mxu0 %v1575_v37  ;;  %3479 = vmatmul.mubr.bf16.gmra.mrb[8].mxu1 %v1576_v14 }
 0x140   : > { %1924 = vmatprep.mubr.bf16.mxu0 %v1577_v10  ;;  %3482 = vmatprep.mubr.bf16.mxu1 %v1577_v10 }
 0x142   : > { %v2998_v0 = vpop.f32.mrb[32].mxu0  ;;  %v3110_v9 = vpop.f32.mrb[32].mxu1 }
 0x143   : > { %v2999_v8 = vpop.f32.mrb[33].mxu0  ;;  %v3111_v28 = vpop.f32.mrb[33].mxu1 }
 0x144   : > { %v3000_v32 = vadd.f32 %v2999_v8, %v2998_v0  ;;  %v4343_v11 = vadd.f32 %v3111_v28, %v3110_v9  ;;  %v3001_v34 = vpop.f32.mrb[34].mxu0  ;;  %v3113_v29 = vpop.f32.mrb[34].mxu1 }
 0x145   : > { %v3002_v33 = vpop.f32.mrb[35].mxu0  ;;  %v3114_v36 = vpop.f32.mrb[35].mxu1 }
 0x146   : > { %v3003_v38 = vadd.f32 %v3002_v33, %v3001_v34  ;;  %v4345_v41 = vadd.f32 %v3114_v36, %v3113_v29 }
 0x147   : > { %1925 = vmatmul.mubr.bf16.gmra.mrb[140].mxu0 %v1576_v14  ;;  %3483 = vmatmul.mubr.bf16.gmra.mrb[12].mxu1 %v1578_v30 }
 0x14a   : > { %v3004_v37 = vpop.f32.mrb[36].mxu0  ;;  %v3116_v40 = vpop.f32.mrb[36].mxu1 }
 0x14b   : > { %v3005_v53 = vpop.f32.mrb[37].mxu0  ;;  %v3117_v43 = vpop.f32.mrb[37].mxu1 }
 0x14c   : > { %v3006_v56 = vadd.f32 %v3005_v53, %v3004_v37  ;;  %v4347_v44 = vadd.f32 %v3117_v43, %v3116_v40  ;;  %v3007_v6 = vpop.f32.mrb[38].mxu0  ;;  %v3119_v24 = vpop.f32.mrb[38].mxu1 }
 0x14d   : > { %v3008_v48 = vpop.f32.mrb[39].mxu0  ;;  %v3120_v49 = vpop.f32.mrb[39].mxu1 }
 0x14e   : > { %v3009_v4 = vadd.f32 %v3008_v48, %v3007_v6  ;;  %v4349_v21 = vadd.f32 %v3120_v49, %v3119_v24 }
 0x152   : > { %v3010_v60 = vpop.f32.mrb[40].mxu0  ;;  %v3122_v59 = vpop.f32.mrb[40].mxu1 }
 0x153   : > { %v3011_v17 = vpop.f32.mrb[41].mxu0  ;;  %v3123_v57 = vpop.f32.mrb[41].mxu1 }
 0x154   : > { %v3012_v14 = vadd.f32 %v3011_v17, %v3010_v60  ;;  %v4351_v61 = vadd.f32 %v3123_v57, %v3122_v59  ;;  %v3013_v20 = vpop.f32.mrb[42].mxu0  ;;  %v3125_v1 = vpop.f32.mrb[42].mxu1 }
 0x155   : > { %v3014_v3 = vpop.f32.mrb[43].mxu0  ;;  %v3126_v7 = vpop.f32.mrb[43].mxu1 }
 0x156   : > { %v3015_v10 = vadd.f32 %v3014_v3, %v3013_v20  ;;  %v4353_v5 = vadd.f32 %v3126_v7, %v3125_v1 }
 0x15a   : > { %v3016_v13 = vpop.f32.mrb[44].mxu0  ;;  %v3128_v58 = vpop.f32.mrb[44].mxu1 }
 0x15b   : > { %v3017_v22 = vpop.f32.mrb[45].mxu0  ;;  %v3129_v0 = vpop.f32.mrb[45].mxu1 }
 0x15c   : > { %v3018_v9 = vadd.f32 %v3017_v22, %v3016_v13  ;;  %v4355_v8 = vadd.f32 %v3129_v0, %v3128_v58  ;;  %v3019_v28 = vpop.f32.mrb[46].mxu0  ;;  %v3131_v30 = vpop.f32.mrb[46].mxu1 }
 0x15d   : > { %v3020_v34 = vpop.f32.mrb[47].mxu0  ;;  %v3132_v29 = vpop.f32.mrb[47].mxu1 }
 0x15e   : > { %v3021_v33 = vadd.f32 %v3020_v34, %v3019_v28  ;;  %v4357_v36 = vadd.f32 %v3132_v29, %v3131_v30 }
 0x162   : > { %v3022_v37 = vpop.f32.mrb[48].mxu0  ;;  %v3134_v40 = vpop.f32.mrb[48].mxu1 }
 0x163   : > { %v3023_v53 = vpop.f32.mrb[49].mxu0  ;;  %v3135_v43 = vpop.f32.mrb[49].mxu1 }
 0x164   : > { %v4359_v6 = vadd.f32 %v3023_v53, %v3022_v37  ;;  %v3136_v24 = vadd.f32 %v3135_v43, %v3134_v40  ;;  %v3025_v48 = vpop.f32.mrb[50].mxu0  ;;  %v3137_v49 = vpop.f32.mrb[50].mxu1 }
 0x165   : > { %v3026_v60 = vpop.f32.mrb[51].mxu0  ;;  %v3138_v59 = vpop.f32.mrb[51].mxu1 }
 0x166   : > { %v4361_v17 = vadd.f32 %v3136_v24, %v3000_v32  ;;  %v4363_v57 = vadd.f32 %v3026_v60, %v3025_v48  ;;  %v3139_v20 = vadd.f32 %v3138_v59, %v3137_v49 }
 0x168   : > { %v4365_v1 = vadd.f32 %v3139_v20, %v3003_v38 }
 0x16a   : > { %v3028_v3 = vpop.f32.mrb[52].mxu0  ;;  %v3140_v7 = vpop.f32.mrb[52].mxu1 }
 0x16b   : > { %v3029_v13 = vpop.f32.mrb[53].mxu0  ;;  %v3141_v58 = vpop.f32.mrb[53].mxu1 }
 0x16c   : > { %v4367_v22 = vadd.f32 %v3029_v13, %v3028_v3  ;;  %v3142_v0 = vadd.f32 %v3141_v58, %v3140_v7  ;;  %v3031_v28 = vpop.f32.mrb[54].mxu0  ;;  %v3143_v30 = vpop.f32.mrb[54].mxu1 }
 0x16d   : > { %v3032_v34 = vpop.f32.mrb[55].mxu0  ;;  %v3144_v29 = vpop.f32.mrb[55].mxu1 }
 0x16e   : > { %v4369_v37 = vadd.f32 %v3142_v0, %v3006_v56  ;;  %v4371_v32 = vadd.f32 %v3032_v34, %v3031_v28  ;;  %v3145_v40 = vadd.f32 %v3144_v29, %v3143_v30 }
 0x170   : > { %v4373_v53 = vadd.f32 %v3145_v40, %v3009_v4 }
 0x172   : > { %4781 = vst [vmem:[#allocation3_spill] sm:$0xff] %v4373_v53  ;;  %v3034_v38 = vpop.f32.mrb[56].mxu0  ;;  %v3146_v43 = vpop.f32.mrb[56].mxu1 }
 0x173   : > { %v3035_v24 = vpop.f32.mrb[57].mxu0  ;;  %v3147_v48 = vpop.f32.mrb[57].mxu1 }
 0x174   : > { %v4375_v49 = vadd.f32 %v3035_v24, %v3034_v38  ;;  %v3148_v60 = vadd.f32 %v3147_v48, %v3146_v43  ;;  %v3037_v59 = vpop.f32.mrb[58].mxu0  ;;  %v3149_v20 = vpop.f32.mrb[58].mxu1 }
 0x175   : > { %v3038_v3 = vpop.f32.mrb[59].mxu0  ;;  %v3150_v7 = vpop.f32.mrb[59].mxu1 }
 0x176   : > { %v4377_v13 = vadd.f32 %v3148_v60, %v3012_v14  ;;  %v4379_v56 = vadd.f32 %v3038_v3, %v3037_v59  ;;  %v3151_v58 = vadd.f32 %v3150_v7, %v3149_v20 }
 0x178   : > { %v4381_v0 = vadd.f32 %v3151_v58, %v3015_v10 }
 0x17a   : > { %4782 = vst [vmem:[#allocation4_spill] sm:$0xff] %v4381_v0  ;;  %v3040_v4 = vpop.f32.mrb[60].mxu0  ;;  %v3152_v28 = vpop.f32.mrb[60].mxu1 }
 0x17b   : > { %v3041_v30 = vpop.f32.mrb[61].mxu0  ;;  %v3153_v34 = vpop.f32.mrb[61].mxu1 }
 0x17c   : > { %v4383_v29 = vadd.f32 %v3041_v30, %v3040_v4  ;;  %v3154_v40 = vadd.f32 %v3153_v34, %v3152_v28  ;;  %v3043_v38 = vpop.f32.mrb[62].mxu0  ;;  %v3155_v43 = vpop.f32.mrb[62].mxu1 }
 0x17d   : > { %v3044_v24 = vpop.f32.mrb[63].mxu0  ;;  %v3156_v48 = vpop.f32.mrb[63].mxu1 }
 0x17e   : > { %v4385_v53 = vadd.f32 %v3154_v40, %v3018_v9  ;;  %v4387_v14 = vadd.f32 %v3044_v24, %v3043_v38  ;;  %v3157_v60 = vadd.f32 %v3156_v48, %v3155_v43 }
 0x180   : > { %v4389_v59 = vadd.f32 %v3157_v60, %v3021_v33 }
 0x182   : > { %v3360_v10 = vpop.f32.mrb[64].mxu0  ;;  %v3158_v20 = vpop.f32.mrb[64].mxu1 }
 0x183   : > { %v941_v3 = vadd.f32 %v3360_v10, %v4296_v51  ;;  %v932_v7 = vpop.f32.mrb[65].mxu0  ;;  %v3159_v58 = vpop.f32.mrb[65].mxu1 }
 0x184   : > { %v933_v4 = vadd.f32 %v4290_v46, %v932_v7  ;;  %v3160_v28 = vadd.f32 %v3159_v58, %v3158_v20  ;;  %v3361_v30 = vpop.f32.mrb[66].mxu0  ;;  %v3161_v34 = vpop.f32.mrb[66].mxu1 }
 0x185   : > { %v4394_v0 = vadd.f32 %v4321_v35, %v941_v3  ;;  %v944_v9 = vadd.f32 %v3361_v30, %v4298_v52  ;;  %v935_v40 = vpop.f32.mrb[67].mxu0  ;;  %v3162_v38 = vpop.f32.mrb[67].mxu1 }
 0x186   : > { %v4398_v33 = vadd.f32 %v4313_v27, %v933_v4  ;;  %v4401_v43 = vadd.f32 %v3160_v28, %v4359_v6  ;;  %v936_v51 = vadd.f32 %v4292_v47, %v935_v40  ;;  %v3163_v24 = vadd.f32 %v3162_v38, %v3161_v34 }
 0x187   : > { %v4405_v46 = vadd.f32 %v4325_v42, %v944_v9 }
 0x188   : > { %v4408_v48 = vadd.f32 %v4317_v25, %v936_v51  ;;  %v4411_v35 = vadd.f32 %v3163_v24, %v4363_v57 }
 0x18a   : > { %v3364_v52 = vpop.f32.mrb[68].mxu0  ;;  %v3164_v60 = vpop.f32.mrb[68].mxu1 }
 0x18b   : > { %v957_v27 = vadd.f32 %v3364_v52, %v4307_v2  ;;  %v948_v10 = vpop.f32.mrb[69].mxu0  ;;  %v3165_v20 = vpop.f32.mrb[69].mxu1 }
 0x18c   : > { %v949_v6 = vadd.f32 %v4302_v45, %v948_v10  ;;  %v3166_v3 = vadd.f32 %v3165_v20, %v3164_v60  ;;  %v3365_v47 = vpop.f32.mrb[70].mxu0  ;;  %v3167_v7 = vpop.f32.mrb[70].mxu1 }
 0x18d   : > { %v4416_v42 = vadd.f32 %v4337_v26, %v957_v27  ;;  %v960_v25 = vadd.f32 %v3365_v47, %v4309_v12  ;;  %v951_v58 = vpop.f32.mrb[71].mxu0  ;;  %v3168_v4 = vpop.f32.mrb[71].mxu1 }
 0x18e   : > { %v4420_v57 = vadd.f32 %v4329_v18, %v949_v6  ;;  %v4423_v28 = vadd.f32 %v3166_v3, %v4367_v22  ;;  %v952_v2 = vadd.f32 %v4304_v62, %v951_v58  ;;  %v3169_v30 = vadd.f32 %v3168_v4, %v3167_v7 }
 0x18f   : > { %v4427_v45 = vadd.f32 %v4341_v15, %v960_v25 }
 0x190   : > { %v4430_v34 = vadd.f32 %v4333_v55, %v952_v2  ;;  %v4433_v26 = vadd.f32 %v3169_v30, %v4371_v32 }
 0x192   : > { %v3368_v12 = vpop.f32.mrb[72].mxu0  ;;  %v3170_v9 = vpop.f32.mrb[72].mxu1 }
 0x193   : > { %v973_v18 = vadd.f32 %v3368_v12, %v4319_v31  ;;  %v964_v40 = vpop.f32.mrb[73].mxu0  ;;  %v3171_v38 = vpop.f32.mrb[73].mxu1 }
 0x194   : > { %v965_v22 = vadd.f32 %v4311_v23, %v964_v40  ;;  %v3172_v51 = vadd.f32 %v3171_v38, %v3170_v9  ;;  %v3369_v62 = vpop.f32.mrb[74].mxu0  ;;  %v3173_v24 = vpop.f32.mrb[74].mxu1 }
 0x195   : > { %v4438_v15 = vadd.f32 %v4347_v44, %v973_v18  ;;  %v976_v55 = vadd.f32 %v3369_v62, %v4323_v39  ;;  %v967_v52 = vpop.f32.mrb[75].mxu0  ;;  %v3174_v60 = vpop.f32.mrb[75].mxu1 }
 0x196   : > { %v4442_v32 = vadd.f32 %v4343_v11, %v965_v22  ;;  %v4445_v27 = vadd.f32 %v3172_v51, %v4375_v49  ;;  %v968_v31 = vadd.f32 %v4315_v16, %v967_v52  ;;  %v3175_v10 = vadd.f32 %v3174_v60, %v3173_v24 }
 0x197   : > { %v4449_v23 = vadd.f32 %v4349_v21, %v976_v55 }
 0x198   : > { %v1273_v20 = vadd.f32 %v4345_v41, %v968_v31  ;;  %v4453_v44 = vadd.f32 %v3175_v10, %v4379_v56 }
 0x19a   : > { %v3372_v39 = vpop.f32.mrb[76].mxu0  ;;  %v3176_v6 = vpop.f32.mrb[76].mxu1 }
 0x19b   : > { %v989_v3 = vadd.f32 %v3372_v39, %v4335_v63  ;;  %v980_v11 = vpop.f32.mrb[77].mxu0  ;;  %v3177_v47 = vpop.f32.mrb[77].mxu1 }
 0x19c   : > { %v981_v49 = vadd.f32 %v4327_v50, %v980_v11  ;;  %v3178_v7 = vadd.f32 %v3177_v47, %v3176_v6  ;;  %v3373_v25 = vpop.f32.mrb[78].mxu0  ;;  %v3179_v16 = vpop.f32.mrb[78].mxu1 }
 0x19d   : > { %v4458_v58 = vadd.f32 %v4355_v8, %v989_v3  ;;  %v992_v21 = vadd.f32 %v3373_v25, %v4339_v19  ;;  %v983_v41 = vpop.f32.mrb[79].mxu0  ;;  %v3180_v4 = vpop.f32.mrb[79].mxu1 }
 0x19e   : > { %v1286_v56 = vadd.f32 %v4351_v61, %v981_v49  ;;  %v4463_v2 = vadd.f32 %v3178_v7, %v4383_v29  ;;  %v984_v63 = vadd.f32 %v4331_v54, %v983_v41  ;;  %v3181_v30 = vadd.f32 %v3180_v4, %v3179_v16 }
 0x19f   : > { %v4467_v50 = vadd.f32 %v4357_v36, %v992_v21 }
 0x1a0   : > { %v1289_v12 = vadd.f32 %v4353_v5, %v984_v63  ;;  %v4471_v8 = vadd.f32 %v3181_v30, %v4387_v14 }
 0x1a2   : > { %v3222_v9 = vpop.f32.mrb[80].mxu0 }
 0x1a3   : > { %v3223_v19 = vpop.f32.mrb[81].mxu0 }
 0x1a4   : > { %v3224_v18 = vadd.f32 %v3223_v19, %v3222_v9  ;;  %v3225_v40 = vpop.f32.mrb[82].mxu0 }
 0x1a5   : > { %v3226_v38 = vpop.f32.mrb[83].mxu0 }
 0x1a6   : > { %v3227_v61 = vadd.f32 %v3226_v38, %v3225_v40  ;;  %v4474_v29 = vadd.f32 %v3224_v18, %v4398_v33 }
 0x1a8   : > { %v4477_v54 = vadd.f32 %v3227_v61, %v4408_v48 }
 0x1aa   : > { %v3228_v22 = vpop.f32.mrb[84].mxu0 }
 0x1ab   : > { %v3229_v36 = vpop.f32.mrb[85].mxu0 }
 0x1ac   : > { %v3230_v51 = vadd.f32 %v3229_v36, %v3228_v22  ;;  %v3231_v62 = vpop.f32.mrb[86].mxu0 }
 0x1ad   : > { %v3232_v5 = vpop.f32.mrb[87].mxu0 }
 0x1ae   : > { %v3233_v24 = vadd.f32 %v3232_v5, %v3231_v62  ;;  %v3504_v14 = vadd.f32 %v3230_v51, %v4394_v0 }
 0x1b0   : > { %v3512_v55 = vadd.f32 %v3233_v24, %v4405_v46 }
 0x1b2   : > { %v3234_v52 = vpop.f32.mrb[88].mxu0 }
 0x1b3   : > { %v3235_v60 = vpop.f32.mrb[89].mxu0 }
 0x1b4   : > { %v3236_v31 = vadd.f32 %v3235_v60, %v3234_v52  ;;  %v3237_v10 = vpop.f32.mrb[90].mxu0 }
 0x1b5   : > { %v3238_v39 = vpop.f32.mrb[91].mxu0 }
 0x1b6   : > { %v3239_v33 = vadd.f32 %v3238_v39, %v3237_v10  ;;  %v4482_v6 = vadd.f32 %v3236_v31, %v4420_v57 }
 0x1b8   : > { %v4485_v48 = vadd.f32 %v3239_v33, %v4430_v34 }
 0x1ba   : > { %v3240_v3 = vpop.f32.mrb[92].mxu0 }
 0x1bb   : > { %v3241_v11 = vpop.f32.mrb[93].mxu0 }
 0x1bc   : > { %v3242_v47 = vadd.f32 %v3241_v11, %v3240_v3  ;;  %v3243_v49 = vpop.f32.mrb[94].mxu0 }
 0x1bd   : > { %v3244_v7 = vpop.f32.mrb[95].mxu0 }
 0x1be   : > { %v3245_v0 = vadd.f32 %v3244_v7, %v3243_v49  ;;  %v3520_v46 = vadd.f32 %v3242_v47, %v4416_v42 }
 0x1c0   : > { %v4489_v25 = vadd.f32 %v3245_v0, %v4427_v45 }
 0x1c2   : > { %v3246_v16 = vpop.f32.mrb[96].mxu0 }
 0x1c3   : > { %v3247_v21 = vpop.f32.mrb[97].mxu0 }
 0x1c4   : > { %v3248_v41 = vadd.f32 %v3247_v21, %v3246_v16  ;;  %v3249_v4 = vpop.f32.mrb[98].mxu0 }
 0x1c5   : > { %v3250_v57 = vpop.f32.mrb[99].mxu0 }
 0x1c6   : > { %v3251_v63 = vadd.f32 %v3250_v57, %v3249_v4  ;;  %v4492_v34 = vadd.f32 %v3248_v41, %v4442_v32 }
 0x1c8   : > { %v4494_v30 = vadd.f32 %v3251_v63, %v1273_v20 }
 0x1ca   : > { %v3252_v9 = vpop.f32.mrb[100].mxu0 }
 0x1cb   : > { %v3253_v19 = vpop.f32.mrb[101].mxu0 }
 0x1cc   : > { %v3254_v18 = vadd.f32 %v3253_v19, %v3252_v9  ;;  %v3255_v40 = vpop.f32.mrb[102].mxu0 }
 0x1cd   : > { %v3256_v38 = vpop.f32.mrb[103].mxu0 }
 0x1ce   : > { %v3257_v42 = vadd.f32 %v3256_v38, %v3255_v40  ;;  %v4497_v45 = vadd.f32 %v3254_v18, %v4438_v15 }
 0x1d0   : > { %v4500_v61 = vadd.f32 %v3257_v42, %v4449_v23 }
 0x1d2   : > { %v3258_v22 = vpop.f32.mrb[104].mxu0 }
 0x1d3   : > { %v3259_v36 = vpop.f32.mrb[105].mxu0 }
 0x1d4   : > { %v3260_v51 = vadd.f32 %v3259_v36, %v3258_v22  ;;  %v3261_v62 = vpop.f32.mrb[106].mxu0 }
 0x1d5   : > { %v3262_v32 = vpop.f32.mrb[107].mxu0 }
 0x1d6   : > { %v3263_v5 = vadd.f32 %v3262_v32, %v3261_v62  ;;  %v4502_v20 = vadd.f32 %v3260_v51, %v1286_v56 }
 0x1d8   : > { %v4504_v24 = vadd.f32 %v3263_v5, %v1289_v12 }
 0x1da   : > { %v3264_v52 = vpop.f32.mrb[108].mxu0 }
 0x1db   : > { %v3265_v60 = vpop.f32.mrb[109].mxu0 }
 0x1dc   : > { %v3266_v31 = vadd.f32 %v3265_v60, %v3264_v52  ;;  %v3267_v10 = vpop.f32.mrb[110].mxu0 }
 0x1dd   : > { %v3268_v39 = vpop.f32.mrb[111].mxu0 }
 0x1de   : > { %v3269_v15 = vadd.f32 %v3268_v39, %v3267_v10  ;;  %v4507_v23 = vadd.f32 %v3266_v31, %v4458_v58 }
 0x1e0   : > { %v4510_v33 = vadd.f32 %v3269_v15, %v4467_v50 }
 0x1e2   : > { %v3270_v3 = vpop.f32.mrb[112].mxu0  ;;  %v3456_v11 = vpop.f32.mrb[80].mxu1 }
 0x1e3   : > { %v4512_v47 = vadd.f32 %v3504_v14, %v3456_v11  ;;  %v3271_v56 = vpop.f32.mrb[113].mxu0  ;;  %v1967_v12 = vpop.f32.mrb[81].mxu1 }
 0x1e4   : > { %v3272_v49 = vadd.f32 %v3271_v56, %v3270_v3  ;;  %v4515_v7 = vadd.f32 %v4474_v29, %v1967_v12  ;;  %v3273_v0 = vpop.f32.mrb[114].mxu0  ;;  %v3457_v16 = vpop.f32.mrb[82].mxu1 }
 0x1e5   : > { %v4517_v21 = vadd.f32 %v3512_v55, %v3457_v16  ;;  %v3274_v41 = vpop.f32.mrb[115].mxu0  ;;  %v1970_v58 = vpop.f32.mrb[83].mxu1 }
 0x1e6   : > { %v3275_v50 = vadd.f32 %v3274_v41, %v3273_v0  ;;  %v4527_v14 = vadd.f32 %v4477_v54, %v1970_v58  ;;  %v4530_v29 = vadd.f32 %v4361_v17, %v3272_v49 }
 0x1e7   : > { %v2832_v55 = vpack.c.bf16 %v4517_v21, %v4512_v47 }
 0x1e8   : > { %v2827_v4 = vpack.c.bf16 %v4527_v14, %v4515_v7  ;;  %v2286_v57 = vadd.f32 %v4527_v14, %v4515_v7  ;;  %v4539_v63 = vadd.f32 %v4365_v1, %v3275_v50 }
 0x1e9   : > { %2919 = vst [vmem:[%s4524_s11 + $0x8] sm:$0xff] %v2832_v55  }
 0x1ea   : > { %2828 = vst [vmem:[%s4524_s11] sm:$0xff] %v2827_v4   ;;  %v2287_v54 = vadd.f32 %v4512_v47, %v2286_v57  ;;  %v3276_v9 = vpop.f32.mrb[116].mxu0  ;;  %v3460_v19 = vpop.f32.mrb[84].mxu1 }
 0x1eb   : > { %v4544_v17 = vadd.f32 %v3520_v46, %v3460_v19  ;;  %v3277_v18 = vpop.f32.mrb[117].mxu0  ;;  %v1983_v40 = vpop.f32.mrb[85].mxu1 }
 0x1ec   : > { %v3278_v38 = vadd.f32 %v3277_v18, %v3276_v9  ;;  %v4547_v42 = vadd.f32 %v4482_v6, %v1983_v40  ;;  %v2288_v22 = vadd.f32 %v4517_v21, %v2287_v54  ;;  %v3279_v1 = vpop.f32.mrb[118].mxu0  ;;  %v3461_v36 = vpop.f32.mrb[86].mxu1 }
 0x1ed   : > { %v4551_v51 = vadd.f32 %v4489_v25, %v3461_v36  ;;  %v3280_v62 = vpop.f32.mrb[119].mxu0  ;;  %v1986_v32 = vpop.f32.mrb[87].mxu1  ;;  %v4783_v25 = vld [vmem:[#allocation3_spill] sm:$0xff] }
 0x1ee   : > { %v2289_v46 = vadd.f32 %v4547_v42, %v2288_v22  ;;  %v3281_v5 = vadd.f32 %v3280_v62, %v3279_v1  ;;  %v4555_v52 = vadd.f32 %v4485_v48, %v1986_v32  ;;  %v3567_v60 = vadd.f32 %v4369_v37, %v3278_v38 }
 0x1ef   : > { %v2842_v6 = vpack.c.bf16 %v4551_v51, %v4544_v17 }
 0x1f0   : > { %v2837_v31 = vpack.c.bf16 %v4555_v52, %v4547_v42  ;;  %v2290_v10 = vadd.f32 %v4555_v52, %v2289_v46  ;;  %v3573_v39 = vadd.f32 %v4783_v25, %v3281_v5 }
 0x1f1   : > { %2921 = vst [vmem:[%s4524_s11 + $0x18] sm:$0xff] %v2842_v6  }
 0x1f2   : > { %2920 = vst [vmem:[%s4524_s11 + $0x10] sm:$0xff] %v2837_v31   ;;  %v2291_v15 = vadd.f32 %v4544_v17, %v2290_v10  ;;  %v3282_v3 = vpop.f32.mrb[120].mxu0  ;;  %v3464_v11 = vpop.f32.mrb[88].mxu1 }
 0x1f3   : > { %v4568_v48 = vadd.f32 %v4497_v45, %v3464_v11  ;;  %v3283_v37 = vpop.f32.mrb[121].mxu0  ;;  %v1999_v56 = vpop.f32.mrb[89].mxu1 }
 0x1f4   : > { %v3284_v12 = vadd.f32 %v3283_v37, %v3282_v3  ;;  %v4571_v49 = vadd.f32 %v4492_v34, %v1999_v56  ;;  %v2292_v0 = vadd.f32 %v4551_v51, %v2291_v15  ;;  %v3285_v16 = vpop.f32.mrb[122].mxu0  ;;  %v3465_v41 = vpop.f32.mrb[90].mxu1 }
 0x1f5   : > { %v4575_v58 = vadd.f32 %v4500_v61, %v3465_v41  ;;  %v3286_v50 = vpop.f32.mrb[123].mxu0  ;;  %v2002_v55 = vpop.f32.mrb[91].mxu1  ;;  %v4784_v61 = vld [vmem:[#allocation4_spill] sm:$0xff] }
 0x1f6   : > { %v2293_v45 = vadd.f32 %v4571_v49, %v2292_v0  ;;  %v3287_v4 = vadd.f32 %v3286_v50, %v3285_v16  ;;  %v4579_v57 = vadd.f32 %v4494_v30, %v2002_v55  ;;  %v3582_v54 = vadd.f32 %v4377_v13, %v3284_v12 }
 0x1f7   : > { %v2852_v34 = vpack.c.bf16 %v4575_v58, %v4568_v48 }
 0x1f8   : > { %v2847_v9 = vpack.c.bf16 %v4579_v57, %v4571_v49  ;;  %v2294_v19 = vadd.f32 %v4579_v57, %v2293_v45  ;;  %v4588_v18 = vadd.f32 %v4784_v61, %v3287_v4 }
 0x1f9   : > { %2923 = vst [vmem:[%s4524_s11 + $0x28] sm:$0xff] %v2852_v34  }
 0x1fa   : > { %2922 = vst [vmem:[%s4524_s11 + $0x20] sm:$0xff] %v2847_v9   ;;  %v2295_v40 = vadd.f32 %v4568_v48, %v2294_v19  ;;  %v3288_v38 = vpop.f32.mrb[124].mxu0  ;;  %v3468_v30 = vpop.f32.mrb[92].mxu1 }
 0x1fb   : > { %v4594_v22 = vadd.f32 %v4507_v23, %v3468_v30  ;;  %v3289_v13 = vpop.f32.mrb[125].mxu0  ;;  %v2015_v1 = vpop.f32.mrb[93].mxu1 }
 0x1fc   : > { %v3290_v36 = vadd.f32 %v3289_v13, %v3288_v38  ;;  %v4597_v62 = vadd.f32 %v4502_v20, %v2015_v1  ;;  %v2296_v32 = vadd.f32 %v4575_v58, %v2295_v40  ;;  %v3291_v46 = vpop.f32.mrb[126].mxu0  ;;  %v3469_v5 = vpop.f32.mrb[94].mxu1 }
 0x1fd   : > { %v4601_v6 = vadd.f32 %v4510_v33, %v3469_v5  ;;  %v3292_v31 = vpop.f32.mrb[127].mxu0  ;;  %v2018_v10 = vpop.f32.mrb[95].mxu1 }
 0x1fe   : > { %v2297_v23 = vadd.f32 %v4597_v62, %v2296_v32  ;;  %v3293_v25 = vadd.f32 %v3292_v31, %v3291_v46  ;;  %v4605_v15 = vadd.f32 %v4504_v24, %v2018_v10  ;;  %v3579_v3 = vadd.f32 %v4385_v53, %v3290_v36 }
 0x1ff   : > { %v2862_v20 = vpack.c.bf16 %v4601_v6, %v4594_v22 }
 0x200   : > { %v2857_v11 = vpack.c.bf16 %v4605_v15, %v4597_v62  ;;  %v2298_v37 = vadd.f32 %v4605_v15, %v2297_v23  ;;  %v3585_v33 = vadd.f32 %v4389_v59, %v3293_v25 }
 0x201   : > { %2925 = vst [vmem:[%s4524_s11 + $0x38] sm:$0xff] %v2862_v20  }
 0x202   : > { %2924 = vst [vmem:[%s4524_s11 + $0x30] sm:$0xff] %v2857_v11   ;;  %v2299_v56 = vadd.f32 %v4594_v22, %v2298_v37  ;;  %v3294_v12 = vpop.f32.mrb[128].mxu0  ;;  %v3472_v0 = vpop.f32.mrb[0].mxu1 }
 0x203   : > { %v4617_v24 = vadd.f32 %v3567_v60, %v3472_v0  ;;  %v3295_v16 = vpop.f32.mrb[129].mxu0  ;;  %v2031_v53 = vpop.f32.mrb[1].mxu1 }
 0x204   : > { %v3296_v41 = vadd.f32 %v3295_v16, %v3294_v12  ;;  %v4620_v50 = vadd.f32 %v4530_v29, %v2031_v53  ;;  %v2300_v55 = vadd.f32 %v4601_v6, %v2299_v56  ;;  %v3297_v45 = vpop.f32.mrb[130].mxu0  ;;  %v3473_v59 = vpop.f32.mrb[2].mxu1 }
 0x205   : > { %v4623_v4 = vadd.f32 %v3573_v39, %v3473_v59  ;;  %v3298_v34 = vpop.f32.mrb[131].mxu0  ;;  %v2034_v9 = vpop.f32.mrb[3].mxu1 }
 0x206   : > { %v2301_v19 = vadd.f32 %v4620_v50, %v2300_v55  ;;  %v3299_v60 = vadd.f32 %v3298_v34, %v3297_v45  ;;  %v4627_v61 = vadd.f32 %v4539_v63, %v2034_v9  ;;  %v3594_v40 = vadd.f32 %v4401_v43, %v3296_v41 }
 0x207   : > { %v2872_v29 = vpack.c.bf16 %v4623_v4, %v4617_v24 }
 0x208   : > { %v2867_v38 = vpack.c.bf16 %v4627_v61, %v4620_v50  ;;  %v2302_v30 = vadd.f32 %v4627_v61, %v2301_v19  ;;  %v3600_v39 = vadd.f32 %v4411_v35, %v3299_v60 }
 0x209   : > { %2927 = vst [vmem:[%s4524_s11 + $0x48] sm:$0xff] %v2872_v29  }
 0x20a   : > { %2926 = vst [vmem:[%s4524_s11 + $0x40] sm:$0xff] %v2867_v38   ;;  %v2303_v13 = vadd.f32 %v4617_v24, %v2302_v30  ;;  %v3300_v1 = vpop.f32.mrb[132].mxu0  ;;  %v3476_v36 = vpop.f32.mrb[4].mxu1 }
 0x20b   : > { %v4639_v63 = vadd.f32 %v3579_v3, %v3476_v36  ;;  %v3301_v32 = vpop.f32.mrb[133].mxu0  ;;  %v2047_v43 = vpop.f32.mrb[5].mxu1 }
 0x20c   : > { %v3302_v46 = vadd.f32 %v3301_v32, %v3300_v1  ;;  %v4641_v5 = vadd.f32 %v3582_v54, %v2047_v43  ;;  %v2304_v31 = vadd.f32 %v4623_v4, %v2303_v13  ;;  %v3303_v10 = vpop.f32.mrb[134].mxu0  ;;  %v3477_v23 = vpop.f32.mrb[6].mxu1 }
 0x20d   : > { %v4644_v35 = vadd.f32 %v3585_v33, %v3477_v23  ;;  %v3304_v25 = vpop.f32.mrb[135].mxu0  ;;  %v2050_v20 = vpop.f32.mrb[7].mxu1 }
 0x20e   : > { %v2305_v11 = vadd.f32 %v4641_v5, %v2304_v31  ;;  %v3305_v37 = vadd.f32 %v3304_v25, %v3303_v10  ;;  %v4648_v3 = vadd.f32 %v4588_v18, %v2050_v20  ;;  %v3591_v56 = vadd.f32 %v4423_v28, %v3302_v46 }
 0x20f   : > { %v2882_v54 = vpack.c.bf16 %v4644_v35, %v4639_v63 }
 0x210   : > { %v2877_v12 = vpack.c.bf16 %v4648_v3, %v4641_v5  ;;  %v2306_v0 = vadd.f32 %v4648_v3, %v2305_v11  ;;  %v3597_v33 = vadd.f32 %v4433_v26, %v3305_v37 }
 0x211   : > { %2929 = vst [vmem:[%s4524_s11 + $0x58] sm:$0xff] %v2882_v54  }
 0x212   : > { %2928 = vst [vmem:[%s4524_s11 + $0x50] sm:$0xff] %v2877_v12   ;;  %v2307_v16 = vadd.f32 %v4639_v63, %v2306_v0  ;;  %v3306_v53 = vpop.f32.mrb[136].mxu0  ;;  %v3480_v41 = vpop.f32.mrb[8].mxu1 }
 0x213   : > { %v4660_v18 = vadd.f32 %v3591_v56, %v3480_v41  ;;  %v3307_v55 = vpop.f32.mrb[137].mxu0  ;;  %v2063_v28 = vpop.f32.mrb[9].mxu1 }
 0x214   : > { %v3308_v45 = vadd.f32 %v3307_v55, %v3306_v53  ;;  %v4662_v59 = vadd.f32 %v3594_v40, %v2063_v28  ;;  %v2308_v34 = vadd.f32 %v4644_v35, %v2307_v16  ;;  %v3309_v9 = vpop.f32.mrb[138].mxu0  ;;  %v3481_v19 = vpop.f32.mrb[10].mxu1 }
 0x215   : > { %v4665_v26 = vadd.f32 %v3597_v33, %v3481_v19  ;;  %v3310_v60 = vpop.f32.mrb[139].mxu0  ;;  %v2066_v29 = vpop.f32.mrb[11].mxu1 }
 0x216   : > { %v2309_v38 = vadd.f32 %v4662_v59, %v2308_v34  ;;  %v3311_v30 = vadd.f32 %v3310_v60, %v3309_v9  ;;  %v4668_v13 = vadd.f32 %v3600_v39, %v2066_v29  ;;  %v3606_v1 = vadd.f32 %v4445_v27, %v3308_v45 }
 0x217   : > { %v2892_v40 = vpack.c.bf16 %v4665_v26, %v4660_v18 }
 0x218   : > { %v2887_v36 = vpack.c.bf16 %v4668_v13, %v4662_v59  ;;  %v2310_v32 = vadd.f32 %v4668_v13, %v2309_v38  ;;  %v3612_v43 = vadd.f32 %v4453_v44, %v3311_v30 }
 0x219   : > { %2931 = vst [vmem:[%s4524_s11 + $0x68] sm:$0xff] %v2892_v40  }
 0x21a   : > { %2930 = vst [vmem:[%s4524_s11 + $0x60] sm:$0xff] %v2887_v36   ;;  %v2311_v46 = vadd.f32 %v4660_v18, %v2310_v32  ;;  %v3312_v31 = vpop.f32.mrb[140].mxu0  ;;  %v3484_v10 = vpop.f32.mrb[12].mxu1 }
 0x21b   : > { %v3313_v39 = vpop.f32.mrb[141].mxu0  ;;  %v2079_v23 = vpop.f32.mrb[13].mxu1 }
 0x21c   : > { %v3314_v25 = vadd.f32 %v3313_v39, %v3312_v31  ;;  %v4680_v27 = vadd.f32 %v3606_v1, %v2079_v23  ;;  %v2312_v20 = vadd.f32 %v4665_v26, %v2311_v46  ;;  %v3315_v11 = vpop.f32.mrb[142].mxu0  ;;  %v3485_v37 = vpop.f32.mrb[14].mxu1 }
 0x21d   : > { %v3316_v56 = vpop.f32.mrb[143].mxu0  ;;  %v2082_v54 = vpop.f32.mrb[15].mxu1 }
 0x21e   : > { %v3603_v44 = vadd.f32 %v4463_v2, %v3314_v25  ;;  %v2313_v12 = vadd.f32 %v4680_v27, %v2312_v20  ;;  %v3317_v0 = vadd.f32 %v3316_v56, %v3315_v11  ;;  %v4685_v33 = vadd.f32 %v3612_v43, %v2082_v54 }
 0x220   : > { %v4687_v16 = vadd.f32 %v3603_v44, %v3484_v10  ;;  %v3609_v53 = vadd.f32 %v4471_v8, %v3317_v0  ;;  %v2897_v41 = vpack.c.bf16 %v4685_v33, %v4680_v27  ;;  %v2314_v55 = vadd.f32 %v4685_v33, %v2313_v12 }
 0x222   : > { %v4693_v28 = vadd.f32 %v3609_v53, %v3485_v37  ;;  %2932 = vst [vmem:[%s4524_s11 + $0x70] sm:$0xff] %v2897_v41   ;;  %v2315_v45 = vadd.f32 %v4687_v16, %v2314_v55 }
 0x224   : > { %v2902_v2 = vpack.c.bf16 %v4693_v28, %v4687_v16  ;;  %v2316_v34 = vadd.f32 %v4693_v28, %v2315_v45 }
 0x226   : > { %2933 = vst [vmem:[%s4524_s11 + $0x78] sm:$0xff] %v2902_v2   ;;  %v2317_v9 = vrot.slane %v2316_v34, 4 }
 0x228   : > { %v2318_v19 = vadd.f32 %v2317_v9, %v2316_v34 }
 0x22a   : > { %v2319_v60 = vrot.slane %v2318_v19, 2 }
 0x22c   : > { %v2320_v8 = vadd.f32 %v2319_v60, %v2318_v19 }
 0x22e   : > { %v2321_v29 = vrot.slane %v2320_v8, 1 }
 0x230   : > { %v2322_v38 = vadd.f32 %v2321_v29, %v2320_v8 }
 0x232   : > { %v4701_v30 = vmul.f32 0.00390625, %v2322_v38 }
 0x234   : > { %v2324_v1 = vsub.f32 %v4515_v7, %v4701_v30  ;;  %v2325_v40 = vsub.f32 %v4527_v14, %v4701_v30  ;;  %v2326_v36 = vsub.f32 %v4512_v47, %v4701_v30  ;;  %v2327_v46 = vsub.f32 %v4517_v21, %v4701_v30 }
 0x235   : > { %v2328_v31 = vsub.f32 %v4547_v42, %v4701_v30  ;;  %v2329_v23 = vsub.f32 %v4555_v52, %v4701_v30  ;;  %v2330_v14 = vsub.f32 %v4544_v17, %v4701_v30  ;;  %v2331_v11 = vsub.f32 %v4551_v51, %v4701_v30 }
 0x236   : > { %v2356_v32 = vmul.f32 %v2324_v1, %v2324_v1  ;;  %v2357_v43 = vmul.f32 %v2325_v40, %v2325_v40  ;;  %v2358_v10 = vmul.f32 %v2326_v36, %v2326_v36  ;;  %v2359_v7 = vmul.f32 %v2327_v46, %v2327_v46 }
 0x237   : > { %v2360_v20 = vmul.f32 %v2328_v31, %v2328_v31  ;;  %v2361_v37 = vmul.f32 %v2329_v23, %v2329_v23  ;;  %v2332_v42 = vsub.f32 %v4571_v49, %v4701_v30  ;;  %v2362_v56 = vmul.f32 %v2330_v14, %v2330_v14 }
 0x238   : > { %v2388_v39 = vadd.f32 %v2357_v43, %v2356_v32  ;;  %v2333_v52 = vsub.f32 %v4579_v57, %v4701_v30  ;;  %v2363_v44 = vmul.f32 %v2331_v11, %v2331_v11  ;;  %v2334_v17 = vsub.f32 %v4568_v48, %v4701_v30 }
 0x239   : > { %v2364_v0 = vmul.f32 %v2332_v42, %v2332_v42  ;;  %v2335_v51 = vsub.f32 %v4575_v58, %v4701_v30  ;;  %v2336_v49 = vsub.f32 %v4597_v62, %v4701_v30  ;;  %v2337_v57 = vsub.f32 %v4605_v15, %v4701_v30 }
 0x23a   : > { %v2389_v25 = vadd.f32 %v2388_v39, %v2358_v10  ;;  %v2365_v41 = vmul.f32 %v2333_v52, %v2333_v52  ;;  %v2366_v45 = vmul.f32 %v2334_v17, %v2334_v17  ;;  %v2338_v48 = vsub.f32 %v4594_v22, %v4701_v30 }
 0x23b   : > { %v2367_v34 = vmul.f32 %v2335_v51, %v2335_v51  ;;  %v2368_v19 = vmul.f32 %v2336_v49, %v2336_v49  ;;  %v2339_v58 = vsub.f32 %v4601_v6, %v4701_v30  ;;  %v2369_v8 = vmul.f32 %v2337_v57, %v2337_v57 }
 0x23c   : > { %v2390_v47 = vadd.f32 %v2389_v25, %v2359_v7  ;;  %v2340_v62 = vsub.f32 %v4620_v50, %v4701_v30  ;;  %v2370_v38 = vmul.f32 %v2338_v48, %v2338_v48  ;;  %v2341_v15 = vsub.f32 %v4627_v61, %v4701_v30 }
 0x23d   : > { %v2371_v40 = vmul.f32 %v2339_v58, %v2339_v58  ;;  %v2342_v22 = vsub.f32 %v4617_v24, %v4701_v30  ;;  %v2343_v6 = vsub.f32 %v4623_v4, %v4701_v30  ;;  %v2344_v50 = vsub.f32 %v4641_v5, %v4701_v30 }
 0x23e   : > { %v2391_v21 = vadd.f32 %v2390_v47, %v2360_v20  ;;  %v2372_v32 = vmul.f32 %v2340_v62, %v2340_v62  ;;  %v2373_v46 = vmul.f32 %v2341_v15, %v2341_v15  ;;  %v2345_v61 = vsub.f32 %v4648_v3, %v4701_v30 }
 0x23f   : > { %v2374_v10 = vmul.f32 %v2342_v22, %v2342_v22  ;;  %v2375_v23 = vmul.f32 %v2343_v6, %v2343_v6  ;;  %v2346_v24 = vsub.f32 %v4639_v63, %v4701_v30  ;;  %v2376_v25 = vmul.f32 %v2344_v50, %v2344_v50 }
 0x240   : > { %v2392_v54 = vadd.f32 %v2391_v21, %v2361_v37  ;;  %v2347_v4 = vsub.f32 %v4644_v35, %v4701_v30  ;;  %v2377_v20 = vmul.f32 %v2345_v61, %v2345_v61  ;;  %v2348_v5 = vsub.f32 %v4662_v59, %v4701_v30 }
 0x241   : > { %v2378_v11 = vmul.f32 %v2346_v24, %v2346_v24  ;;  %v2349_v3 = vsub.f32 %v4668_v13, %v4701_v30  ;;  %v2350_v63 = vsub.f32 %v4660_v18, %v4701_v30  ;;  %v2351_v35 = vsub.f32 %v4665_v26, %v4701_v30 }
 0x242   : > { %v2393_v12 = vadd.f32 %v2392_v54, %v2362_v56  ;;  %v2379_v21 = vmul.f32 %v2347_v4, %v2347_v4  ;;  %v2380_v56 = vmul.f32 %v2348_v5, %v2348_v5  ;;  %v2352_v59 = vsub.f32 %v4680_v27, %v4701_v30 }
 0x243   : > { %v2381_v52 = vmul.f32 %v2349_v3, %v2349_v3  ;;  %v2353_v13 = vsub.f32 %v4685_v33, %v4701_v30  ;;  %v2354_v18 = vsub.f32 %v4687_v16, %v4701_v30  ;;  %v2355_v26 = vsub.f32 %v4693_v28, %v4701_v30 }
 0x244   : > { %v2394_v53 = vadd.f32 %v2393_v12, %v2363_v44  ;;  %v2382_v12 = vmul.f32 %v2350_v63, %v2350_v63  ;;  %v2384_v51 = vmul.f32 %v2352_v59, %v2352_v59 }
 0x246   : > { %v2395_v55 = vadd.f32 %v2394_v53, %v2364_v0  ;;  %v2383_v0 = vmul.f32 %v2351_v35, %v2351_v35 }
 0x248   : > { %v2396_v2 = vadd.f32 %v2395_v55, %v2365_v41  ;;  %v2385_v55 = vmul.f32 %v2353_v13, %v2353_v13 }
 0x24a   : > { %v2397_v9 = vadd.f32 %v2396_v2, %v2366_v45  ;;  %v2386_v45 = vmul.f32 %v2354_v18, %v2354_v18  ;;  %v2387_v2 = vmul.f32 %v2355_v26, %v2355_v26 }
 0x24c   : > { %v2398_v60 = vadd.f32 %v2397_v9, %v2367_v34 }
 0x24e   : > { %v2399_v29 = vadd.f32 %v2398_v60, %v2368_v19 }
 0x250   : > { %v2400_v1 = vadd.f32 %v2399_v29, %v2369_v8 }
 0x252   : > { %v2401_v36 = vadd.f32 %v2400_v1, %v2370_v38 }
 0x254   : > { %v2402_v43 = vadd.f32 %v2401_v36, %v2371_v40 }
 0x256   : > { %v2403_v31 = vadd.f32 %v2402_v43, %v2372_v32 }
 0x258   : > { %v2404_v39 = vadd.f32 %v2403_v31, %v2373_v46 }
 0x25a   : > { %v2405_v7 = vadd.f32 %v2404_v39, %v2374_v10 }
 0x25c   : > { %v2406_v14 = vadd.f32 %v2405_v7, %v2375_v23 }
 0x25e   : > { %v2407_v47 = vadd.f32 %v2406_v14, %v2376_v25 }
 0x260   : > { %v2408_v37 = vadd.f32 %v2407_v47, %v2377_v20 }
 0x262   : > { %v2409_v42 = vadd.f32 %v2408_v37, %v2378_v11 }
 0x264   : > { %v2410_v54 = vadd.f32 %v2409_v42, %v2379_v21 }
 0x266   : > { %v2411_v44 = vadd.f32 %v2410_v54, %v2380_v56 }
 0x268   : > { %v2412_v17 = vadd.f32 %v2411_v44, %v2381_v52 }
 0x26a   : > { %v2413_v53 = vadd.f32 %v2412_v17, %v2382_v12 }
 0x26c   : > { %v2414_v41 = vadd.f32 %v2413_v53, %v2383_v0 }
 0x26e   : > { %v2415_v49 = vadd.f32 %v2414_v41, %v2384_v51 }
 0x270   : > { %v2416_v27 = vadd.f32 %v2415_v49, %v2385_v55 }
 0x272   : > { %v2417_v57 = vadd.f32 %v2416_v27, %v2386_v45 }
 0x274   : > { %v2418_v34 = vadd.f32 %v2417_v57, %v2387_v2 }
 0x276   : > { %v2419_v9 = vrot.slane %v2418_v34, 4 }
 0x278   : > { %v2420_v33 = vadd.f32 %v2419_v9, %v2418_v34 }
 0x27a   : > { %v2421_v48 = vrot.slane %v2420_v33, 2 }
 0x27c   : > { %v2422_v19 = vadd.f32 %v2421_v48, %v2420_v33 }
 0x27e   : > { %v2423_v60 = vrot.slane %v2422_v19, 1 }
 0x280   : > { %v2424_v16 = vadd.f32 %v2423_v60, %v2422_v19 }
 0x282   : > { %v2426_v28 = vsel %vm2425_vm0, %v4701_v30, %v2424_v16 }
 0x283   : > { %2427 = vst [vmem:[%s235_s26] sm:$0x3] %v2426_v28 }
 0x284 PF: > { %s16_s18 = sadd.s32 1, %s3765_s18  }
 0x285   : > { %p13_p4 = scmp.ge.s32.totalorder %s16_s18, 4  }
 0x287   :  { %15 = sbr.rel (!%p13_p4) target bundleno = 1 (0x1), region = 81 }

// kernel: basic_block_forward.4
= control target key start
LH: loop header
LB: loop body
LE: loop exit
PB: predicated region body
PF: predicated region fallthrough
CT: control target
= control target key end

     0   :  { %s3895_s18 = smov 0   ;;  %s4957_s0 = inlined_call_operand.vmem [shape: bf16[2,16,16,128], index: 0, kind: input, shape index: {}]   ;;  %s4958_s1 = inlined_call_operand.vmem [shape: bf16[3,384,128], index: 1, kind: input, shape index: {}]   ;;  %s4959_s2 = inlined_call_operand.vmem [shape: f32[1,128], index: 2, kind: input, shape index: {}]   ;;  %s4960_s3 = inlined_call_operand.vmem [shape: f32[1,128], index: 3, kind: input, shape index: {}]   ;;  %s4961_s4 = inlined_call_operand.vmem [shape: bf16[2,16,16,128], index: 4, kind: output, shape index: {0}]   ;;  %s4962_s5 = inlined_call_operand.vmem [shape: f32[2,2,128], index: 5, kind: output, shape index: {1}]  }
   0x1 LB: > { %s2624_s19 = sadd.s32 4294967295, %s3861_s18   ;;  %p2628_p0 = scmp.ge.s32.totalorder %s3861_s18, 1  ;;  %s3861_s18 = sphi %s3895_s18, %s16_s18  }
   0x2   : > { %p190_p1 = scmp.lt.s32.totalorder %s3861_s18, 3 }
   0x4   : > { %p191_p2 = pnand %p2628_p0, %p190_p1 }
   0x6   : > { %194 = sbr.rel (%p191_p2) target bundleno = 646 (0x286), region = 36 }
   0xd   : > { %v3783_v0 = vld [vmem:[%s4958_s1 + $0x100] sm:$0xff]   ;;  %v3863_v3 = vmov 0.0   ;;  %v3786_v4 = vld [vmem:[%s4958_s1 + $0x108] sm:$0xff]   ;;  %v3789_v7 = vld [vmem:[%s4958_s1 + $0x110] sm:$0xff]   ;;  %p222_p3 = scmp.lt.s32.totalorder %s2624_s19, 1  ;;  %vm2535_vm0 = vcmask 1040384  }
   0xe   : > { %v3909_v1 = vld [vmem:[%s4958_s1 + $0x140] sm:$0xff]   ;;  %3046 = vmatprep.subr.bf16.mxu0 %v3783_v0  ;;  %414 = vst [vmem:[#allocation2 + $0x18] sm:$0xff] %v3863_v3  ;;  %415 = vst [vmem:[#allocation2 + $0x20] sm:$0xff] %v3863_v3  ;;  %v3922_v5 = vld [vmem:[%s4958_s1 + $0x148] sm:$0xff]  }
   0xf   : > { %v3785_v2 = vld [vmem:[%s4958_s1 + $0xc0] sm:$0xff]   ;;  %416 = vst [vmem:[#allocation2 + $0x28] sm:$0x3] %v3863_v3  ;;  %411 = vst [vmem:[#allocation2] sm:$0xff] %v3863_v3  ;;  %3598 = vmatprep.subr.bf16.mxu1 %v3909_v1  ;;  %v3788_v6 = vld [vmem:[%s4958_s1 + $0xc8] sm:$0xff]   ;;  %s4966_s19 = smov (!%p222_p3, %s2624_s19), 1 }
  0x10   : > { %412 = vst [vmem:[#allocation2 + $0x8] sm:$0xff] %v3863_v3  ;;  %413 = vst [vmem:[#allocation2 + $0x10] sm:$0x3] %v3863_v3  ;;  %3047 = vmatpush3.bf16.msra.mxu0 %v3785_v2  ;;  %3606 = vmatpush3.bf16.msra.mxu1 %v3909_v1  ;;  %v3934_v8 = vld [vmem:[%s4958_s1 + $0x150] sm:$0xff]   ;;  %v3792_v10 = vld [vmem:[%s4958_s1 + $0x118] sm:$0xff]   ;;  %s2838_s6 = sshll.u32 %s4966_s19, 7 }
  0x11   : > { %417 = vst [vmem:[#allocation2 + $0x30] sm:$0xff] %v3863_v3  ;;  %418 = vst [vmem:[#allocation2 + $0x38] sm:$0xff] %v3863_v3  ;;  %3048 = vmatprep.subr.bf16.mxu0 %v3786_v4  ;;  %3599 = vmatprep.subr.bf16.mxu1 %v3922_v5  ;;  %v3791_v9 = vld [vmem:[%s4958_s1 + $0xd0] sm:$0xff]   ;;  %v3947_v11 = vld [vmem:[%s4958_s1 + $0x158] sm:$0xff]   ;;  %s4000_s15 = scalar_lea.vmem %s4957_s0, %s2838_s6  ;;  %s4700_s17 = scalar_lea.vmem %s4961_s4, %s2838_s6 }
  0x12   : > { %419 = vst [vmem:[#allocation2 + $0x40] sm:$0x3] %v3863_v3  ;;  %420 = vst [vmem:[#allocation2 + $0x48] sm:$0xff] %v3863_v3  ;;  %v3794_v12 = vld [vmem:[%s4958_s1 + $0xd8] sm:$0xff]   ;;  %v3795_v13 = vld [vmem:[%s4958_s1 + $0x120] sm:$0xff]   ;;  %s2633_s6 = sshll.u32 %s4966_s19, 1 }
  0x13   : > { %421 = vst [vmem:[#allocation2 + $0x50] sm:$0xff] %v3863_v3  ;;  %422 = vst [vmem:[#allocation2 + $0x58] sm:$0x3] %v3863_v3  ;;  %v3962_v14 = vld [vmem:[%s4958_s1 + $0x160] sm:$0xff]   ;;  %v3798_v16 = vld [vmem:[%s4958_s1 + $0x128] sm:$0xff]   ;;  %s235_s22 = scalar_lea.vmem %s4962_s5, %s2633_s6 }
  0x14   : > { %423 = vst [vmem:[#allocation2 + $0x60] sm:$0xff] %v3863_v3  ;;  %424 = vst [vmem:[#allocation2 + $0x68] sm:$0xff] %v3863_v3  ;;  %3049 = vmatpush3.bf16.msra.mxu0 %v3788_v6  ;;  %3607 = vmatpush3.bf16.msra.mxu1 %v3922_v5  ;;  %v3797_v15 = vld [vmem:[%s4958_s1 + $0xe0] sm:$0xff]   ;;  %v3979_v17 = vld [vmem:[%s4958_s1 + $0x168] sm:$0xff]  }
  0x15   : > { %425 = vst [vmem:[#allocation2 + $0x70] sm:$0x3] %v3863_v3  ;;  %426 = vst [vmem:[#allocation2 + $0x78] sm:$0xff] %v3863_v3  ;;  %3050 = vmatprep.subr.bf16.mxu0 %v3789_v7  ;;  %3600 = vmatprep.subr.bf16.mxu1 %v3934_v8  ;;  %v3800_v18 = vld [vmem:[%s4958_s1 + $0xe8] sm:$0xff]   ;;  %v3801_v19 = vld [vmem:[%s4958_s1 + $0x130] sm:$0xff]  }
  0x16   : > { %427 = vst [vmem:[#allocation2 + $0x80] sm:$0xff] %v3863_v3  ;;  %428 = vst [vmem:[#allocation2 + $0x88] sm:$0x3] %v3863_v3  ;;  %v3993_v20 = vld [vmem:[%s4958_s1 + $0x170] sm:$0xff]   ;;  %v3804_v22 = vld [vmem:[%s4958_s1 + $0x138] sm:$0xff]  }
  0x17   : > { %429 = vst [vmem:[#allocation2 + $0x90] sm:$0xff] %v3863_v3  ;;  %430 = vst [vmem:[#allocation2 + $0x98] sm:$0xff] %v3863_v3  ;;  %v3803_v21 = vld [vmem:[%s4958_s1 + $0xf0] sm:$0xff]   ;;  %v4012_v23 = vld [vmem:[%s4958_s1 + $0x178] sm:$0xff]  }
  0x18   : > { %431 = vst [vmem:[#allocation2 + $0xa0] sm:$0x3] %v3863_v3  ;;  %432 = vst [vmem:[#allocation2 + $0xa8] sm:$0xff] %v3863_v3  ;;  %3051 = vmatpush3.bf16.msra.mxu0 %v3791_v9  ;;  %3608 = vmatpush3.bf16.msra.mxu1 %v3934_v8  ;;  %v2873_v24 = vld [vmem:[%s4000_s15] sm:$0xff]   ;;  %v3024_v29 = vld [vmem:[%s4000_s15 + $0x48] sm:$0xff]  }
  0x19   : > { %433 = vst [vmem:[#allocation2 + $0xb0] sm:$0xff] %v3863_v3  ;;  %434 = vst [vmem:[#allocation2 + $0xb8] sm:$0x3] %v3863_v3  ;;  %3052 = vmatprep.subr.bf16.mxu0 %v3792_v10  ;;  %3601 = vmatprep.subr.bf16.mxu1 %v3947_v11  ;;  %v4018_v25 = vld [vmem:[%s4959_s2] ss:$0 sm:$0xff]  ;;  %v2874_v26 = vunpack.c.l.bf16 %v2873_v24  ;;  %v2875_v27 = vunpack.c.h.bf16 %v2873_v24  ;;  %v600_v30 = vld [vmem:[#allocation2 + $0x1] sm:$0xff]  ;;  %v2910_v31 = vunpack.c.l.bf16 %v3024_v29  ;;  %v2911_v32 = vunpack.c.h.bf16 %v3024_v29 }
  0x1a   : > { %435 = vst [vmem:[#allocation2 + $0xc0] sm:$0xff] %v3863_v3  ;;  %436 = vst [vmem:[#allocation2 + $0xc8] sm:$0xff] %v3863_v3  ;;  %v4024_v28 = vld [vmem:[%s4960_s3] ss:$0 sm:$0xff]  ;;  %v3025_v33 = vld [vmem:[%s4000_s15 + $0x50] sm:$0xff]  }
  0x1b   : > { %437 = vst [vmem:[#allocation2 + $0xd0] sm:$0x3] %v3863_v3  ;;  %438 = vst [vmem:[#allocation2 + $0xd8] sm:$0xff] %v3863_v3  ;;  %v309_v34 = vmul.f32 %v2874_v26, %v4018_v25  ;;  %v310_v35 = vmul.f32 %v2875_v27, %v4018_v25  ;;  %v601_v36 = vld [vmem:[#allocation2 + $0x9] sm:$0xff]  ;;  %v2914_v37 = vunpack.c.l.bf16 %v3025_v33  ;;  %v2915_v38 = vunpack.c.h.bf16 %v3025_v33  ;;  %v3806_v39 = vld [vmem:[%s4958_s1 + $0xf8] sm:$0xff]  }
  0x1c   : > { %439 = vst [vmem:[#allocation2 + $0xe0] sm:$0xff] %v3863_v3  ;;  %440 = vst [vmem:[#allocation2 + $0xe8] sm:$0x3] %v3863_v3  ;;  %3053 = vmatpush3.bf16.msra.mxu0 %v3794_v12  ;;  %3609 = vmatpush3.bf16.msra.mxu1 %v3947_v11  ;;  %v327_v40 = vmul.f32 %v2910_v31, %v4018_v25  ;;  %v328_v41 = vmul.f32 %v2911_v32, %v4018_v25  ;;  %v3807_v45 = vld [vmem:[%s4958_s1 + $0x40] sm:$0xff]   ;;  %v3016_v50 = vld [vmem:[%s4000_s15 + $0x8] sm:$0xff]  }
  0x1d   : > { %441 = vst [vmem:[#allocation2 + $0xf0] sm:$0xff] %v3863_v3  ;;  %442 = vst [vmem:[#allocation2 + $0xf8] sm:$0xff] %v3863_v3  ;;  %3054 = vmatprep.subr.bf16.mxu0 %v3795_v13  ;;  %3602 = vmatprep.subr.bf16.mxu1 %v3962_v14  ;;  %v347_v42 = vadd.f32 %v4024_v28, %v309_v34  ;;  %v348_v43 = vadd.f32 %v4024_v28, %v310_v35  ;;  %v3026_v51 = vld [vmem:[%s4000_s15 + $0x58] sm:$0xff]   ;;  %v2878_v55 = vunpack.c.l.bf16 %v3016_v50  ;;  %v3027_v56 = vld [vmem:[%s4000_s15 + $0x60] sm:$0xff]  }
  0x1e   : > { %443 = vst [vmem:[#allocation2 + $0x100] sm:$0x3] %v3863_v3  ;;  %444 = vst [vmem:[#allocation2 + $0x108] sm:$0xff] %v3863_v3  ;;  %v329_v44 = vmul.f32 %v2914_v37, %v4018_v25  ;;  %v365_v46 = vadd.f32 %v4024_v28, %v327_v40  ;;  %v366_v47 = vadd.f32 %v4024_v28, %v328_v41  ;;  %v2879_v60 = vunpack.c.h.bf16 %v3016_v50  ;;  %v3808_v7 = vld [vmem:[%s4958_s1] sm:$0xff]   ;;  %v3028_v24 = vld [vmem:[%s4000_s15 + $0x68] sm:$0xff]  }
  0x1f   : > { %445 = vst [vmem:[#allocation2 + $0x110] sm:$0xff] %v3863_v3  ;;  %446 = vst [vmem:[#allocation2 + $0x118] sm:$0x3] %v3863_v3  ;;  %v636_v48 = vpack.c.bf16 %v601_v36, %v600_v30  ;;  %v330_v49 = vmul.f32 %v2915_v38, %v4018_v25  ;;  %v379_v52 = vmax.f32 %v347_v42, 0.0  ;;  %v380_v53 = vmax.f32 %v348_v43, 0.0  ;;  %v3810_v31 = vld [vmem:[%s4958_s1 + $0x8] sm:$0xff]  }
  0x20   : > { %447 = vst [vmem:[#allocation2 + $0x120] sm:$0xff] %v3863_v3  ;;  %448 = vst [vmem:[#allocation2 + $0x128] sm:$0xff] %v3863_v3  ;;  %3055 = vmatpush3.bf16.msra.mxu0 %v3797_v15  ;;  %3610 = vmatpush3.bf16.msra.mxu1 %v3962_v14  ;;  %v367_v54 = vadd.f32 %v4024_v28, %v329_v44  ;;  %v397_v57 = vmax.f32 %v365_v46, 0.0  ;;  %v398_v58 = vmax.f32 %v366_v47, 0.0  ;;  %v2918_v0 = vunpack.c.l.bf16 %v3026_v51  ;;  %v3017_v15 = vld [vmem:[%s4000_s15 + $0x10] sm:$0xff]  }
  0x21   : > { %449 = vst [vmem:[#allocation2 + $0x130] sm:$0x3] %v3863_v3  ;;  %450 = vst [vmem:[#allocation2 + $0x138] sm:$0xff] %v3863_v3  ;;  %3056 = vmatprep.subr.bf16.mxu0 %v3798_v16  ;;  %3603 = vmatprep.subr.bf16.mxu1 %v3979_v17  ;;  %v368_v59 = vadd.f32 %v4024_v28, %v330_v49  ;;  %v4052_v61 = vpack.c.bf16 %v380_v53, %v379_v52  ;;  %v2919_v6 = vunpack.c.h.bf16 %v3026_v51  ;;  %v3811_v46 = vld [vmem:[%s4958_s1 + $0x50] sm:$0xff]   ;;  %v3018_v49 = vld [vmem:[%s4000_s15 + $0x18] sm:$0xff]  }
  0x22   : > { %451 = vst [vmem:[#allocation2 + $0x140] sm:$0xff] %v3863_v3  ;;  %452 = vst [vmem:[#allocation2 + $0x148] sm:$0x3] %v3863_v3  ;;  %v399_v62 = vmax.f32 %v367_v54, 0.0  ;;  %v311_v63 = vmul.f32 %v2878_v55, %v4018_v25  ;;  %v4056_v2 = vpack.c.bf16 %v398_v58, %v397_v57  ;;  %v312_v4 = vmul.f32 %v2879_v60, %v4018_v25  ;;  %v3030_v54 = vld [vmem:[%s4000_s15 + $0x78] sm:$0xff]  }
  0x23   : > { %453 = vst [vmem:[#allocation2 + $0x150] sm:$0xff] %v3863_v3  ;;  %454 = vst [vmem:[#allocation2 + $0x158] sm:$0xff] %v3863_v3  ;;  %879 = vmatprep.mubr.bf16.mxu0 %v4052_v61  ;;  %v331_v10 = vmul.f32 %v2918_v0, %v4018_v25  ;;  %v2922_v12 = vunpack.c.l.bf16 %v3027_v56  ;;  %v2923_v13 = vunpack.c.h.bf16 %v3027_v56  ;;  %v2883_v34 = vunpack.c.h.bf16 %v3017_v15 }
  0x24   : > { %455 = vst [vmem:[#allocation2 + $0x160] sm:$0x3] %v3863_v3  ;;  %456 = vst [vmem:[#allocation2 + $0x168] sm:$0xff] %v3863_v3  ;;  %3057 = vmatpush3.bf16.msra.mxu0 %v3800_v18  ;;  %3611 = vmatpush3.bf16.msra.mxu1 %v3979_v17  ;;  %v349_v9 = vadd.f32 %v4024_v28, %v311_v63  ;;  %v3809_v18 = vld [vmem:[%s4958_s1 + $0x48] sm:$0xff]   ;;  %v2926_v38 = vunpack.c.l.bf16 %v3028_v24  ;;  %v2927_v47 = vunpack.c.h.bf16 %v3028_v24  ;;  %v2886_v63 = vunpack.c.l.bf16 %v3018_v49  ;;  %v3815_v24 = vld [vmem:[%s4958_s1 + $0x60] sm:$0xff]  }
  0x25   : > { %457 = vst [vmem:[#allocation2 + $0x170] sm:$0xff] %v3863_v3  ;;  %458 = vst [vmem:[#allocation2 + $0x178] sm:$0x3] %v3863_v3  ;;  %3058 = vmatprep.subr.bf16.mxu0 %v3801_v19  ;;  %3604 = vmatprep.subr.bf16.mxu1 %v3993_v20  ;;  %v350_v19 = vadd.f32 %v4024_v28, %v312_v4  ;;  %v369_v27 = vadd.f32 %v4024_v28, %v331_v10  ;;  %v2887_v0 = vunpack.c.h.bf16 %v3018_v49 }
  0x26   : > { %459 = vst [vmem:[#allocation2 + $0x180] sm:$0xff] %v3863_v3  ;;  %460 = vst [vmem:[#allocation2 + $0x188] sm:$0xff] %v3863_v3  ;;  %3486 = vmatprep.mubr.bf16.mxu1 %v4056_v2  ;;  %v381_v26 = vmax.f32 %v349_v9, 0.0  ;;  %v333_v29 = vmul.f32 %v2922_v12, %v4018_v25  ;;  %v334_v30 = vmul.f32 %v2923_v13, %v4018_v25 }
  0x27   : > { %461 = vst [vmem:[#allocation2 + $0x190] sm:$0x3] %v3863_v3  ;;  %462 = vst [vmem:[#allocation2 + $0x198] sm:$0xff] %v3863_v3  ;;  %v382_v32 = vmax.f32 %v350_v19, 0.0  ;;  %v401_v35 = vmax.f32 %v369_v27, 0.0  ;;  %v314_v42 = vmul.f32 %v2883_v34, %v4018_v25  ;;  %v336_v56 = vmul.f32 %v2927_v47, %v4018_v25  ;;  %v3020_v34 = vld [vmem:[%s4000_s15 + $0x28] sm:$0xff]  }
  0x28   : > { %463 = vst [vmem:[#allocation2 + $0x1a0] sm:$0xff] %v3863_v3  ;;  %464 = vst [vmem:[#allocation2 + $0x1a8] sm:$0x3] %v3863_v3  ;;  %3059 = vmatpush3.bf16.msra.mxu0 %v3803_v21  ;;  %3612 = vmatpush3.bf16.msra.mxu1 %v3993_v20  ;;  %v400_v3 = vmax.f32 %v368_v59, 0.0  ;;  %v332_v21 = vmul.f32 %v2919_v6, %v4018_v25  ;;  %v371_v36 = vadd.f32 %v4024_v28, %v333_v29  ;;  %v3813_v59 = vld [vmem:[%s4958_s1 + $0x58] sm:$0xff]  }
  0x29   : > { %3060 = vmatprep.subr.bf16.mxu0 %v3804_v22  ;;  %3605 = vmatprep.subr.bf16.mxu1 %v4012_v23  ;;  %466 = vst [vmem:[#allocation2 + $0x19] sm:$0xff] %v379_v52  ;;  %467 = vst [vmem:[#allocation2 + $0x21] sm:$0xff] %v380_v53  ;;  %v2882_v22 = vunpack.c.l.bf16 %v3017_v15  ;;  %v372_v37 = vadd.f32 %v4024_v28, %v334_v30  ;;  %v4089_v40 = vpack.c.bf16 %v382_v32, %v381_v26 }
  0x2a   : > { %484 = vst [vmem:[#allocation2 + $0xf1] sm:$0xff] %v397_v57  ;;  %485 = vst [vmem:[#allocation2 + $0xf9] sm:$0xff] %v398_v58  ;;  %v4067_v16 = vpack.c.bf16 %v400_v3, %v399_v62  ;;  %v370_v33 = vadd.f32 %v4024_v28, %v332_v21  ;;  %v403_v44 = vmax.f32 %v371_v36, 0.0  ;;  %v352_v51 = vadd.f32 %v4024_v28, %v314_v42  ;;  %v3019_v21 = vld [vmem:[%s4000_s15 + $0x20] sm:$0xff]   ;;  %v3021_v42 = vld [vmem:[%s4000_s15 + $0x30] sm:$0xff]  }
  0x2b   : > { %486 = vst [vmem:[#allocation2 + $0x109] sm:$0xff] %v399_v62  ;;  %487 = vst [vmem:[#allocation2 + $0x111] sm:$0xff] %v400_v3  ;;  %v374_v3 = vadd.f32 %v4024_v28, %v336_v56  ;;  %v315_v12 = vmul.f32 %v2886_v63, %v4018_v25  ;;  %v316_v13 = vmul.f32 %v2887_v0, %v4018_v25  ;;  %v3819_v63 = vld [vmem:[%s4958_s1 + $0x70] sm:$0xff]  }
  0x2c   : > { %3061 = vmatpush3.bf16.msra.mxu0 %v3806_v39  ;;  %3613 = vmatpush3.bf16.msra.mxu1 %v4012_v23  ;;  %468 = vst [vmem:[#allocation2 + $0x31] sm:$0xff] %v381_v26  ;;  %v3029_v39 = vld [vmem:[%s4000_s15 + $0x70] sm:$0xff]   ;;  %469 = vst [vmem:[#allocation2 + $0x39] sm:$0xff] %v382_v32  ;;  %v402_v41 = vmax.f32 %v370_v33, 0.0  ;;  %v384_v60 = vmax.f32 %v352_v51, 0.0  ;;  %v2894_v51 = vunpack.c.l.bf16 %v3020_v34 }
  0x2d   : > { %3454 = vmatprep.subr.bf16.mxu0 %v3909_v1  ;;  %3182 = vmatprep.subr.bf16.mxu1 %v3807_v45  ;;  %488 = vst [vmem:[#allocation2 + $0x121] sm:$0xff] %v401_v35  ;;  %v404_v45 = vmax.f32 %v372_v37, 0.0  ;;  %v2930_v53 = vunpack.c.l.bf16 %v3029_v39  ;;  %490 = vst [vmem:[#allocation2 + $0x139] sm:$0xff] %v403_v44  ;;  %v2931_v58 = vunpack.c.h.bf16 %v3029_v39  ;;  %v406_v15 = vmax.f32 %v374_v3, 0.0 }
  0x2e   : > { %489 = vst [vmem:[#allocation2 + $0x129] sm:$0xff] %v402_v41  ;;  %v4100_v50 = vpack.c.bf16 %v402_v41, %v401_v35  ;;  %471 = vst [vmem:[#allocation2 + $0x51] sm:$0xff] %v384_v60  ;;  %v353_v26 = vadd.f32 %v4024_v28, %v315_v12  ;;  %v354_v27 = vadd.f32 %v4024_v28, %v316_v13  ;;  %v2890_v39 = vunpack.c.l.bf16 %v3019_v21 }
  0x2f   : > { %880 = vmatmul.mubr.bf16.vlgmr.msra.gmra.mrb[0].mxu0 %v636_v48  ;;  %3487 = vmatmul.mubr.bf16.vlgmr.msra.gmra.mrb[0].mxu1 %v4067_v16  ;;  %v335_v48 = vmul.f32 %v2926_v38, %v4018_v25  ;;  %491 = vst [vmem:[#allocation2 + $0x141] sm:$0xff] %v404_v45  ;;  %v4105_v55 = vpack.c.bf16 %v404_v45, %v403_v44  ;;  %493 = vst [vmem:[#allocation2 + $0x159] sm:$0xff] %v406_v15  ;;  %v4152_v37 = vld [vmem:[#allocation2 + $0x199] sm:$0xff]  ;;  %v4154_v38 = vld [vmem:[#allocation2 + $0x1a1] sm:$0xff]  ;;  %v2891_v41 = vunpack.c.h.bf16 %v3019_v21 }
  0x30   : > { %3455 = vmatpush3.bf16.msra.mxu0 %v3909_v1  ;;  %v313_v1 = vmul.f32 %v2882_v22, %v4018_v25  ;;  %3183 = vmatpush3.bf16.msra.mxu1 %v3808_v7  ;;  %v337_v62 = vmul.f32 %v2930_v53, %v4018_v25  ;;  %v338_v6 = vmul.f32 %v2931_v58, %v4018_v25  ;;  %v2934_v7 = vunpack.c.l.bf16 %v3030_v54  ;;  %v500_v45 = vld [vmem:[#allocation2 + $0x18] sm:$0xff]  ;;  %v501_v49 = vld [vmem:[#allocation2 + $0x20] sm:$0xff] }
  0x31   : > { %3456 = vmatprep.subr.bf16.mxu0 %v3922_v5  ;;  %3184 = vmatprep.subr.bf16.mxu1 %v3809_v18  ;;  %v373_v57 = vadd.f32 %v4024_v28, %v335_v48  ;;  %v2935_v18 = vunpack.c.h.bf16 %v3030_v54  ;;  %v385_v35 = vmax.f32 %v353_v26, 0.0  ;;  %v386_v36 = vmax.f32 %v354_v27, 0.0  ;;  %v3820_v26 = vld [vmem:[%s4958_s1 + $0x30] sm:$0xff]  }
  0x32   : > { %v351_v43 = vadd.f32 %v4024_v28, %v313_v1  ;;  %887 = vmatprep.mubr.bf16.mxu0 %v4089_v40  ;;  %3490 = vmatprep.mubr.bf16.mxu1 %v4100_v50  ;;  %v375_v10 = vadd.f32 %v4024_v28, %v337_v62  ;;  %v339_v19 = vmul.f32 %v2934_v7, %v4018_v25  ;;  %v3817_v1 = vld [vmem:[%s4958_s1 + $0x68] sm:$0xff]   ;;  %v2895_v54 = vunpack.c.h.bf16 %v3020_v34 }
  0x33   : > { %v405_v4 = vmax.f32 %v373_v57, 0.0  ;;  %v340_v32 = vmul.f32 %v2935_v18, %v4018_v25  ;;  %472 = vst [vmem:[#allocation2 + $0x61] sm:$0xff] %v385_v35  ;;  %473 = vst [vmem:[#allocation2 + $0x69] sm:$0xff] %v386_v36  ;;  %v317_v47 = vmul.f32 %v2890_v39, %v4018_v25  ;;  %v318_v48 = vmul.f32 %v2891_v41, %v4018_v25  ;;  %v3818_v62 = vld [vmem:[%s4958_s1 + $0x28] sm:$0xff]   ;;  %v3830_v39 = vld [vmem:[%s4958_s1 + $0x1c0] sm:$0xff]  }
  0x34   : > { %3457 = vmatpush3.bf16.msra.mxu0 %v3922_v5  ;;  %v383_v52 = vmax.f32 %v351_v43, 0.0  ;;  %3185 = vmatpush3.bf16.msra.mxu1 %v3810_v31  ;;  %v3812_v5 = vld [vmem:[%s4958_s1 + $0x10] sm:$0xff]   ;;  %v407_v22 = vmax.f32 %v375_v10, 0.0  ;;  %v3816_v31 = vld [vmem:[%s4958_s1 + $0x20] sm:$0xff]   ;;  %v377_v33 = vadd.f32 %v4024_v28, %v339_v19  ;;  %v653_v53 = vpack.c.bf16 %v4154_v38, %v4152_v37  ;;  %v3822_v41 = vld [vmem:[%s4958_s1 + $0x38] sm:$0xff]  }
  0x35   : > { %3458 = vmatprep.subr.bf16.mxu0 %v3934_v8  ;;  %3186 = vmatprep.subr.bf16.mxu1 %v3811_v46  ;;  %492 = vst [vmem:[#allocation2 + $0x151] sm:$0xff] %v405_v4  ;;  %v4140_v29 = vpack.c.bf16 %v406_v15, %v405_v4  ;;  %v378_v43 = vadd.f32 %v4024_v28, %v340_v32  ;;  %v3821_v32 = vld [vmem:[%s4958_s1 + $0x78] sm:$0xff]  }
  0x36   : > { %470 = vst [vmem:[#allocation2 + $0x49] sm:$0xff] %v383_v52  ;;  %v4125_v9 = vpack.c.bf16 %v384_v60, %v383_v52  ;;  %494 = vst [vmem:[#allocation2 + $0x169] sm:$0xff] %v407_v22  ;;  %v409_v44 = vmax.f32 %v377_v33, 0.0  ;;  %v4163_v46 = vpack.c.bf16 %v386_v36, %v385_v35  ;;  %v355_v56 = vadd.f32 %v4024_v28, %v317_v47  ;;  %v3022_v60 = vld [vmem:[%s4000_s15 + $0x38] sm:$0xff]  }
  0x37   : > { %888 = vmatmul.mubr.bf16.gmra.mrb[4].mxu0 %v4052_v61  ;;  %3491 = vmatmul.mubr.bf16.gmra.mrb[4].mxu1 %v4105_v55  ;;  %v3814_v61 = vld [vmem:[%s4958_s1 + $0x18] sm:$0xff]   ;;  %v410_v52 = vmax.f32 %v378_v43, 0.0  ;;  %v356_v57 = vadd.f32 %v4024_v28, %v318_v48  ;;  %v319_v58 = vmul.f32 %v2894_v51, %v4018_v25  ;;  %v4184_v0 = vpack.c.bf16 %v501_v49, %v500_v45  ;;  %v502_v43 = vld [vmem:[#allocation2 + $0x30] sm:$0xff] }
  0x38   : > { %3459 = vmatpush3.bf16.msra.mxu0 %v3934_v8  ;;  %3187 = vmatpush3.bf16.msra.mxu1 %v3812_v5  ;;  %v376_v8 = vadd.f32 %v4024_v28, %v338_v6  ;;  %496 = vst [vmem:[#allocation2 + $0x181] sm:$0xff] %v409_v44  ;;  %v2898_v5 = vunpack.c.l.bf16 %v3021_v42  ;;  %v320_v3 = vmul.f32 %v2895_v54, %v4018_v25  ;;  %v3023_v6 = vld [vmem:[%s4000_s15 + $0x40] sm:$0xff]   ;;  %v387_v7 = vmax.f32 %v355_v56, 0.0  ;;  %v3825_v54 = vld [vmem:[%s4958_s1 + $0x90] sm:$0xff]  }
  0x39   : > { %3460 = vmatprep.subr.bf16.mxu0 %v3947_v11  ;;  %3188 = vmatprep.subr.bf16.mxu1 %v3813_v59  ;;  %v2899_v59 = vunpack.c.h.bf16 %v3021_v42  ;;  %497 = vst [vmem:[#allocation2 + $0x189] sm:$0xff] %v410_v52  ;;  %v357_v10 = vadd.f32 %v4024_v28, %v319_v58  ;;  %v2903_v18 = vunpack.c.h.bf16 %v3022_v60  ;;  %v2907_v34 = vunpack.c.h.bf16 %v3023_v6  ;;  %v3827_v58 = vld [vmem:[%s4958_s1 + $0xa0] sm:$0xff]  }
  0x3a   : > { %895 = vmatprep.mubr.bf16.mxu0 %v4125_v9  ;;  %v408_v30 = vmax.f32 %v376_v8, 0.0  ;;  %3494 = vmatprep.mubr.bf16.mxu1 %v4140_v29  ;;  %v321_v4 = vmul.f32 %v2898_v5, %v4018_v25  ;;  %v358_v13 = vadd.f32 %v4024_v28, %v320_v3  ;;  %v2902_v8 = vunpack.c.l.bf16 %v3022_v60  ;;  %474 = vst [vmem:[#allocation2 + $0x79] sm:$0xff] %v387_v7  ;;  %v507_v60 = vld [vmem:[#allocation2 + $0x68] sm:$0xff] }
  0x3b   : > { %v322_v12 = vmul.f32 %v2899_v59, %v4018_v25  ;;  %v389_v21 = vmax.f32 %v357_v10, 0.0  ;;  %v326_v37 = vmul.f32 %v2907_v34, %v4018_v25  ;;  %v506_v59 = vld [vmem:[#allocation2 + $0x60] sm:$0xff]  ;;  %v3838_v10 = vld [vmem:[%s4958_s1 + $0xb8] sm:$0xff]   ;;  %v520_v34 = vld [vmem:[#allocation2 + $0x108] sm:$0xff] }
  0x3c   : > { %3461 = vmatpush3.bf16.msra.mxu0 %v3947_v11  ;;  %3189 = vmatpush3.bf16.msra.mxu1 %v3814_v61  ;;  %495 = vst [vmem:[#allocation2 + $0x171] sm:$0xff] %v408_v30  ;;  %v4159_v11 = vpack.c.bf16 %v408_v30, %v407_v22  ;;  %v388_v61 = vmax.f32 %v356_v57, 0.0  ;;  %v4195_v15 = vadd.f32 %v4024_v28, %v321_v4  ;;  %v390_v27 = vmax.f32 %v358_v13, 0.0  ;;  %v3826_v57 = vld [vmem:[%s4958_s1 + $0x98] sm:$0xff]  }
  0x3d   : > { %3462 = vmatprep.subr.bf16.mxu0 %v3962_v14  ;;  %3190 = vmatprep.subr.bf16.mxu1 %v3815_v24  ;;  %v360_v22 = vadd.f32 %v4024_v28, %v322_v12  ;;  %v2906_v24 = vunpack.c.l.bf16 %v3023_v6  ;;  %476 = vst [vmem:[#allocation2 + $0x91] sm:$0xff] %v389_v21  ;;  %v364_v45 = vadd.f32 %v4024_v28, %v326_v37  ;;  %v3829_v6 = vld [vmem:[%s4958_s1 + $0xb0] sm:$0xff]   ;;  %v524_v37 = vld [vmem:[#allocation2 + $0x138] sm:$0xff] }
  0x3e   : > { %475 = vst [vmem:[#allocation2 + $0x81] sm:$0xff] %v388_v61  ;;  %v4198_v19 = vpack.c.bf16 %v388_v61, %v387_v7  ;;  %v391_v30 = vmax.f32 %v4195_v15, 0.0  ;;  %477 = vst [vmem:[#allocation2 + $0x99] sm:$0xff] %v390_v27  ;;  %v4234_v48 = vpack.c.bf16 %v390_v27, %v389_v21  ;;  %v4291_v15 = vld [vmem:[%s4958_s1 + $0x200] sm:$0xff]  }
  0x3f   : > { %896 = vmatmul.mubr.bf16.gmra.mrb[8].mxu0 %v4089_v40  ;;  %3495 = vmatmul.mubr.bf16.gmra.mrb[8].mxu1 %v4159_v11  ;;  %v392_v33 = vmax.f32 %v360_v22, 0.0  ;;  %v396_v49 = vmax.f32 %v364_v45, 0.0  ;;  %v3839_v45 = vld [vmem:[%s4958_s1 + $0x1e0] sm:$0xff]  }
  0x40   : > { %3463 = vmatpush3.bf16.msra.mxu0 %v3962_v14  ;;  %903 = vmatprep.mubr.bf16.mxu0 %v4163_v46  ;;  %v4179_v14 = vpack.c.bf16 %v410_v52, %v409_v44  ;;  %478 = vst [vmem:[#allocation2 + $0xa9] sm:$0xff] %v391_v30  ;;  %v503_v44 = vld [vmem:[#allocation2 + $0x38] sm:$0xff]  ;;  %v3864_v52 = vmov 0.0|0.0  }
  0x41   : > { %3191 = vmatpush3.bf16.msra.mxu1 %v3816_v31  ;;  %3464 = vmatprep.subr.bf16.mxu0 %v3979_v17  ;;  %v324_v31 = vmul.f32 %v2903_v18, %v4018_v25  ;;  %479 = vst [vmem:[#allocation2 + $0xb1] sm:$0xff] %v392_v33  ;;  %v4237_v51 = vpack.c.bf16 %v503_v44, %v502_v43  ;;  %483 = vst [vmem:[#allocation2 + $0xe1] sm:$0xff] %v396_v49  ;;  %v508_v3 = vld [vmem:[#allocation2 + $0x78] sm:$0xff] }
  0x42   : > { %3192 = vmatprep.subr.bf16.mxu1 %v3817_v1  ;;  %3498 = vmatprep.mubr.bf16.mxu1 %v4179_v14  ;;  %v325_v1 = vmul.f32 %v2906_v24, %v4018_v25  ;;  %v4249_v5 = vpack.c.bf16 %v392_v33, %v391_v30  ;;  %v3837_v44 = vld [vmem:[%s4958_s1 + $0x198] sm:$0xff]  }
  0x43   : > { %v362_v36 = vadd.f32 %v4024_v28, %v324_v31 }
  0x44   : > { %3465 = vmatpush3.bf16.msra.mxu0 %v3979_v17  ;;  %v323_v17 = vmul.f32 %v2902_v8, %v4018_v25  ;;  %v4219_v38 = vadd.f32 %v4024_v28, %v325_v1  ;;  %v510_v12 = vld [vmem:[#allocation2 + $0x90] sm:$0xff] }
  0x45   : > { %3466 = vmatprep.subr.bf16.mxu0 %v3993_v20  ;;  %3193 = vmatpush3.bf16.msra.mxu1 %v3818_v62  ;;  %v394_v25 = vmax.f32 %v362_v36, 0.0  ;;  %v509_v4 = vld [vmem:[#allocation2 + $0x80] sm:$0xff]  ;;  %v511_v13 = vld [vmem:[#allocation2 + $0x98] sm:$0xff] }
  0x46   : > { %3194 = vmatprep.subr.bf16.mxu1 %v3819_v63  ;;  %v361_v35 = vadd.f32 %v4024_v28, %v323_v17  ;;  %v395_v47 = vmax.f32 %v4219_v38, 0.0  ;;  %v3824_v28 = vld [vmem:[%s4958_s1 + $0x88] sm:$0xff]   ;;  %v4265_v63 = vpack.c.bf16 %v507_v60, %v506_v59  ;;  %v4279_v61 = vpack.c.bf16 %v509_v4, %v508_v3  ;;  %v3845_v59 = vld [vmem:[%s4958_s1 + $0x1f8] sm:$0xff]  }
  0x47   : > { %904 = vmatmul.mubr.bf16.gmra.mrb[12].mxu0 %v4125_v9  ;;  %3499 = vmatmul.mubr.bf16.gmra.mrb[12].mxu1 %v653_v53  ;;  %481 = vst [vmem:[#allocation2 + $0xc9] sm:$0xff] %v394_v25  ;;  %v505_v53 = vld [vmem:[#allocation2 + $0x50] sm:$0xff]  ;;  %v4293_v8 = vpack.c.bf16 %v511_v13, %v510_v12  ;;  %v512_v18 = vld [vmem:[#allocation2 + $0xa8] sm:$0xff]  ;;  %v3846_v60 = vld [vmem:[%s4958_s1 + $0x1b8] sm:$0xff]  }
  0x48   : > { %911 = vmatprep.mubr.bf16.mxu0 %v4198_v19  ;;  %3467 = vmatpush3.bf16.msra.mxu0 %v3993_v20  ;;  %v3823_v20 = vld [vmem:[%s4958_s1 + $0x80] sm:$0xff]   ;;  %v393_v42 = vmax.f32 %v361_v35, 0.0  ;;  %482 = vst [vmem:[#allocation2 + $0xd9] sm:$0xff] %v395_v47  ;;  %v4277_v7 = vpack.c.bf16 %v396_v49, %v395_v47  ;;  %v513_v21 = vld [vmem:[#allocation2 + $0xb0] sm:$0xff]  ;;  %v531_v49 = vld [vmem:[#allocation2 + $0x188] sm:$0xff] }
  0x49   : > { %3195 = vmatpush3.bf16.msra.mxu1 %v3820_v26  ;;  %1345 = vmatprep.mubr.bf16.mxu1 %v4184_v0  ;;  %v4300_v22 = vpack.c.bf16 %v513_v21, %v512_v18  ;;  %v522_v35 = vld [vmem:[#allocation2 + $0x120] sm:$0xff]  ;;  %v1639_v3 = vld [vmem:[#allocation2 + $0x32] sm:$0xff]  ;;  %v1641_v12 = vld [vmem:[#allocation2 + $0x4a] sm:$0xff] }
  0x4a   : > { %3196 = vmatprep.subr.bf16.mxu1 %v3821_v32  ;;  %3468 = vmatprep.subr.bf16.mxu0 %v4012_v23  ;;  %480 = vst [vmem:[#allocation2 + $0xc1] sm:$0xff] %v393_v42  ;;  %v4263_v62 = vpack.c.bf16 %v394_v25, %v393_v42  ;;  %v518_v32 = vld [vmem:[#allocation2 + $0xf0] sm:$0xff]  ;;  %v528_v42 = vld [vmem:[#allocation2 + $0x168] sm:$0xff]  ;;  %v530_v47 = vld [vmem:[#allocation2 + $0x180] sm:$0xff] }
  0x4b   : > { %v529_v25 = vld [vmem:[#allocation2 + $0x170] sm:$0xff]  ;;  %v1640_v4 = vld [vmem:[#allocation2 + $0x3a] sm:$0xff] }
  0x4c   : > { %3469 = vmatpush3.bf16.msra.mxu0 %v4012_v23  ;;  %v504_v23 = vld [vmem:[#allocation2 + $0x48] sm:$0xff]  ;;  %v4366_v43 = vpack.c.bf16 %v529_v25, %v528_v42  ;;  %v1642_v13 = vld [vmem:[#allocation2 + $0x52] sm:$0xff]  ;;  %v3851_v21 = vld [vmem:[%s4958_s1 + $0x220] sm:$0xff]  }
  0x4d   : > { %3318 = vmatprep.subr.bf16.mxu0 %v3830_v39  ;;  %3197 = vmatpush3.bf16.msra.mxu1 %v3822_v41  ;;  %v4251_v56 = vpack.c.bf16 %v505_v53, %v504_v23  ;;  %v526_v39 = vld [vmem:[#allocation2 + $0x150] sm:$0xff]  ;;  %v3832_v41 = vld [vmem:[%s4958_s1 + $0x1c8] sm:$0xff]   ;;  %v4420_v18 = vpack.c.bf16 %v1642_v13, %v1641_v12 }
  0x4e   : > { %3502 = vmatprep.subr.bf16.mxu1 %v3823_v20  ;;  %v3842_v23 = vld [vmem:[%s4958_s1 + $0x1a8] sm:$0xff]   ;;  %v3843_v53 = vld [vmem:[%s4958_s1 + $0x1f0] sm:$0xff]  }
  0x4f   : > { %912 = vmatmul.mubr.bf16.gmra.mrb[16].mxu0 %v4163_v46  ;;  %v516_v30 = vld [vmem:[#allocation2 + $0xd8] sm:$0xff]  ;;  %v517_v17 = vld [vmem:[#allocation2 + $0xe0] sm:$0xff] }
  0x50   : > { %919 = vmatprep.mubr.bf16.mxu0 %v4234_v48  ;;  %1346 = vmatmul.mubr.bf16.vlgmr.msra.gmra.mrb[16].mxu1 %v3864_v52  ;;  %v4312_v31 = vpack.c.bf16 %v517_v17, %v516_v30  ;;  %v3853_v30 = vld [vmem:[%s4958_s1 + $0x230] sm:$0xff]  }
  0x51   : > { %3503 = vmatpush3.bf16.msra.mxu1 %v3823_v20  ;;  %1353 = vmatprep.mubr.bf16.mxu1 %v4237_v51  ;;  %v514_v24 = vld [vmem:[#allocation2 + $0xc0] sm:$0xff]  ;;  %v515_v26 = vld [vmem:[#allocation2 + $0xc8] sm:$0xff] }
  0x52   : > { %3504 = vmatprep.subr.bf16.mxu1 %v3824_v28  ;;  %v4306_v27 = vpack.c.bf16 %v515_v26, %v514_v24  ;;  %v1646_v26 = vld [vmem:[#allocation2 + $0x82] sm:$0xff] }
  0x55   : > { %3505 = vmatpush3.bf16.msra.mxu1 %v3824_v28  ;;  %v4384_v28 = vpack.c.bf16 %v531_v49, %v530_v47  ;;  %v1658_v47 = vld [vmem:[#allocation2 + $0x112] sm:$0xff] }
  0x56   : > { %3506 = vmatprep.subr.bf16.mxu1 %v3825_v54 }
  0x57   : > { %920 = vmatmul.mubr.bf16.gmra.mrb[20].mxu0 %v4198_v19 }
  0x58   : > { %927 = vmatprep.mubr.bf16.mxu0 %v4249_v5  ;;  %1354 = vmatmul.mubr.bf16.gmra.mrb[20].mxu1 %v4184_v0  ;;  %v3828_v0 = vld [vmem:[%s4958_s1 + $0xa8] sm:$0xff]  }
  0x59   : > { %1361 = vmatprep.mubr.bf16.mxu1 %v4251_v56  ;;  %3507 = vmatpush3.bf16.msra.mxu1 %v3825_v54  ;;  %v1637_v54 = vld [vmem:[#allocation2 + $0x1a] sm:$0xff] }
  0x5a   : > { %3508 = vmatprep.subr.bf16.mxu1 %v3826_v57 }
  0x5d   : > { %3509 = vmatpush3.bf16.msra.mxu1 %v3826_v57  ;;  %v1638_v57 = vld [vmem:[#allocation2 + $0x22] sm:$0xff] }
  0x5e   : > { %3510 = vmatprep.subr.bf16.mxu1 %v3827_v58 }
  0x5f   : > { %928 = vmatmul.mubr.bf16.gmra.mrb[24].mxu0 %v4234_v48 }
  0x60   : > { %935 = vmatprep.mubr.bf16.mxu0 %v4263_v62  ;;  %1362 = vmatmul.mubr.bf16.gmra.mrb[24].mxu1 %v4237_v51 }
  0x61   : > { %1369 = vmatprep.mubr.bf16.mxu1 %v4265_v63  ;;  %3511 = vmatpush3.bf16.msra.mxu1 %v3827_v58  ;;  %v1672_v58 = vpack.c.bf16 %v1638_v57, %v1637_v54  ;;  %v1659_v54 = vld [vmem:[#allocation2 + $0x122] sm:$0xff]  ;;  %v1660_v57 = vld [vmem:[#allocation2 + $0x12a] sm:$0xff] }
  0x62   : > { %3512 = vmatprep.subr.bf16.mxu1 %v3828_v0 }
  0x65   : > { %3513 = vmatpush3.bf16.msra.mxu1 %v3828_v0  ;;  %v1636_v0 = vld [vmem:[#allocation2 + $0xa] sm:$0xff] }
  0x66   : > { %3514 = vmatprep.subr.bf16.mxu1 %v3829_v6 }
  0x67   : > { %936 = vmatmul.mubr.bf16.gmra.mrb[28].mxu0 %v4249_v5 }
  0x68   : > { %943 = vmatprep.mubr.bf16.mxu0 %v4277_v7  ;;  %1370 = vmatmul.mubr.bf16.gmra.mrb[28].mxu1 %v4251_v56 }
  0x69   : > { %1377 = vmatprep.mubr.bf16.mxu1 %v4279_v61  ;;  %3515 = vmatpush3.bf16.msra.mxu1 %v3829_v6 }
  0x6a   : > { %3516 = vmatprep.subr.bf16.mxu1 %v3838_v10 }
  0x6d   : > { %3517 = vmatpush3.bf16.msra.mxu1 %v3838_v10  ;;  %v4408_v10 = vpack.c.bf16 %v1640_v4, %v1639_v3  ;;  %v1661_v4 = vld [vmem:[#allocation2 + $0x13a] sm:$0xff] }
  0x6e   : > { %3550 = vmatprep.subr.bf16.mxu1 %v4291_v15 }
  0x6f   : > { %944 = vmatmul.mubr.bf16.gmra.mrb[32].mxu0 %v4263_v62 }
  0x70   : > { %951 = vmatprep.mubr.bf16.mxu0 %v4056_v2  ;;  %1378 = vmatmul.mubr.bf16.gmra.mrb[32].mxu1 %v4265_v63 }
  0x71   : > { %1385 = vmatprep.mubr.bf16.mxu1 %v4293_v8 }
  0x77   : > { %952 = vmatmul.mubr.bf16.gmra.mrb[36].mxu0 %v4277_v7 }
  0x78   : > { %959 = vmatprep.mubr.bf16.mxu0 %v4067_v16  ;;  %1386 = vmatmul.mubr.bf16.gmra.mrb[36].mxu1 %v4279_v61 }
  0x79   : > { %1393 = vmatprep.mubr.bf16.mxu1 %v4300_v22 }
  0x7f   : > { %960 = vmatmul.mubr.bf16.gmra.mrb[40].mxu0 %v4056_v2  ;;  %v519_v2 = vld [vmem:[#allocation2 + $0xf8] sm:$0xff] }
  0x80   : > { %967 = vmatprep.mubr.bf16.mxu0 %v4100_v50  ;;  %1394 = vmatmul.mubr.bf16.gmra.mrb[40].mxu1 %v4293_v8  ;;  %v4318_v33 = vpack.c.bf16 %v519_v2, %v518_v32  ;;  %v1648_v32 = vld [vmem:[#allocation2 + $0x9a] sm:$0xff] }
  0x81   : > { %1401 = vmatprep.mubr.bf16.mxu1 %v4306_v27 }
  0x87   : > { %968 = vmatmul.mubr.bf16.gmra.mrb[44].mxu0 %v4067_v16  ;;  %v521_v16 = vld [vmem:[#allocation2 + $0x110] sm:$0xff] }
  0x88   : > { %975 = vmatprep.mubr.bf16.mxu0 %v4105_v55  ;;  %1402 = vmatmul.mubr.bf16.gmra.mrb[44].mxu1 %v4300_v22  ;;  %v4324_v1 = vpack.c.bf16 %v521_v16, %v520_v34  ;;  %v1649_v34 = vld [vmem:[#allocation2 + $0xaa] sm:$0xff]  ;;  %v1650_v16 = vld [vmem:[#allocation2 + $0xb2] sm:$0xff] }
  0x89   : > { %1409 = vmatprep.mubr.bf16.mxu1 %v4312_v31 }
  0x8f   : > { %976 = vmatmul.mubr.bf16.gmra.mrb[48].mxu0 %v4100_v50  ;;  %v523_v50 = vld [vmem:[#allocation2 + $0x128] sm:$0xff] }
  0x90   : > { %983 = vmatprep.mubr.bf16.mxu0 %v4140_v29  ;;  %1410 = vmatmul.mubr.bf16.gmra.mrb[48].mxu1 %v4306_v27  ;;  %v4330_v36 = vpack.c.bf16 %v523_v50, %v522_v35  ;;  %v1678_v35 = vpack.c.bf16 %v1650_v16, %v1649_v34 }
  0x91   : > { %1417 = vmatprep.mubr.bf16.mxu1 %v4318_v33 }
  0x97   : > { %984 = vmatmul.mubr.bf16.gmra.mrb[52].mxu0 %v4105_v55  ;;  %v525_v55 = vld [vmem:[#allocation2 + $0x140] sm:$0xff] }
  0x98   : > { %991 = vmatprep.mubr.bf16.mxu0 %v4159_v11  ;;  %1418 = vmatmul.mubr.bf16.gmra.mrb[52].mxu1 %v4312_v31  ;;  %v4336_v38 = vpack.c.bf16 %v525_v55, %v524_v37  ;;  %v1654_v37 = vld [vmem:[#allocation2 + $0xe2] sm:$0xff] }
  0x99   : > { %1425 = vmatprep.mubr.bf16.mxu1 %v4324_v1 }
  0x9f   : > { %992 = vmatmul.mubr.bf16.gmra.mrb[56].mxu0 %v4140_v29  ;;  %v527_v29 = vld [vmem:[#allocation2 + $0x158] sm:$0xff] }
  0xa0   : > { %999 = vmatprep.mubr.bf16.mxu0 %v4179_v14  ;;  %1426 = vmatmul.mubr.bf16.gmra.mrb[56].mxu1 %v4318_v33  ;;  %v3831_v14 = vld [vmem:[%s4958_s1 + $0x180] sm:$0xff]   ;;  %v4348_v20 = vpack.c.bf16 %v527_v29, %v526_v39 }
  0xa1   : > { %1433 = vmatprep.mubr.bf16.mxu1 %v4330_v36 }
  0xa7   : > { %1000 = vmatmul.mubr.bf16.gmra.mrb[60].mxu0 %v4159_v11  ;;  %v3834_v11 = vld [vmem:[%s4958_s1 + $0x1d0] sm:$0xff]  }
  0xa8   : > { %3470 = vmatprep.mubr.bf16.mxu0 %v4089_v40  ;;  %1434 = vmatmul.mubr.bf16.gmra.mrb[60].mxu1 %v4324_v1  ;;  %v3833_v40 = vld [vmem:[%s4958_s1 + $0x188] sm:$0xff]  }
  0xa9   : > { %1441 = vmatprep.mubr.bf16.mxu1 %v4336_v38 }
  0xaf   : > { %3471 = vmatmul.mubr.bf16.vlgmr.msra.gmra.mrb[64].mxu0 %v4125_v9  ;;  %v3835_v9 = vld [vmem:[%s4958_s1 + $0x190] sm:$0xff]  }
  0xb0   : > { %3319 = vmatpush3.bf16.msra.mxu0 %v3831_v14  ;;  %3474 = vmatprep.mubr.bf16.mxu0 %v4163_v46  ;;  %v3836_v46 = vld [vmem:[%s4958_s1 + $0x1d8] sm:$0xff]  }
  0xb1   : > { %1442 = vmatmul.mubr.bf16.gmra.mrb[64].mxu1 %v4330_v36  ;;  %3320 = vmatprep.subr.bf16.mxu0 %v3832_v41 }
  0xb2   : > { %1449 = vmatprep.mubr.bf16.mxu1 %v4348_v20 }
  0xb4   : > { %3321 = vmatpush3.bf16.msra.mxu0 %v3833_v40  ;;  %v1656_v40 = vld [vmem:[#allocation2 + $0xfa] sm:$0xff] }
  0xb5   : > { %3322 = vmatprep.subr.bf16.mxu0 %v3834_v11 }
  0xb7   : > { %3475 = vmatmul.mubr.bf16.gmra.mrb[68].mxu0 %v4198_v19  ;;  %v3840_v19 = vld [vmem:[%s4958_s1 + $0x1a0] sm:$0xff]  }
  0xb8   : > { %3323 = vmatpush3.bf16.msra.mxu0 %v3835_v9  ;;  %3478 = vmatprep.mubr.bf16.mxu0 %v4234_v48  ;;  %v3841_v48 = vld [vmem:[%s4958_s1 + $0x1e8] sm:$0xff]  }
  0xb9   : > { %1450 = vmatmul.mubr.bf16.gmra.mrb[68].mxu1 %v4336_v38  ;;  %3324 = vmatprep.subr.bf16.mxu0 %v3836_v46 }
  0xba   : > { %1457 = vmatprep.mubr.bf16.mxu1 %v4366_v43 }
  0xbc   : > { %3325 = vmatpush3.bf16.msra.mxu0 %v3837_v44 }
  0xbd   : > { %3326 = vmatprep.subr.bf16.mxu0 %v3839_v45  ;;  %v1657_v45 = vld [vmem:[#allocation2 + $0x10a] sm:$0xff] }
  0xbf   : > { %3479 = vmatmul.mubr.bf16.gmra.mrb[72].mxu0 %v4249_v5  ;;  %v3844_v5 = vld [vmem:[%s4958_s1 + $0x1b0] sm:$0xff]  }
  0xc0   : > { %3327 = vmatpush3.bf16.msra.mxu0 %v3840_v19  ;;  %3482 = vmatprep.mubr.bf16.mxu0 %v4263_v62  ;;  %v1635_v62 = vld [vmem:[#allocation2 + $0x2] sm:$0xff] }
  0xc1   : > { %1458 = vmatmul.mubr.bf16.gmra.mrb[72].mxu1 %v4348_v20  ;;  %3328 = vmatprep.subr.bf16.mxu0 %v3841_v48  ;;  %v1671_v6 = vpack.c.bf16 %v1636_v0, %v1635_v62  ;;  %v1683_v62 = vpack.c.bf16 %v1660_v57, %v1659_v54 }
  0xc2   : > { %1465 = vmatprep.mubr.bf16.mxu1 %v4384_v28 }
  0xc4   : > { %3329 = vmatpush3.bf16.msra.mxu0 %v3842_v23 }
  0xc5   : > { %3330 = vmatprep.subr.bf16.mxu0 %v3843_v53 }
  0xc7   : > { %3483 = vmatmul.mubr.bf16.gmra.mrb[76].mxu0 %v4277_v7  ;;  %v3848_v7 = vld [vmem:[%s4958_s1 + $0x208] sm:$0xff]  }
  0xc8   : > { %3331 = vmatpush3.bf16.msra.mxu0 %v3844_v5  ;;  %1914 = vmatprep.mubr.bf16.mxu0 %v1672_v58 }
  0xc9   : > { %1466 = vmatmul.mubr.bf16.gmra.mrb[76].mxu1 %v4366_v43  ;;  %3332 = vmatprep.subr.bf16.mxu0 %v3845_v59 }
  0xca   : > { %3518 = vmatprep.mubr.bf16.mxu1 %v4237_v51  ;;  %v3849_v51 = vld [vmem:[%s4958_s1 + $0x210] sm:$0xff]  }
  0xcc   : > { %3333 = vmatpush3.bf16.msra.mxu0 %v3846_v60 }
  0xcf   : > { %1915 = vmatmul.mubr.bf16.vlgmr.msra.gmra.mrb[80].mxu0 %v1671_v6  ;;  %v1662_v6 = vld [vmem:[#allocation2 + $0x142] sm:$0xff] }
  0xd0   : > { %1922 = vmatprep.mubr.bf16.mxu0 %v4408_v10 }
  0xd1   : > { %3519 = vmatmul.mubr.bf16.vlgmr.msra.gmra.mrb[80].mxu1 %v4251_v56  ;;  %v3850_v56 = vld [vmem:[%s4958_s1 + $0x218] sm:$0xff]  }
  0xd2   : > { %3551 = vmatpush3.bf16.msra.mxu1 %v4291_v15  ;;  %3522 = vmatprep.mubr.bf16.mxu1 %v4265_v63  ;;  %v1643_v15 = vld [vmem:[#allocation2 + $0x62] sm:$0xff]  ;;  %v1644_v63 = vld [vmem:[#allocation2 + $0x6a] sm:$0xff] }
  0xd3   : > { %3552 = vmatprep.subr.bf16.mxu1 %v3848_v7  ;;  %v4431_v24 = vpack.c.bf16 %v1644_v63, %v1643_v15 }
  0xd6   : > { %3553 = vmatpush3.bf16.msra.mxu1 %v3848_v7 }
  0xd7   : > { %1923 = vmatmul.mubr.bf16.gmra.mrb[84].mxu0 %v1672_v58  ;;  %3554 = vmatprep.subr.bf16.mxu1 %v3849_v51 }
  0xd8   : > { %1930 = vmatprep.mubr.bf16.mxu0 %v4420_v18 }
  0xd9   : > { %3523 = vmatmul.mubr.bf16.gmra.mrb[84].mxu1 %v4279_v61  ;;  %v3852_v61 = vld [vmem:[%s4958_s1 + $0x228] sm:$0xff]  }
  0xda   : > { %3526 = vmatprep.mubr.bf16.mxu1 %v4293_v8  ;;  %3555 = vmatpush3.bf16.msra.mxu1 %v3849_v51  ;;  %v1645_v8 = vld [vmem:[#allocation2 + $0x7a] sm:$0xff] }
  0xdb   : > { %3556 = vmatprep.subr.bf16.mxu1 %v3850_v56  ;;  %v4443_v17 = vpack.c.bf16 %v1646_v26, %v1645_v8  ;;  %v1663_v26 = vld [vmem:[#allocation2 + $0x152] sm:$0xff] }
  0xde   : > { %3557 = vmatpush3.bf16.msra.mxu1 %v3850_v56 }
  0xdf   : > { %1931 = vmatmul.mubr.bf16.gmra.mrb[88].mxu0 %v4408_v10  ;;  %3558 = vmatprep.subr.bf16.mxu1 %v3851_v21 }
  0xe0   : > { %1938 = vmatprep.mubr.bf16.mxu0 %v4431_v24 }
  0xe1   : > { %3527 = vmatmul.mubr.bf16.gmra.mrb[88].mxu1 %v4300_v22  ;;  %v3854_v22 = vld [vmem:[%s4958_s1 + $0x238] sm:$0xff]  }
  0xe2   : > { %3530 = vmatprep.mubr.bf16.mxu1 %v4306_v27  ;;  %3559 = vmatpush3.bf16.msra.mxu1 %v3851_v21  ;;  %v1647_v27 = vld [vmem:[#allocation2 + $0x92] sm:$0xff] }
  0xe3   : > { %3560 = vmatprep.subr.bf16.mxu1 %v3852_v61  ;;  %v1677_v2 = vpack.c.bf16 %v1648_v32, %v1647_v27 }
  0xe6   : > { %3561 = vmatpush3.bf16.msra.mxu1 %v3852_v61 }
  0xe7   : > { %1939 = vmatmul.mubr.bf16.gmra.mrb[92].mxu0 %v4420_v18  ;;  %3562 = vmatprep.subr.bf16.mxu1 %v3853_v30 }
  0xe8   : > { %1946 = vmatprep.mubr.bf16.mxu0 %v4443_v17 }
  0xe9   : > { %3531 = vmatmul.mubr.bf16.gmra.mrb[92].mxu1 %v4312_v31  ;;  %v1651_v31 = vld [vmem:[#allocation2 + $0xc2] sm:$0xff] }
  0xea   : > { %3534 = vmatprep.mubr.bf16.mxu1 %v4318_v33  ;;  %3563 = vmatpush3.bf16.msra.mxu1 %v3853_v30  ;;  %v1652_v33 = vld [vmem:[#allocation2 + $0xca] sm:$0xff]  ;;  %v1664_v30 = vld [vmem:[#allocation2 + $0x15a] sm:$0xff] }
  0xeb   : > { %3564 = vmatprep.subr.bf16.mxu1 %v3854_v22  ;;  %v1679_v50 = vpack.c.bf16 %v1652_v33, %v1651_v31  ;;  %v1685_v34 = vpack.c.bf16 %v1664_v30, %v1663_v26 }
  0xee   : > { %3565 = vmatpush3.bf16.msra.mxu1 %v3854_v22 }
  0xef   : > { %1947 = vmatmul.mubr.bf16.gmra.mrb[96].mxu0 %v4431_v24 }
  0xf0   : > { %1954 = vmatprep.mubr.bf16.mxu0 %v1677_v2 }
  0xf1   : > { %3535 = vmatmul.mubr.bf16.gmra.mrb[0].mxu1 %v4324_v1  ;;  %v1653_v1 = vld [vmem:[#allocation2 + $0xda] sm:$0xff] }
  0xf2   : > { %3538 = vmatprep.mubr.bf16.mxu1 %v4330_v36  ;;  %v1680_v14 = vpack.c.bf16 %v1654_v37, %v1653_v1 }
  0xf7   : > { %1955 = vmatmul.mubr.bf16.gmra.mrb[100].mxu0 %v4443_v17 }
  0xf8   : > { %1962 = vmatprep.mubr.bf16.mxu0 %v1678_v35 }
  0xf9   : > { %3539 = vmatmul.mubr.bf16.gmra.mrb[4].mxu1 %v4336_v38 }
  0xfa   : > { %3542 = vmatprep.mubr.bf16.mxu1 %v4348_v20  ;;  %v1655_v20 = vld [vmem:[#allocation2 + $0xf2] sm:$0xff] }
  0xfb   : > { %v1681_v46 = vpack.c.bf16 %v1656_v40, %v1655_v20 }
  0xff   : > { %1963 = vmatmul.mubr.bf16.gmra.mrb[104].mxu0 %v1677_v2 }
 0x100   : > { %1970 = vmatprep.mubr.bf16.mxu0 %v1679_v50 }
 0x101   : > { %3543 = vmatmul.mubr.bf16.gmra.mrb[8].mxu1 %v4366_v43 }
 0x102   : > { %v3062_v55 = vpop.f32.mrb[0].mxu0  ;;  %3546 = vmatprep.mubr.bf16.mxu1 %v4384_v28  ;;  %v1682_v28 = vpack.c.bf16 %v1658_v47, %v1657_v45 }
 0x103   : > { %v3063_v36 = vpop.f32.mrb[1].mxu0 }
 0x104   : > { %v4460_v39 = vadd.f32 %v3063_v36, %v3062_v55  ;;  %v3065_v29 = vpop.f32.mrb[2].mxu0  ;;  %v1665_v55 = vld [vmem:[#allocation2 + $0x16a] sm:$0xff]  ;;  %v1666_v36 = vld [vmem:[#allocation2 + $0x172] sm:$0xff] }
 0x105   : > { %v3066_v38 = vpop.f32.mrb[3].mxu0 }
 0x106   : > { %v4462_v41 = vadd.f32 %v3066_v38, %v3065_v29 }
 0x107   : > { %1971 = vmatmul.mubr.bf16.gmra.mrb[108].mxu0 %v1678_v35 }
 0x108   : > { %1978 = vmatprep.mubr.bf16.mxu0 %v1680_v14 }
 0x109   : > { %3547 = vmatmul.mubr.bf16.gmra.mrb[12].mxu1 %v3864_v52 }
 0x10a   : > { %v3068_v11 = vpop.f32.mrb[4].mxu0  ;;  %3566 = vmatprep.mubr.bf16.mxu1 %v4408_v10 }
 0x10b   : > { %v3069_v42 = vpop.f32.mrb[5].mxu0 }
 0x10c   : > { %v4466_v25 = vadd.f32 %v3069_v42, %v3068_v11  ;;  %v3071_v9 = vpop.f32.mrb[6].mxu0  ;;  %v1686_v11 = vpack.c.bf16 %v1666_v36, %v1665_v55 }
 0x10d   : > { %v3072_v43 = vpop.f32.mrb[7].mxu0 }
 0x10e   : > { %v4468_v44 = vadd.f32 %v3072_v43, %v3071_v9 }
 0x10f   : > { %1979 = vmatmul.mubr.bf16.gmra.mrb[112].mxu0 %v1679_v50 }
 0x110   : > { %1986 = vmatprep.mubr.bf16.mxu0 %v1681_v46 }
 0x111   : > { %3567 = vmatmul.mubr.bf16.vlgmr.msra.gmra.mrb[80].mxu1 %v4420_v18  ;;  %v1684_v18 = vpack.c.bf16 %v1662_v6, %v1661_v4 }
 0x112   : > { %v3074_v52 = vpop.f32.mrb[8].mxu0  ;;  %3570 = vmatprep.mubr.bf16.mxu1 %v4431_v24 }
 0x113   : > { %v3075_v49 = vpop.f32.mrb[9].mxu0 }
 0x114   : > { %v4472_v19 = vadd.f32 %v3075_v49, %v3074_v52  ;;  %v3077_v48 = vpop.f32.mrb[10].mxu0  ;;  %v1667_v49 = vld [vmem:[#allocation2 + $0x182] sm:$0xff] }
 0x115   : > { %v3078_v23 = vpop.f32.mrb[11].mxu0 }
 0x116   : > { %v4474_v53 = vadd.f32 %v3078_v23, %v3077_v48  ;;  %v1668_v48 = vld [vmem:[#allocation2 + $0x18a] sm:$0xff] }
 0x117   : > { %1987 = vmatmul.mubr.bf16.gmra.mrb[116].mxu0 %v1680_v14 }
 0x118   : > { %1994 = vmatprep.mubr.bf16.mxu0 %v1682_v28 }
 0x119   : > { %3571 = vmatmul.mubr.bf16.gmra.mrb[84].mxu1 %v4443_v17 }
 0x11a   : > { %v3080_v5 = vpop.f32.mrb[12].mxu0  ;;  %3574 = vmatprep.mubr.bf16.mxu1 %v1677_v2 }
 0x11b   : > { %v3081_v58 = vpop.f32.mrb[13].mxu0 }
 0x11c   : > { %v4477_v59 = vadd.f32 %v3081_v58, %v3080_v5  ;;  %v3083_v60 = vpop.f32.mrb[14].mxu0  ;;  %v1687_v58 = vpack.c.bf16 %v1668_v48, %v1667_v49 }
 0x11d   : > { %v3084_v0 = vpop.f32.mrb[15].mxu0 }
 0x11e   : > { %v4479_v3 = vadd.f32 %v3084_v0, %v3083_v60 }
 0x11f   : > { %1995 = vmatmul.mubr.bf16.gmra.mrb[120].mxu0 %v1681_v46 }
 0x120   : > { %2002 = vmatprep.mubr.bf16.mxu0 %v1683_v62 }
 0x121   : > { %3575 = vmatmul.mubr.bf16.gmra.mrb[88].mxu1 %v1678_v35 }
 0x122   : > { %v3086_v10 = vpop.f32.mrb[16].mxu0  ;;  %3578 = vmatprep.mubr.bf16.mxu1 %v1679_v50 }
 0x123   : > { %v3087_v7 = vpop.f32.mrb[17].mxu0  ;;  %v3198_v12 = vpop.f32.mrb[16].mxu1 }
 0x124   : > { %v4481_v13 = vadd.f32 %v3087_v7, %v3086_v10  ;;  %v3089_v51 = vpop.f32.mrb[18].mxu0  ;;  %v3199_v56 = vpop.f32.mrb[17].mxu1 }
 0x125   : > { %v3090_v15 = vpop.f32.mrb[19].mxu0  ;;  %v4483_v63 = vadd.f32 %v3199_v56, %v3198_v12  ;;  %v3201_v21 = vpop.f32.mrb[18].mxu1 }
 0x126   : > { %v4485_v24 = vadd.f32 %v3090_v15, %v3089_v51  ;;  %v3202_v61 = vpop.f32.mrb[19].mxu1  ;;  %v1669_v51 = vld [vmem:[#allocation2 + $0x19a] sm:$0xff] }
 0x127   : > { %2003 = vmatmul.mubr.bf16.gmra.mrb[124].mxu0 %v1682_v28  ;;  %v4487_v8 = vadd.f32 %v3202_v61, %v3201_v21 }
 0x128   : > { %2010 = vmatprep.mubr.bf16.mxu0 %v1684_v18 }
 0x129   : > { %3579 = vmatmul.mubr.bf16.gmra.mrb[92].mxu1 %v1680_v14 }
 0x12a   : > { %v3092_v17 = vpop.f32.mrb[20].mxu0  ;;  %3582 = vmatprep.mubr.bf16.mxu1 %v1681_v46 }
 0x12b   : > { %v3093_v22 = vpop.f32.mrb[21].mxu0  ;;  %v3204_v27 = vpop.f32.mrb[20].mxu1 }
 0x12c   : > { %v4489_v32 = vadd.f32 %v3093_v22, %v3092_v17  ;;  %v3095_v2 = vpop.f32.mrb[22].mxu0  ;;  %v3205_v16 = vpop.f32.mrb[21].mxu1 }
 0x12d   : > { %v3096_v35 = vpop.f32.mrb[23].mxu0  ;;  %v4491_v31 = vadd.f32 %v3205_v16, %v3204_v27  ;;  %v3207_v33 = vpop.f32.mrb[22].mxu1 }
 0x12e   : > { %v4493_v50 = vadd.f32 %v3096_v35, %v3095_v2  ;;  %v3208_v1 = vpop.f32.mrb[23].mxu1 }
 0x12f   : > { %2011 = vmatmul.mubr.bf16.gmra.mrb[128].mxu0 %v1683_v62  ;;  %v4495_v37 = vadd.f32 %v3208_v1, %v3207_v33 }
 0x130   : > { %2018 = vmatprep.mubr.bf16.mxu0 %v1685_v34 }
 0x131   : > { %3583 = vmatmul.mubr.bf16.gmra.mrb[0].mxu1 %v1682_v28 }
 0x132   : > { %v3098_v29 = vpop.f32.mrb[24].mxu0  ;;  %3586 = vmatprep.mubr.bf16.mxu1 %v1683_v62 }
 0x133   : > { %v3099_v14 = vpop.f32.mrb[25].mxu0  ;;  %v3210_v38 = vpop.f32.mrb[24].mxu1 }
 0x134   : > { %v4497_v20 = vadd.f32 %v3099_v14, %v3098_v29  ;;  %v3101_v40 = vpop.f32.mrb[26].mxu0  ;;  %v3211_v42 = vpop.f32.mrb[25].mxu1 }
 0x135   : > { %v3102_v9 = vpop.f32.mrb[27].mxu0  ;;  %v4499_v46 = vadd.f32 %v3211_v42, %v3210_v38  ;;  %v3213_v43 = vpop.f32.mrb[26].mxu1 }
 0x136   : > { %v4501_v45 = vadd.f32 %v3102_v9, %v3101_v40  ;;  %v3214_v47 = vpop.f32.mrb[27].mxu1 }
 0x137   : > { %2019 = vmatmul.mubr.bf16.gmra.mrb[132].mxu0 %v1684_v18  ;;  %v4503_v52 = vadd.f32 %v3214_v47, %v3213_v43 }
 0x138   : > { %2026 = vmatprep.mubr.bf16.mxu0 %v1686_v11 }
 0x139   : > { %3587 = vmatmul.mubr.bf16.gmra.mrb[4].mxu1 %v1684_v18  ;;  %v1670_v18 = vld [vmem:[#allocation2 + $0x1a2] sm:$0xff] }
 0x13a   : > { %v3104_v28 = vpop.f32.mrb[28].mxu0  ;;  %3590 = vmatprep.mubr.bf16.mxu1 %v1685_v34  ;;  %v1688_v17 = vpack.c.bf16 %v1670_v18, %v1669_v51 }
 0x13b   : > { %v3105_v23 = vpop.f32.mrb[29].mxu0  ;;  %v3216_v54 = vpop.f32.mrb[28].mxu1 }
 0x13c   : > { %v4505_v57 = vadd.f32 %v3105_v23, %v3104_v28  ;;  %v3107_v5 = vpop.f32.mrb[30].mxu0  ;;  %v3217_v60 = vpop.f32.mrb[29].mxu1 }
 0x13d   : > { %v3108_v62 = vpop.f32.mrb[31].mxu0  ;;  %v4507_v0 = vadd.f32 %v3217_v60, %v3216_v54  ;;  %v3219_v4 = vpop.f32.mrb[30].mxu1 }
 0x13e   : > { %v4509_v6 = vadd.f32 %v3108_v62, %v3107_v5  ;;  %v3220_v10 = vpop.f32.mrb[31].mxu1 }
 0x13f   : > { %2027 = vmatmul.mubr.bf16.gmra.mrb[136].mxu0 %v1685_v34  ;;  %v4511_v7 = vadd.f32 %v3220_v10, %v3219_v4 }
 0x140   : > { %2034 = vmatprep.mubr.bf16.mxu0 %v1687_v58 }
 0x141   : > { %3591 = vmatmul.mubr.bf16.gmra.mrb[8].mxu1 %v1686_v11 }
 0x142   : > { %v3110_v12 = vpop.f32.mrb[32].mxu0  ;;  %3594 = vmatprep.mubr.bf16.mxu1 %v1687_v58 }
 0x143   : > { %v3111_v56 = vpop.f32.mrb[33].mxu0  ;;  %v3222_v15 = vpop.f32.mrb[32].mxu1 }
 0x144   : > { %v3112_v21 = vadd.f32 %v3111_v56, %v3110_v12  ;;  %v3113_v61 = vpop.f32.mrb[34].mxu0  ;;  %v3223_v26 = vpop.f32.mrb[33].mxu1 }
 0x145   : > { %v3114_v30 = vpop.f32.mrb[35].mxu0  ;;  %v4513_v22 = vadd.f32 %v3223_v26, %v3222_v15  ;;  %v3225_v27 = vpop.f32.mrb[34].mxu1 }
 0x146   : > { %v3115_v2 = vadd.f32 %v3114_v30, %v3113_v61  ;;  %v3226_v34 = vpop.f32.mrb[35].mxu1 }
 0x147   : > { %2035 = vmatmul.mubr.bf16.gmra.mrb[140].mxu0 %v1686_v11  ;;  %v4515_v16 = vadd.f32 %v3226_v34, %v3225_v27 }
 0x149   : > { %3595 = vmatmul.mubr.bf16.gmra.mrb[12].mxu1 %v1688_v17 }
 0x14a   : > { %v3116_v35 = vpop.f32.mrb[36].mxu0 }
 0x14b   : > { %v3117_v33 = vpop.f32.mrb[37].mxu0  ;;  %v3228_v1 = vpop.f32.mrb[36].mxu1 }
 0x14c   : > { %v3118_v55 = vadd.f32 %v3117_v33, %v3116_v35  ;;  %v3119_v36 = vpop.f32.mrb[38].mxu0  ;;  %v3229_v29 = vpop.f32.mrb[37].mxu1 }
 0x14d   : > { %v3120_v14 = vpop.f32.mrb[39].mxu0  ;;  %v4517_v38 = vadd.f32 %v3229_v29, %v3228_v1  ;;  %v3231_v40 = vpop.f32.mrb[38].mxu1 }
 0x14e   : > { %v3121_v42 = vadd.f32 %v3120_v14, %v3119_v36  ;;  %v3232_v9 = vpop.f32.mrb[39].mxu1 }
 0x14f   : > { %v4519_v43 = vadd.f32 %v3232_v9, %v3231_v40 }
 0x152   : > { %v3122_v47 = vpop.f32.mrb[40].mxu0 }
 0x153   : > { %v3123_v49 = vpop.f32.mrb[41].mxu0  ;;  %v3234_v11 = vpop.f32.mrb[40].mxu1 }
 0x154   : > { %v3124_v48 = vadd.f32 %v3123_v49, %v3122_v47  ;;  %v3125_v28 = vpop.f32.mrb[42].mxu0  ;;  %v3235_v23 = vpop.f32.mrb[41].mxu1 }
 0x155   : > { %v3126_v54 = vpop.f32.mrb[43].mxu0  ;;  %v4521_v5 = vadd.f32 %v3235_v23, %v3234_v11  ;;  %v3237_v58 = vpop.f32.mrb[42].mxu1 }
 0x156   : > { %v3127_v60 = vadd.f32 %v3126_v54, %v3125_v28  ;;  %v3238_v62 = vpop.f32.mrb[43].mxu1 }
 0x157   : > { %v4523_v4 = vadd.f32 %v3238_v62, %v3237_v58 }
 0x15a   : > { %v3128_v10 = vpop.f32.mrb[44].mxu0 }
 0x15b   : > { %v3129_v12 = vpop.f32.mrb[45].mxu0  ;;  %v3240_v51 = vpop.f32.mrb[44].mxu1 }
 0x15c   : > { %v3130_v18 = vadd.f32 %v3129_v12, %v3128_v10  ;;  %v3131_v56 = vpop.f32.mrb[46].mxu0  ;;  %v3241_v15 = vpop.f32.mrb[45].mxu1 }
 0x15d   : > { %v3132_v61 = vpop.f32.mrb[47].mxu0  ;;  %v4525_v26 = vadd.f32 %v3241_v15, %v3240_v51  ;;  %v3243_v30 = vpop.f32.mrb[46].mxu1 }
 0x15e   : > { %v3133_v17 = vadd.f32 %v3132_v61, %v3131_v56  ;;  %v3244_v27 = vpop.f32.mrb[47].mxu1 }
 0x15f   : > { %v4527_v34 = vadd.f32 %v3244_v27, %v3243_v30 }
 0x162   : > { %v3134_v35 = vpop.f32.mrb[48].mxu0 }
 0x163   : > { %v3135_v33 = vpop.f32.mrb[49].mxu0  ;;  %v3246_v1 = vpop.f32.mrb[48].mxu1 }
 0x164   : > { %v4529_v36 = vadd.f32 %v3135_v33, %v3134_v35  ;;  %v3137_v29 = vpop.f32.mrb[50].mxu0  ;;  %v3247_v14 = vpop.f32.mrb[49].mxu1 }
 0x165   : > { %v3138_v40 = vpop.f32.mrb[51].mxu0  ;;  %v3248_v9 = vadd.f32 %v3247_v14, %v3246_v1  ;;  %v3249_v47 = vpop.f32.mrb[50].mxu1 }
 0x166   : > { %v4531_v49 = vadd.f32 %v3138_v40, %v3137_v29  ;;  %v3250_v11 = vpop.f32.mrb[51].mxu1 }
 0x167   : > { %v4533_v28 = vadd.f32 %v3248_v9, %v3112_v21  ;;  %v3251_v23 = vadd.f32 %v3250_v11, %v3249_v47 }
 0x169   : > { %v4535_v54 = vadd.f32 %v3251_v23, %v3115_v2 }
 0x16a   : > { %v3140_v58 = vpop.f32.mrb[52].mxu0 }
 0x16b   : > { %v3141_v62 = vpop.f32.mrb[53].mxu0  ;;  %v3252_v10 = vpop.f32.mrb[52].mxu1 }
 0x16c   : > { %v4537_v12 = vadd.f32 %v3141_v62, %v3140_v58  ;;  %v3143_v51 = vpop.f32.mrb[54].mxu0  ;;  %v3253_v56 = vpop.f32.mrb[53].mxu1 }
 0x16d   : > { %v3144_v15 = vpop.f32.mrb[55].mxu0  ;;  %v3254_v61 = vadd.f32 %v3253_v56, %v3252_v10  ;;  %v3255_v30 = vpop.f32.mrb[54].mxu1 }
 0x16e   : > { %v4539_v27 = vadd.f32 %v3144_v15, %v3143_v51  ;;  %v3256_v35 = vpop.f32.mrb[55].mxu1 }
 0x16f   : > { %v4541_v33 = vadd.f32 %v3254_v61, %v3118_v55  ;;  %v3257_v21 = vadd.f32 %v3256_v35, %v3255_v30 }
 0x171   : > { %v4543_v1 = vadd.f32 %v3257_v21, %v3121_v42 }
 0x172   : > { %v3146_v2 = vpop.f32.mrb[56].mxu0 }
 0x173   : > { %4963 = vst [vmem:[#allocation3_spill] sm:$0xff] %v4543_v1  ;;  %v3147_v29 = vpop.f32.mrb[57].mxu0  ;;  %v3258_v14 = vpop.f32.mrb[56].mxu1 }
 0x174   : > { %v4545_v40 = vadd.f32 %v3147_v29, %v3146_v2  ;;  %v3149_v9 = vpop.f32.mrb[58].mxu0  ;;  %v3259_v47 = vpop.f32.mrb[57].mxu1 }
 0x175   : > { %v3150_v11 = vpop.f32.mrb[59].mxu0  ;;  %v3260_v23 = vadd.f32 %v3259_v47, %v3258_v14  ;;  %v3261_v58 = vpop.f32.mrb[58].mxu1 }
 0x176   : > { %v4547_v62 = vadd.f32 %v3150_v11, %v3149_v9  ;;  %v3262_v10 = vpop.f32.mrb[59].mxu1 }
 0x177   : > { %v4549_v51 = vadd.f32 %v3260_v23, %v3124_v48  ;;  %v3263_v55 = vadd.f32 %v3262_v10, %v3261_v58 }
 0x179   : > { %v4551_v56 = vadd.f32 %v3263_v55, %v3127_v60 }
 0x17a   : > { %v3152_v42 = vpop.f32.mrb[60].mxu0 }
 0x17b   : > { %v3153_v15 = vpop.f32.mrb[61].mxu0  ;;  %v3264_v61 = vpop.f32.mrb[60].mxu1 }
 0x17c   : > { %v4553_v30 = vadd.f32 %v3153_v15, %v3152_v42  ;;  %v3155_v35 = vpop.f32.mrb[62].mxu0  ;;  %v3265_v21 = vpop.f32.mrb[61].mxu1 }
 0x17d   : > { %v3156_v2 = vpop.f32.mrb[63].mxu0  ;;  %v3266_v29 = vadd.f32 %v3265_v21, %v3264_v61  ;;  %v3267_v1 = vpop.f32.mrb[62].mxu1 }
 0x17e   : > { %v4555_v14 = vadd.f32 %v3156_v2, %v3155_v35  ;;  %v3268_v9 = vpop.f32.mrb[63].mxu1 }
 0x17f   : > { %v4557_v47 = vadd.f32 %v3266_v29, %v3130_v18  ;;  %v3269_v48 = vadd.f32 %v3268_v9, %v3267_v1 }
 0x181   : > { %v4559_v11 = vadd.f32 %v3269_v48, %v3133_v17 }
 0x182   : > { %v3472_v60 = vpop.f32.mrb[64].mxu0 }
 0x183   : > { %v1051_v23 = vadd.f32 %v3472_v60, %v4466_v25  ;;  %v1042_v58 = vpop.f32.mrb[65].mxu0 }
 0x184   : > { %v3270_v10 = vpop.f32.mrb[64].mxu1  ;;  %v1043_v55 = vadd.f32 %v4460_v39, %v1042_v58  ;;  %v3473_v42 = vpop.f32.mrb[66].mxu0 }
 0x185   : > { %v4564_v15 = vadd.f32 %v4491_v31, %v1051_v23  ;;  %v3271_v61 = vpop.f32.mrb[65].mxu1  ;;  %v1054_v35 = vadd.f32 %v3473_v42, %v4468_v44  ;;  %v1045_v21 = vpop.f32.mrb[67].mxu0 }
 0x186   : > { %v4568_v18 = vadd.f32 %v4483_v63, %v1043_v55  ;;  %v3272_v17 = vadd.f32 %v3271_v61, %v3270_v10  ;;  %v3273_v1 = vpop.f32.mrb[66].mxu1  ;;  %v1046_v2 = vadd.f32 %v4462_v41, %v1045_v21 }
 0x187   : > { %v4572_v25 = vadd.f32 %v4495_v37, %v1054_v35  ;;  %v3274_v29 = vpop.f32.mrb[67].mxu1 }
 0x188   : > { %v4575_v39 = vadd.f32 %v3272_v17, %v4529_v36  ;;  %v4578_v31 = vadd.f32 %v4487_v8, %v1046_v2  ;;  %v3275_v9 = vadd.f32 %v3274_v29, %v3273_v1 }
 0x18a   : > { %v4581_v44 = vadd.f32 %v3275_v9, %v4531_v49  ;;  %v3476_v63 = vpop.f32.mrb[68].mxu0 }
 0x18b   : > { %v1067_v48 = vadd.f32 %v3476_v63, %v4477_v59  ;;  %v1058_v60 = vpop.f32.mrb[69].mxu0 }
 0x18c   : > { %v3276_v23 = vpop.f32.mrb[68].mxu1  ;;  %v1059_v41 = vadd.f32 %v4472_v19, %v1058_v60  ;;  %v3477_v37 = vpop.f32.mrb[70].mxu0 }
 0x18d   : > { %v4586_v58 = vadd.f32 %v4507_v0, %v1067_v48  ;;  %v3277_v36 = vpop.f32.mrb[69].mxu1  ;;  %v1070_v10 = vadd.f32 %v3477_v37, %v4479_v3  ;;  %v1061_v8 = vpop.f32.mrb[71].mxu0 }
 0x18e   : > { %v4590_v55 = vadd.f32 %v4499_v46, %v1059_v41  ;;  %v3278_v49 = vadd.f32 %v3277_v36, %v3276_v23  ;;  %v3279_v42 = vpop.f32.mrb[70].mxu1  ;;  %v1062_v61 = vadd.f32 %v4474_v53, %v1061_v8 }
 0x18f   : > { %v4594_v59 = vadd.f32 %v4511_v7, %v1070_v10  ;;  %v3280_v35 = vpop.f32.mrb[71].mxu1 }
 0x190   : > { %v4597_v19 = vadd.f32 %v3278_v49, %v4537_v12  ;;  %v4600_v0 = vadd.f32 %v4503_v52, %v1062_v61  ;;  %v3281_v21 = vadd.f32 %v3280_v35, %v3279_v42 }
 0x192   : > { %v4603_v3 = vadd.f32 %v3281_v21, %v4539_v27  ;;  %v3480_v46 = vpop.f32.mrb[72].mxu0 }
 0x193   : > { %v1083_v17 = vadd.f32 %v3480_v46, %v4489_v32  ;;  %v1074_v1 = vpop.f32.mrb[73].mxu0 }
 0x194   : > { %v3282_v2 = vpop.f32.mrb[72].mxu1  ;;  %v1075_v53 = vadd.f32 %v4481_v13, %v1074_v1  ;;  %v3481_v7 = vpop.f32.mrb[74].mxu0 }
 0x195   : > { %v4608_v29 = vadd.f32 %v4517_v38, %v1083_v17  ;;  %v3283_v12 = vpop.f32.mrb[73].mxu1  ;;  %v1086_v9 = vadd.f32 %v3481_v7, %v4493_v50  ;;  %v1077_v52 = vpop.f32.mrb[75].mxu0 }
 0x196   : > { %v4612_v63 = vadd.f32 %v4513_v22, %v1075_v53  ;;  %v3284_v27 = vadd.f32 %v3283_v12, %v3282_v2  ;;  %v3285_v48 = vpop.f32.mrb[74].mxu1  ;;  %v1078_v60 = vadd.f32 %v4485_v24, %v1077_v52 }
 0x197   : > { %v4616_v32 = vadd.f32 %v4519_v43, %v1086_v9  ;;  %v3286_v23 = vpop.f32.mrb[75].mxu1 }
 0x198   : > { %v4619_v13 = vadd.f32 %v3284_v27, %v4545_v40  ;;  %v1383_v38 = vadd.f32 %v4515_v16, %v1078_v60  ;;  %v3287_v41 = vadd.f32 %v3286_v23, %v3285_v48 }
 0x19a   : > { %v4623_v50 = vadd.f32 %v3287_v41, %v4547_v62  ;;  %v3484_v37 = vpop.f32.mrb[76].mxu0 }
 0x19b   : > { %v1099_v22 = vadd.f32 %v3484_v37, %v4505_v57  ;;  %v1090_v36 = vpop.f32.mrb[77].mxu0 }
 0x19c   : > { %v3288_v10 = vpop.f32.mrb[76].mxu1  ;;  %v1091_v24 = vadd.f32 %v4497_v20, %v1090_v36  ;;  %v3485_v8 = vpop.f32.mrb[78].mxu0 }
 0x19d   : > { %v4628_v43 = vadd.f32 %v4525_v26, %v1099_v22  ;;  %v3289_v49 = vpop.f32.mrb[77].mxu1  ;;  %v1102_v40 = vadd.f32 %v3485_v8, %v4509_v6  ;;  %v1093_v42 = vpop.f32.mrb[79].mxu0 }
 0x19e   : > { %v4632_v16 = vadd.f32 %v4521_v5, %v1091_v24  ;;  %v3290_v62 = vadd.f32 %v3289_v49, %v3288_v10  ;;  %v3291_v61 = vpop.f32.mrb[78].mxu1  ;;  %v1094_v35 = vadd.f32 %v4501_v45, %v1093_v42 }
 0x19f   : > { %v4636_v57 = vadd.f32 %v4527_v34, %v1102_v40  ;;  %v3292_v21 = vpop.f32.mrb[79].mxu1 }
 0x1a0   : > { %v4639_v20 = vadd.f32 %v3290_v62, %v4553_v30  ;;  %v1399_v26 = vadd.f32 %v4523_v4, %v1094_v35  ;;  %v3293_v46 = vadd.f32 %v3292_v21, %v3291_v61 }
 0x1a2   : > { %v4643_v6 = vadd.f32 %v3293_v46, %v4555_v14  ;;  %v3334_v17 = vpop.f32.mrb[80].mxu0 }
 0x1a3   : > { %v3335_v5 = vpop.f32.mrb[81].mxu0 }
 0x1a4   : > { %v3336_v1 = vadd.f32 %v3335_v5, %v3334_v17  ;;  %v3337_v2 = vpop.f32.mrb[82].mxu0 }
 0x1a5   : > { %v3338_v53 = vpop.f32.mrb[83].mxu0 }
 0x1a6   : > { %v3339_v7 = vadd.f32 %v3338_v53, %v3337_v2  ;;  %v4646_v45 = vadd.f32 %v3336_v1, %v4568_v18 }
 0x1a8   : > { %v4649_v34 = vadd.f32 %v3339_v7, %v4578_v31 }
 0x1aa   : > { %v3340_v30 = vpop.f32.mrb[84].mxu0 }
 0x1ab   : > { %v3341_v12 = vpop.f32.mrb[85].mxu0 }
 0x1ac   : > { %v3342_v9 = vadd.f32 %v3341_v12, %v3340_v30  ;;  %v3343_v4 = vpop.f32.mrb[86].mxu0 }
 0x1ad   : > { %v3344_v52 = vpop.f32.mrb[87].mxu0 }
 0x1ae   : > { %v3345_v27 = vadd.f32 %v3344_v52, %v3343_v4  ;;  %v3616_v14 = vadd.f32 %v3342_v9, %v4564_v15 }
 0x1b0   : > { %v3624_v48 = vadd.f32 %v3345_v27, %v4572_v25 }
 0x1b2   : > { %v3346_v60 = vpop.f32.mrb[88].mxu0 }
 0x1b3   : > { %v3347_v23 = vpop.f32.mrb[89].mxu0 }
 0x1b4   : > { %v3348_v41 = vadd.f32 %v3347_v23, %v3346_v60  ;;  %v3349_v37 = vpop.f32.mrb[90].mxu0 }
 0x1b5   : > { %v3350_v22 = vpop.f32.mrb[91].mxu0 }
 0x1b6   : > { %v3351_v18 = vadd.f32 %v3350_v22, %v3349_v37  ;;  %v4654_v36 = vadd.f32 %v3348_v41, %v4590_v55 }
 0x1b8   : > { %v4657_v31 = vadd.f32 %v3351_v18, %v4600_v0 }
 0x1ba   : > { %v3352_v10 = vpop.f32.mrb[92].mxu0 }
 0x1bb   : > { %v3353_v24 = vpop.f32.mrb[93].mxu0 }
 0x1bc   : > { %v3354_v8 = vadd.f32 %v3353_v24, %v3352_v10  ;;  %v3355_v49 = vpop.f32.mrb[94].mxu0 }
 0x1bd   : > { %v3356_v40 = vpop.f32.mrb[95].mxu0 }
 0x1be   : > { %v3357_v15 = vadd.f32 %v3356_v40, %v3355_v49  ;;  %v3632_v25 = vadd.f32 %v3354_v8, %v4586_v58 }
 0x1c0   : > { %v4661_v42 = vadd.f32 %v3357_v15, %v4594_v59 }
 0x1c2   : > { %v3358_v62 = vpop.f32.mrb[96].mxu0 }
 0x1c3   : > { %v3359_v61 = vpop.f32.mrb[97].mxu0 }
 0x1c4   : > { %v3360_v35 = vadd.f32 %v3359_v61, %v3358_v62  ;;  %v3361_v21 = vpop.f32.mrb[98].mxu0 }
 0x1c5   : > { %v3362_v55 = vpop.f32.mrb[99].mxu0 }
 0x1c6   : > { %v3363_v46 = vadd.f32 %v3362_v55, %v3361_v21  ;;  %v4664_v0 = vadd.f32 %v3360_v35, %v4612_v63 }
 0x1c8   : > { %v4666_v17 = vadd.f32 %v3363_v46, %v1383_v38 }
 0x1ca   : > { %v3364_v5 = vpop.f32.mrb[100].mxu0 }
 0x1cb   : > { %v3365_v1 = vpop.f32.mrb[101].mxu0 }
 0x1cc   : > { %v3366_v2 = vadd.f32 %v3365_v1, %v3364_v5  ;;  %v3367_v53 = vpop.f32.mrb[102].mxu0 }
 0x1cd   : > { %v3368_v7 = vpop.f32.mrb[103].mxu0 }
 0x1ce   : > { %v3369_v58 = vadd.f32 %v3368_v7, %v3367_v53  ;;  %v4669_v59 = vadd.f32 %v3366_v2, %v4608_v29 }
 0x1d0   : > { %v4672_v30 = vadd.f32 %v3369_v58, %v4616_v32 }
 0x1d2   : > { %v3370_v12 = vpop.f32.mrb[104].mxu0 }
 0x1d3   : > { %v3371_v9 = vpop.f32.mrb[105].mxu0 }
 0x1d4   : > { %v3372_v4 = vadd.f32 %v3371_v9, %v3370_v12  ;;  %v3373_v52 = vpop.f32.mrb[106].mxu0 }
 0x1d5   : > { %v3374_v63 = vpop.f32.mrb[107].mxu0 }
 0x1d6   : > { %v3375_v27 = vadd.f32 %v3374_v63, %v3373_v52  ;;  %v4675_v38 = vadd.f32 %v3372_v4, %v4632_v16 }
 0x1d8   : > { %v4677_v60 = vadd.f32 %v3375_v27, %v1399_v26 }
 0x1da   : > { %v3376_v23 = vpop.f32.mrb[108].mxu0 }
 0x1db   : > { %v3377_v41 = vpop.f32.mrb[109].mxu0 }
 0x1dc   : > { %v3378_v37 = vadd.f32 %v3377_v41, %v3376_v23  ;;  %v3379_v22 = vpop.f32.mrb[110].mxu0 }
 0x1dd   : > { %v3380_v29 = vpop.f32.mrb[111].mxu0 }
 0x1de   : > { %v3381_v18 = vadd.f32 %v3380_v29, %v3379_v22  ;;  %v4680_v32 = vadd.f32 %v3378_v37, %v4628_v43  ;;  %v4964_v22 = vld [vmem:[#allocation3_spill] sm:$0xff] }
 0x1e0   : > { %v4683_v10 = vadd.f32 %v3381_v18, %v4636_v57 }
 0x1e2   : > { %v3382_v24 = vpop.f32.mrb[112].mxu0 }
 0x1e3   : > { %v3383_v8 = vpop.f32.mrb[113].mxu0 }
 0x1e4   : > { %v3568_v49 = vpop.f32.mrb[80].mxu1  ;;  %v3384_v16 = vadd.f32 %v3383_v8, %v3382_v24  ;;  %v3385_v40 = vpop.f32.mrb[114].mxu0 }
 0x1e5   : > { %v4685_v26 = vadd.f32 %v3616_v14, %v3568_v49  ;;  %v2077_v15 = vpop.f32.mrb[81].mxu1  ;;  %v3386_v62 = vpop.f32.mrb[115].mxu0 }
 0x1e6   : > { %v4688_v61 = vadd.f32 %v4646_v45, %v2077_v15  ;;  %v3569_v35 = vpop.f32.mrb[82].mxu1  ;;  %v3387_v21 = vadd.f32 %v3386_v62, %v3385_v40  ;;  %v4691_v43 = vadd.f32 %v4533_v28, %v3384_v16 }
 0x1e7   : > { %v4693_v55 = vadd.f32 %v3624_v48, %v3569_v35  ;;  %v2080_v57 = vpop.f32.mrb[83].mxu1 }
 0x1e8   : > { %v4703_v14 = vadd.f32 %v4649_v34, %v2080_v57  ;;  %v4706_v45 = vadd.f32 %v4535_v54, %v3387_v21 }
 0x1e9   : > { %v2944_v28 = vpack.c.bf16 %v4693_v55, %v4685_v26 }
 0x1ea   : > { %v2939_v48 = vpack.c.bf16 %v4703_v14, %v4688_v61  ;;  %v2396_v46 = vadd.f32 %v4703_v14, %v4688_v61  ;;  %v3388_v5 = vpop.f32.mrb[116].mxu0 }
 0x1eb   : > { %3031 = vst [vmem:[%s4700_s17 + $0x8] sm:$0xff] %v2944_v28   ;;  %v3389_v1 = vpop.f32.mrb[117].mxu0 }
 0x1ec   : > { %2940 = vst [vmem:[%s4700_s17] sm:$0xff] %v2939_v48   ;;  %v2397_v2 = vadd.f32 %v4685_v26, %v2396_v46  ;;  %v3572_v34 = vpop.f32.mrb[84].mxu1  ;;  %v3390_v53 = vadd.f32 %v3389_v1, %v3388_v5  ;;  %v3391_v7 = vpop.f32.mrb[118].mxu0 }
 0x1ed   : > { %v4717_v54 = vadd.f32 %v3632_v25, %v3572_v34  ;;  %v2093_v58 = vpop.f32.mrb[85].mxu1  ;;  %v3392_v12 = vpop.f32.mrb[119].mxu0 }
 0x1ee   : > { %v4720_v9 = vadd.f32 %v4654_v36, %v2093_v58  ;;  %v2398_v4 = vadd.f32 %v4693_v55, %v2397_v2  ;;  %v3573_v52 = vpop.f32.mrb[86].mxu1  ;;  %v3393_v63 = vadd.f32 %v3392_v12, %v3391_v7  ;;  %v4724_v27 = vadd.f32 %v4541_v33, %v3390_v53 }
 0x1ef   : > { %v4727_v23 = vadd.f32 %v4661_v42, %v3573_v52  ;;  %v2096_v41 = vpop.f32.mrb[87].mxu1 }
 0x1f0   : > { %v2399_v25 = vadd.f32 %v4720_v9, %v2398_v4  ;;  %v4731_v37 = vadd.f32 %v4657_v31, %v2096_v41  ;;  %v4734_v36 = vadd.f32 %v4964_v22, %v3393_v63 }
 0x1f1   : > { %v2954_v29 = vpack.c.bf16 %v4727_v23, %v4717_v54 }
 0x1f2   : > { %v2949_v18 = vpack.c.bf16 %v4731_v37, %v4720_v9  ;;  %v2400_v33 = vadd.f32 %v4731_v37, %v2399_v25  ;;  %v3394_v24 = vpop.f32.mrb[120].mxu0 }
 0x1f3   : > { %3033 = vst [vmem:[%s4700_s17 + $0x18] sm:$0xff] %v2954_v29   ;;  %v3395_v42 = vpop.f32.mrb[121].mxu0 }
 0x1f4   : > { %3032 = vst [vmem:[%s4700_s17 + $0x10] sm:$0xff] %v2949_v18   ;;  %v2401_v8 = vadd.f32 %v4717_v54, %v2400_v33  ;;  %v3576_v49 = vpop.f32.mrb[88].mxu1  ;;  %v3396_v31 = vadd.f32 %v3395_v42, %v3394_v24  ;;  %v3397_v16 = vpop.f32.mrb[122].mxu0 }
 0x1f5   : > { %v4745_v40 = vadd.f32 %v4669_v59, %v3576_v49  ;;  %v2109_v15 = vpop.f32.mrb[89].mxu1  ;;  %v3398_v62 = vpop.f32.mrb[123].mxu0 }
 0x1f6   : > { %v4748_v35 = vadd.f32 %v4664_v0, %v2109_v15  ;;  %v2402_v21 = vadd.f32 %v4727_v23, %v2401_v8  ;;  %v3577_v57 = vpop.f32.mrb[90].mxu1  ;;  %v3399_v28 = vadd.f32 %v3398_v62, %v3397_v16  ;;  %v4752_v48 = vadd.f32 %v4549_v51, %v3396_v31 }
 0x1f7   : > { %v4755_v46 = vadd.f32 %v4672_v30, %v3577_v57  ;;  %v2112_v5 = vpop.f32.mrb[91].mxu1 }
 0x1f8   : > { %v2403_v59 = vadd.f32 %v4748_v35, %v2402_v21  ;;  %v4759_v1 = vadd.f32 %v4666_v17, %v2112_v5  ;;  %v4762_v0 = vadd.f32 %v4551_v56, %v3399_v28 }
 0x1f9   : > { %v2964_v2 = vpack.c.bf16 %v4755_v46, %v4745_v40 }
 0x1fa   : > { %v2959_v34 = vpack.c.bf16 %v4759_v1, %v4748_v35  ;;  %v2404_v51 = vadd.f32 %v4759_v1, %v2403_v59  ;;  %v3400_v53 = vpop.f32.mrb[124].mxu0 }
 0x1fb   : > { %3035 = vst [vmem:[%s4700_s17 + $0x28] sm:$0xff] %v2964_v2   ;;  %v3401_v30 = vpop.f32.mrb[125].mxu0 }
 0x1fc   : > { %3034 = vst [vmem:[%s4700_s17 + $0x20] sm:$0xff] %v2959_v34   ;;  %v2405_v7 = vadd.f32 %v4745_v40, %v2404_v51  ;;  %v3580_v58 = vpop.f32.mrb[92].mxu1  ;;  %v3402_v17 = vadd.f32 %v3401_v30, %v3400_v53  ;;  %v3403_v12 = vpop.f32.mrb[126].mxu0 }
 0x1fd   : > { %v4773_v56 = vadd.f32 %v4680_v32, %v3580_v58  ;;  %v2125_v4 = vpop.f32.mrb[93].mxu1  ;;  %v3404_v52 = vpop.f32.mrb[127].mxu0 }
 0x1fe   : > { %v4776_v63 = vadd.f32 %v4675_v38, %v2125_v4  ;;  %v2406_v41 = vadd.f32 %v4755_v46, %v2405_v7  ;;  %v3581_v25 = vpop.f32.mrb[94].mxu1  ;;  %v3405_v22 = vadd.f32 %v3404_v52, %v3403_v12  ;;  %v3691_v29 = vadd.f32 %v4557_v47, %v3402_v17 }
 0x1ff   : > { %v4781_v18 = vadd.f32 %v4683_v10, %v3581_v25  ;;  %v2128_v33 = vpop.f32.mrb[95].mxu1 }
 0x200   : > { %v2407_v32 = vadd.f32 %v4776_v63, %v2406_v41  ;;  %v4785_v24 = vadd.f32 %v4677_v60, %v2128_v33  ;;  %v3697_v42 = vadd.f32 %v4559_v11, %v3405_v22 }
 0x201   : > { %v2974_v38 = vpack.c.bf16 %v4781_v18, %v4773_v56 }
 0x202   : > { %v2969_v8 = vpack.c.bf16 %v4785_v24, %v4776_v63  ;;  %v2408_v49 = vadd.f32 %v4785_v24, %v2407_v32  ;;  %v3406_v47 = vpop.f32.mrb[128].mxu0 }
 0x203   : > { %3037 = vst [vmem:[%s4700_s17 + $0x38] sm:$0xff] %v2974_v38   ;;  %v3407_v10 = vpop.f32.mrb[129].mxu0 }
 0x204   : > { %3036 = vst [vmem:[%s4700_s17 + $0x30] sm:$0xff] %v2969_v8   ;;  %v2409_v31 = vadd.f32 %v4773_v56, %v2408_v49  ;;  %v3584_v16 = vpop.f32.mrb[0].mxu1  ;;  %v3408_v15 = vadd.f32 %v3407_v10, %v3406_v47  ;;  %v3409_v60 = vpop.f32.mrb[130].mxu0 }
 0x205   : > { %v4797_v62 = vadd.f32 %v4724_v27, %v3584_v16  ;;  %v2141_v11 = vpop.f32.mrb[1].mxu1  ;;  %v3410_v21 = vpop.f32.mrb[131].mxu0 }
 0x206   : > { %v4800_v57 = vadd.f32 %v4691_v43, %v2141_v11  ;;  %v2410_v28 = vadd.f32 %v4781_v18, %v2409_v31  ;;  %v3585_v5 = vpop.f32.mrb[2].mxu1  ;;  %v3411_v59 = vadd.f32 %v3410_v21, %v3409_v60  ;;  %v3706_v2 = vadd.f32 %v4575_v39, %v3408_v15 }
 0x207   : > { %v4805_v34 = vadd.f32 %v4734_v36, %v3585_v5  ;;  %v2144_v51 = vpop.f32.mrb[3].mxu1 }
 0x208   : > { %v2411_v27 = vadd.f32 %v4800_v57, %v2410_v28  ;;  %v4809_v53 = vadd.f32 %v4706_v45, %v2144_v51  ;;  %v3712_v30 = vadd.f32 %v4581_v44, %v3411_v59 }
 0x209   : > { %v2984_v43 = vpack.c.bf16 %v4805_v34, %v4797_v62 }
 0x20a   : > { %v2979_v7 = vpack.c.bf16 %v4809_v53, %v4800_v57  ;;  %v2412_v58 = vadd.f32 %v4809_v53, %v2411_v27  ;;  %v3412_v39 = vpop.f32.mrb[132].mxu0 }
 0x20b   : > { %3039 = vst [vmem:[%s4700_s17 + $0x48] sm:$0xff] %v2984_v43   ;;  %v3413_v36 = vpop.f32.mrb[133].mxu0 }
 0x20c   : > { %3038 = vst [vmem:[%s4700_s17 + $0x40] sm:$0xff] %v2979_v7   ;;  %v2413_v17 = vadd.f32 %v4797_v62, %v2412_v58  ;;  %v3588_v12 = vpop.f32.mrb[4].mxu1  ;;  %v3414_v4 = vadd.f32 %v3413_v36, %v3412_v39  ;;  %v3415_v45 = vpop.f32.mrb[134].mxu0 }
 0x20d   : > { %v4820_v52 = vadd.f32 %v3691_v29, %v3588_v12  ;;  %v2157_v44 = vpop.f32.mrb[5].mxu1  ;;  %v3416_v41 = vpop.f32.mrb[135].mxu0 }
 0x20e   : > { %v4823_v25 = vadd.f32 %v4752_v48, %v2157_v44  ;;  %v2414_v22 = vadd.f32 %v4805_v34, %v2413_v17  ;;  %v3589_v33 = vpop.f32.mrb[6].mxu1  ;;  %v3417_v32 = vadd.f32 %v3416_v41, %v3415_v45  ;;  %v3703_v38 = vadd.f32 %v4597_v19, %v3414_v4 }
 0x20f   : > { %v4827_v8 = vadd.f32 %v3697_v42, %v3589_v33  ;;  %v2160_v49 = vpop.f32.mrb[7].mxu1 }
 0x210   : > { %v2415_v47 = vadd.f32 %v4823_v25, %v2414_v22  ;;  %v4831_v29 = vadd.f32 %v4762_v0, %v2160_v49  ;;  %v3709_v10 = vadd.f32 %v4603_v3, %v3417_v32 }
 0x211   : > { %v2994_v48 = vpack.c.bf16 %v4827_v8, %v4820_v52 }
 0x212   : > { %v2989_v31 = vpack.c.bf16 %v4831_v29, %v4823_v25  ;;  %v2416_v16 = vadd.f32 %v4831_v29, %v2415_v47  ;;  %v3418_v15 = vpop.f32.mrb[136].mxu0 }
 0x213   : > { %3041 = vst [vmem:[%s4700_s17 + $0x58] sm:$0xff] %v2994_v48   ;;  %v3419_v19 = vpop.f32.mrb[137].mxu0 }
 0x214   : > { %3040 = vst [vmem:[%s4700_s17 + $0x50] sm:$0xff] %v2989_v31   ;;  %v2417_v42 = vadd.f32 %v4820_v52, %v2416_v16  ;;  %v3592_v60 = vpop.f32.mrb[8].mxu1  ;;  %v3420_v11 = vadd.f32 %v3419_v19, %v3418_v15  ;;  %v3421_v0 = vpop.f32.mrb[138].mxu0 }
 0x215   : > { %v4842_v21 = vadd.f32 %v3703_v38, %v3592_v60  ;;  %v2173_v3 = vpop.f32.mrb[9].mxu1  ;;  %v3422_v28 = vpop.f32.mrb[139].mxu0 }
 0x216   : > { %v4844_v5 = vadd.f32 %v3706_v2, %v2173_v3  ;;  %v2418_v59 = vadd.f32 %v4827_v8, %v2417_v42  ;;  %v3593_v51 = vpop.f32.mrb[10].mxu1  ;;  %v3423_v27 = vadd.f32 %v3422_v28, %v3421_v0  ;;  %v3718_v43 = vadd.f32 %v4619_v13, %v3420_v11 }
 0x217   : > { %v4848_v7 = vadd.f32 %v3709_v10, %v3593_v51  ;;  %v2176_v58 = vpop.f32.mrb[11].mxu1 }
 0x218   : > { %v2419_v39 = vadd.f32 %v4844_v5, %v2418_v59  ;;  %v4851_v36 = vadd.f32 %v3712_v30, %v2176_v58  ;;  %v3724_v17 = vadd.f32 %v4623_v50, %v3423_v27 }
 0x219   : > { %v3004_v2 = vpack.c.bf16 %v4848_v7, %v4842_v21 }
 0x21a   : > { %v2999_v12 = vpack.c.bf16 %v4851_v36, %v4844_v5  ;;  %v2420_v4 = vadd.f32 %v4851_v36, %v2419_v39  ;;  %v3424_v45 = vpop.f32.mrb[140].mxu0 }
 0x21b   : > { %3043 = vst [vmem:[%s4700_s17 + $0x68] sm:$0xff] %v3004_v2   ;;  %v3425_v13 = vpop.f32.mrb[141].mxu0 }
 0x21c   : > { %3042 = vst [vmem:[%s4700_s17 + $0x60] sm:$0xff] %v2999_v12   ;;  %v2421_v44 = vadd.f32 %v4842_v21, %v2420_v4  ;;  %v3596_v41 = vpop.f32.mrb[12].mxu1  ;;  %v3426_v22 = vadd.f32 %v3425_v13, %v3424_v45  ;;  %v3427_v30 = vpop.f32.mrb[142].mxu0 }
 0x21d   : > { %v2189_v33 = vpop.f32.mrb[13].mxu1  ;;  %v3428_v50 = vpop.f32.mrb[143].mxu0 }
 0x21e   : > { %v3715_v32 = vadd.f32 %v4639_v20, %v3426_v22  ;;  %v4863_v38 = vadd.f32 %v3718_v43, %v2189_v33  ;;  %v2422_v49 = vadd.f32 %v4848_v7, %v2421_v44  ;;  %v3597_v47 = vpop.f32.mrb[14].mxu1  ;;  %v3429_v10 = vadd.f32 %v3428_v50, %v3427_v30 }
 0x21f   : > { %v2192_v48 = vpop.f32.mrb[15].mxu1 }
 0x220   : > { %v4866_v31 = vadd.f32 %v3715_v32, %v3596_v41  ;;  %v2423_v16 = vadd.f32 %v4863_v38, %v2422_v49  ;;  %v3721_v15 = vadd.f32 %v4643_v6, %v3429_v10  ;;  %v4870_v19 = vadd.f32 %v3724_v17, %v2192_v48 }
 0x222   : > { %v4872_v42 = vadd.f32 %v3721_v15, %v3597_v47  ;;  %v3009_v20 = vpack.c.bf16 %v4870_v19, %v4863_v38  ;;  %v2424_v60 = vadd.f32 %v4870_v19, %v2423_v16 }
 0x224   : > { %v3014_v11 = vpack.c.bf16 %v4872_v42, %v4866_v31  ;;  %3044 = vst [vmem:[%s4700_s17 + $0x70] sm:$0xff] %v3009_v20   ;;  %v2425_v0 = vadd.f32 %v4866_v31, %v2424_v60 }
 0x226   : > { %3045 = vst [vmem:[%s4700_s17 + $0x78] sm:$0xff] %v3014_v11   ;;  %v2426_v3 = vadd.f32 %v4872_v42, %v2425_v0 }
 0x228   : > { %v2427_v28 = vrot.slane %v2426_v3, 4 }
 0x22a   : > { %v2428_v6 = vadd.f32 %v2427_v28, %v2426_v3 }
 0x22c   : > { %v2429_v59 = vrot.slane %v2428_v6, 2 }
 0x22e   : > { %v2430_v51 = vadd.f32 %v2429_v59, %v2428_v6 }
 0x230   : > { %v2431_v27 = vrot.slane %v2430_v51, 1 }
 0x232   : > { %v2432_v43 = vadd.f32 %v2431_v27, %v2430_v51 }
 0x234   : > { %v4883_v58 = vmul.f32 0.00390625, %v2432_v43 }
 0x236   : > { %v2434_v39 = vsub.f32 %v4688_v61, %v4883_v58  ;;  %v2435_v17 = vsub.f32 %v4703_v14, %v4883_v58  ;;  %v2436_v2 = vsub.f32 %v4685_v26, %v4883_v58  ;;  %v2437_v45 = vsub.f32 %v4693_v55, %v4883_v58 }
 0x237   : > { %v2438_v13 = vsub.f32 %v4720_v9, %v4883_v58  ;;  %v2439_v22 = vsub.f32 %v4731_v37, %v4883_v58  ;;  %v2440_v14 = vsub.f32 %v4717_v54, %v4883_v58  ;;  %v2441_v50 = vsub.f32 %v4727_v23, %v4883_v58 }
 0x238   : > { %v2466_v12 = vmul.f32 %v2434_v39, %v2434_v39  ;;  %v2467_v4 = vmul.f32 %v2435_v17, %v2435_v17  ;;  %v2468_v44 = vmul.f32 %v2436_v2, %v2436_v2  ;;  %v2469_v61 = vmul.f32 %v2437_v45, %v2437_v45 }
 0x239   : > { %v2470_v33 = vmul.f32 %v2438_v13, %v2438_v13  ;;  %v2471_v32 = vmul.f32 %v2439_v22, %v2439_v22  ;;  %v2442_v9 = vsub.f32 %v4748_v35, %v4883_v58  ;;  %v2472_v49 = vmul.f32 %v2440_v14, %v2440_v14 }
 0x23a   : > { %v2498_v41 = vadd.f32 %v2467_v4, %v2466_v12  ;;  %v2443_v37 = vsub.f32 %v4759_v1, %v4883_v58  ;;  %v2473_v10 = vmul.f32 %v2441_v50, %v2441_v50  ;;  %v2444_v54 = vsub.f32 %v4745_v40, %v4883_v58 }
 0x23b   : > { %v2474_v16 = vmul.f32 %v2442_v9, %v2442_v9  ;;  %v2445_v23 = vsub.f32 %v4755_v46, %v4883_v58  ;;  %v2446_v35 = vsub.f32 %v4776_v63, %v4883_v58  ;;  %v2447_v1 = vsub.f32 %v4785_v24, %v4883_v58 }
 0x23c   : > { %v2499_v30 = vadd.f32 %v2498_v41, %v2468_v44  ;;  %v2475_v20 = vmul.f32 %v2443_v37, %v2443_v37  ;;  %v2476_v11 = vmul.f32 %v2444_v54, %v2444_v54  ;;  %v2448_v40 = vsub.f32 %v4773_v56, %v4883_v58 }
 0x23d   : > { %v2477_v3 = vmul.f32 %v2445_v23, %v2445_v23  ;;  %v2478_v6 = vmul.f32 %v2446_v35, %v2446_v35  ;;  %v2449_v46 = vsub.f32 %v4781_v18, %v4883_v58  ;;  %v2479_v51 = vmul.f32 %v2447_v1, %v2447_v1 }
 0x23e   : > { %v2500_v26 = vadd.f32 %v2499_v30, %v2469_v61  ;;  %v2450_v63 = vsub.f32 %v4800_v57, %v4883_v58  ;;  %v2480_v43 = vmul.f32 %v2448_v40, %v2448_v40  ;;  %v2451_v24 = vsub.f32 %v4809_v53, %v4883_v58 }
 0x23f   : > { %v2481_v17 = vmul.f32 %v2449_v46, %v2449_v46  ;;  %v2452_v56 = vsub.f32 %v4797_v62, %v4883_v58  ;;  %v2453_v18 = vsub.f32 %v4805_v34, %v4883_v58  ;;  %v2454_v57 = vsub.f32 %v4823_v25, %v4883_v58 }
 0x240   : > { %v2501_v55 = vadd.f32 %v2500_v26, %v2470_v33  ;;  %v2482_v12 = vmul.f32 %v2450_v63, %v2450_v63  ;;  %v2483_v45 = vmul.f32 %v2451_v24, %v2451_v24  ;;  %v2455_v53 = vsub.f32 %v4831_v29, %v4883_v58 }
 0x241   : > { %v2484_v44 = vmul.f32 %v2452_v56, %v2452_v56  ;;  %v2485_v22 = vmul.f32 %v2453_v18, %v2453_v18  ;;  %v2456_v62 = vsub.f32 %v4820_v52, %v4883_v58  ;;  %v2486_v30 = vmul.f32 %v2454_v57, %v2454_v57 }
 0x242   : > { %v2502_v47 = vadd.f32 %v2501_v55, %v2471_v32  ;;  %v2457_v34 = vsub.f32 %v4827_v8, %v4883_v58  ;;  %v2487_v33 = vmul.f32 %v2455_v53, %v2455_v53  ;;  %v2458_v25 = vsub.f32 %v4844_v5, %v4883_v58 }
 0x243   : > { %v2488_v50 = vmul.f32 %v2456_v62, %v2456_v62  ;;  %v2459_v29 = vsub.f32 %v4851_v36, %v4883_v58  ;;  %v2460_v52 = vsub.f32 %v4842_v21, %v4883_v58  ;;  %v2461_v8 = vsub.f32 %v4848_v7, %v4883_v58 }
 0x244   : > { %v2503_v48 = vadd.f32 %v2502_v47, %v2472_v49  ;;  %v2489_v55 = vmul.f32 %v2457_v34, %v2457_v34  ;;  %v2490_v49 = vmul.f32 %v2458_v25, %v2458_v25  ;;  %v2462_v5 = vsub.f32 %v4863_v38, %v4883_v58 }
 0x245   : > { %v2491_v37 = vmul.f32 %v2459_v29, %v2459_v29  ;;  %v2463_v36 = vsub.f32 %v4870_v19, %v4883_v58  ;;  %v2464_v21 = vsub.f32 %v4866_v31, %v4883_v58  ;;  %v2465_v7 = vsub.f32 %v4872_v42, %v4883_v58 }
 0x246   : > { %v2504_v15 = vadd.f32 %v2503_v48, %v2473_v10  ;;  %v2492_v48 = vmul.f32 %v2460_v52, %v2460_v52  ;;  %v2494_v23 = vmul.f32 %v2462_v5, %v2462_v5 }
 0x248   : > { %v2505_v60 = vadd.f32 %v2504_v15, %v2474_v16  ;;  %v2493_v16 = vmul.f32 %v2461_v8, %v2461_v8 }
 0x24a   : > { %v2506_v0 = vadd.f32 %v2505_v60, %v2475_v20  ;;  %v2495_v60 = vmul.f32 %v2463_v36, %v2463_v36 }
 0x24c   : > { %v2507_v28 = vadd.f32 %v2506_v0, %v2476_v11  ;;  %v2496_v11 = vmul.f32 %v2464_v21, %v2464_v21  ;;  %v2497_v0 = vmul.f32 %v2465_v7, %v2465_v7 }
 0x24e   : > { %v2508_v59 = vadd.f32 %v2507_v28, %v2477_v3 }
 0x250   : > { %v2509_v27 = vadd.f32 %v2508_v59, %v2478_v6 }
 0x252   : > { %v2510_v39 = vadd.f32 %v2509_v27, %v2479_v51 }
 0x254   : > { %v2511_v2 = vadd.f32 %v2510_v39, %v2480_v43 }
 0x256   : > { %v2512_v4 = vadd.f32 %v2511_v2, %v2481_v17 }
 0x258   : > { %v2513_v13 = vadd.f32 %v2512_v4, %v2482_v12 }
 0x25a   : > { %v2514_v41 = vadd.f32 %v2513_v13, %v2483_v45 }
 0x25c   : > { %v2515_v61 = vadd.f32 %v2514_v41, %v2484_v44 }
 0x25e   : > { %v2516_v14 = vadd.f32 %v2515_v61, %v2485_v22 }
 0x260   : > { %v2517_v26 = vadd.f32 %v2516_v14, %v2486_v30 }
 0x262   : > { %v2518_v32 = vadd.f32 %v2517_v26, %v2487_v33 }
 0x264   : > { %v2519_v9 = vadd.f32 %v2518_v32, %v2488_v50 }
 0x266   : > { %v2520_v47 = vadd.f32 %v2519_v9, %v2489_v55 }
 0x268   : > { %v2521_v10 = vadd.f32 %v2520_v47, %v2490_v49 }
 0x26a   : > { %v2522_v54 = vadd.f32 %v2521_v10, %v2491_v37 }
 0x26c   : > { %v2523_v15 = vadd.f32 %v2522_v54, %v2492_v48 }
 0x26e   : > { %v2524_v20 = vadd.f32 %v2523_v15, %v2493_v16 }
 0x270   : > { %v2525_v35 = vadd.f32 %v2524_v20, %v2494_v23 }
 0x272   : > { %v2526_v38 = vadd.f32 %v2525_v35, %v2495_v60 }
 0x274   : > { %v2527_v1 = vadd.f32 %v2526_v38, %v2496_v11 }
 0x276   : > { %v2528_v3 = vadd.f32 %v2527_v1, %v2497_v0 }
 0x278   : > { %v2529_v28 = vrot.slane %v2528_v3, 4 }
 0x27a   : > { %v2530_v19 = vadd.f32 %v2529_v28, %v2528_v3 }
 0x27c   : > { %v2531_v40 = vrot.slane %v2530_v19, 2 }
 0x27e   : > { %v2532_v6 = vadd.f32 %v2531_v40, %v2530_v19 }
 0x280   : > { %v2533_v59 = vrot.slane %v2532_v6, 1 }
 0x282   : > { %v2534_v31 = vadd.f32 %v2533_v59, %v2532_v6 }
 0x284   : > { %v2536_v42 = vsel %vm2535_vm0, %v4883_v58, %v2534_v31 }
 0x285   : > { %2537 = vst [vmem:[%s235_s22] sm:$0x3] %v2536_v42 }
 0x286 PF: > { %s16_s18 = sadd.s32 1, %s3861_s18  }
 0x287   : > { %p13_p4 = scmp.ge.s32.totalorder %s16_s18, 4  }
 0x289   :  { %15 = sbr.rel (!%p13_p4) target bundleno = 1 (0x1), region = 81 }

</bundles_post_ra>
